<compile_context>
chip_gen: v5e
topology: v5e:2x2
jax: 0.10.0
libtpu: 0.0.40
codegen_flags: <defaults>
</compile_context>

<pallas_src>
import math
from functools import partial

import jax
import jax.numpy as jnp
from jax import lax
from jax.experimental import pallas as pl
from jax.experimental.pallas import tpu as pltpu

# ---------------- small config consistent with the module structure ---------
IN_CHAN = 3            # module: in_chan=3
PATCH = 4              # module: 16 (scaled down)
IMG = 16               # image H = W
D_MODEL = 128          # module: 768 (scaled down, kept a multiple of 128 lanes)
NHEAD = 4              # module: 12 (scaled down)
HEAD_DIM = D_MODEL // NHEAD
FF = 4 * D_MODEL       # ff_ratio = 4
N_LAYERS = 2           # module: 12 (scaled down, identical per-layer structure)
MAX_SEQ = 64           # module: 1024 (scaled down)
SEQ = (IMG // PATCH) ** 2
BATCH = 4
BATCH_BLOCK = 2        # images folded into one M-slab per grid step
K_RAW = IN_CHAN * PATCH * PATCH     # 48
K_PAD = 128                         # patch features zero-padded to a full lane group
LN_EPS = 1e-5                       # TransformerEncoderLayer LayerNorm default
FINAL_EPS = 1e-6                    # Encoder.norm eps
BF16 = jnp.bfloat16


# ---------------- in-kernel math helpers -------------------------------------
def _layernorm(x, w, b, eps):
    mu = jnp.mean(x, axis=-1, keepdims=True)
    xc = x - mu
    var = jnp.mean(xc * xc, axis=-1, keepdims=True)
    return xc * lax.rsqrt(var + eps) * w + b


def _gelu_exact(x):
    # PyTorch 'gelu' activation is the exact erf-based GELU.
    return 0.5 * x * (1.0 + lax.erf(x * (1.0 / math.sqrt(2.0))))


# ---------------- fused Pallas kernel ----------------------------------------
# grid = (batch_blocks, n_layers); activations live in x_scratch across layers.
def fused_encoder_kernel(patches_ref, projw_ref, projb_ref, pos_ref,
                         ln1w_ref, ln1b_ref, wqkv_ref, bqkv_ref,
                         wo_ref, bo_ref, ln2w_ref, ln2b_ref,
                         w1_ref, b1_ref, w2_ref, b2_ref,
                         flnw_ref, flnb_ref,
                         out_ref, x_scratch,
                         *, nhead, head_dim, batch_block, seq):
    d_model = nhead * head_dim
    scale = 1.0 / math.sqrt(head_dim)
    l = pl.program_id(1)

    # ---- patch embedding (Conv2d k=s=P as a matmul) + positional embedding ----
    @pl.when(l == 0)
    def _embed():
        x0 = jnp.dot(patches_ref[...].astype(BF16), projw_ref[...],
                     preferred_element_type=jnp.float32)
        x_scratch[...] = x0 + projb_ref[...] + pos_ref[...]     # (M, D) f32

    x = x_scratch[...]                                          # (M, D) f32

    # ---- self-attention block (norm_first=True) ----
    hn = _layernorm(x, ln1w_ref[0], ln1b_ref[0], LN_EPS)
    # fused QKV: one lane-dense (M,128)@(128,384) bf16 MXU matmul, f32 accumulate
    qkv = jnp.dot(hn.astype(BF16), wqkv_ref[0],
                  preferred_element_type=jnp.float32) + bqkv_ref[0]   # (M, 3D)

    attn = jnp.zeros(x.shape, jnp.float32)
    for h in range(nhead):
        c0 = h * head_dim
        qh = qkv[:, c0:c0 + head_dim]
        kh = qkv[:, d_model + c0:d_model + c0 + head_dim]
        vh = qkv[:, 2 * d_model + c0:2 * d_model + c0 + head_dim]
        ctx_rows = []
        # block-diagonal attention: each image in the folded batch block
        # attends only within its own sequence.
        for bb in range(batch_block):
            r0 = bb * seq
            q_b = qh[r0:r0 + seq].astype(BF16)
            k_b = kh[r0:r0 + seq].astype(BF16)
            v_b = vh[r0:r0 + seq].astype(BF16)
            # q·kT contracting last dims (no explicit .T); at S=16 any hidden
            # transpose is noise — re-check with pl.lower_as_mlir at S=1024.
            s = lax.dot_general(q_b, k_b, (((1,), (1,)), ((), ())),
                                preferred_element_type=jnp.float32) * scale
            s = s - jnp.max(s, axis=-1, keepdims=True)
            e = jnp.exp(s)
            inv = pl.reciprocal(jnp.sum(e, axis=-1, keepdims=True), approx=False)
            p = e * inv
            ctx_rows.append(jnp.dot(p.astype(BF16), v_b,
                                    preferred_element_type=jnp.float32))
        ctx = jnp.concatenate(ctx_rows, axis=0) if batch_block > 1 else ctx_rows[0]
        # output projection accumulated per head: no attn scratch, no masked
        # 32-lane stores, no store->load dependency.
        attn = attn + jnp.dot(ctx.astype(BF16), wo_ref[0, h],
                              preferred_element_type=jnp.float32)
    x = x + attn + bo_ref[0]

    # ---- feed-forward block ----
    hn2 = _layernorm(x, ln2w_ref[0], ln2b_ref[0], LN_EPS)
    f = jnp.dot(hn2.astype(BF16), w1_ref[0],
                preferred_element_type=jnp.float32) + b1_ref[0]
    f = _gelu_exact(f)
    f = jnp.dot(f.astype(BF16), w2_ref[0],
                preferred_element_type=jnp.float32) + b2_ref[0]
    x = x + f

    x_scratch[...] = x           # carry activations to the next layer step

    # ---- final LayerNorm (eps=1e-6), written once at the last layer step ----
    @pl.when(l == pl.num_programs(1) - 1)
    def _final():
        out_ref[...] = _layernorm(x, flnw_ref[...], flnb_ref[...], FINAL_EPS)


# ---------------- pallas_call wrapper -----------------------------------------
def encoder_forward(x, params):
    patches = prepare_patches(x)                      # (B, S, K_PAD) f32
    B, S, K = patches.shape
    assert B % BATCH_BLOCK == 0
    nblk = B // BATCH_BLOCK
    M = BATCH_BLOCK * S
    patches2d = patches.reshape(B * S, K)             # batch folded into M
    pos_tiled = jnp.tile(params["pos"], (BATCH_BLOCK, 1))       # (M, D) f32

    def const_spec(a):                                # grid-invariant, resident
        nd = a.ndim
        return pl.BlockSpec(a.shape, lambda b, l, _nd=nd: (0,) * _nd)

    def layer_spec(a):                                # streamed per layer step
        block = (1,) + a.shape[1:]
        rest = (0,) * (a.ndim - 1)
        return pl.BlockSpec(block, lambda b, l, _r=rest: (l,) + _r)

    # order must match the kernel signature
    weights = [
        (params["proj_w"], const_spec), (params["proj_b"], const_spec),
        (pos_tiled, const_spec),
        (params["ln1w"], layer_spec), (params["ln1b"], layer_spec),
        (params["wqkv"], layer_spec), (params["bqkv"], layer_spec),
        (params["wo"], layer_spec), (params["bo"], layer_spec),
        (params["ln2w"], layer_spec), (params["ln2b"], layer_spec),
        (params["w1"], layer_spec), (params["b1"], layer_spec),
        (params["w2"], layer_spec), (params["b2"], layer_spec),
        (params["fln_w"], const_spec), (params["fln_b"], const_spec),
    ]
    w_arrays = [w for w, _ in weights]
    w_specs = [mk(w) for w, mk in weights]

    kernel = partial(fused_encoder_kernel, nhead=NHEAD, head_dim=HEAD_DIM,
                     batch_block=BATCH_BLOCK, seq=S)

    # TODO(synk): at production scale (D=768, 12 layers) set vmem_limit_bytes
    # explicitly and audit single-buffering of the grid-invariant weight specs.
    out_flat = pl.pallas_call(
        kernel,
        out_shape=jax.ShapeDtypeStruct((B * S, D_MODEL), jnp.float32),
        grid=(nblk, N_LAYERS),
        in_specs=[pl.BlockSpec((M, K), lambda b, l: (b, 0))] + w_specs,
        out_specs=pl.BlockSpec((M, D_MODEL), lambda b, l: (b, 0)),
        scratch_shapes=[pltpu.VMEM((M, D_MODEL), jnp.float32)],
        compiler_params=pltpu.CompilerParams(
            dimension_semantics=("parallel", "arbitrary")),
    )(patches2d, *w_arrays)
    return out_flat.reshape(B, S, D_MODEL)


# ---------------- glue: patchify + parameters ----------------------------------
def extract_patches(x):
    # x: (B, C, H, W) NCHW -> (B, S, C*P*P), matching Conv2d(k=s=P)+flatten+transpose
    B, C, H, W = x.shape
    P = PATCH
    x = x.reshape(B, C, H // P, P, W // P, P)
    x = x.transpose(0, 2, 4, 1, 3, 5)                 # (B, H', W', C, P, P)
    return x.reshape(B, (H // P) * (W // P), C * P * P)


def prepare_patches(x):
    p = extract_patches(x)                            # (B, S, 48)
    return jnp.pad(p, ((0, 0), (0, 0), (0, K_PAD - p.shape[-1])))


def init_params(key):
    keys = iter(jax.random.split(key, 64))

    def nrm(shape, dtype=jnp.float32, scale=0.02):
        return (scale * jax.random.normal(next(keys), shape, jnp.float32)).astype(dtype)

    # Conv2d weight (D, C, P, P) flattened + transposed, then zero-padded rows
    # to match the zero-padded patch features (padding does not change the result).
    conv_w = nrm((D_MODEL, IN_CHAN, PATCH, PATCH))
    proj_w = conv_w.reshape(D_MODEL, K_RAW).T
    proj_w = jnp.pad(proj_w, ((0, K_PAD - K_RAW), (0, 0))).astype(BF16)

    L, H, D, HD = N_LAYERS, NHEAD, D_MODEL, HEAD_DIM
    params = {
        "proj_w": proj_w,                               # (K_PAD, D) bf16
        "proj_b": nrm((1, D)),
        # nn.Embedding(max_seq_len, d_model); forward only uses rows [0:S].
        "pos": nrm((MAX_SEQ, D))[:SEQ],                 # (S, D) f32
        "ln1w": jnp.ones((L, 1, D), jnp.float32),
        "ln1b": jnp.zeros((L, 1, D), jnp.float32),
        # fused in_proj: columns [0:D]=Q, [D:2D]=K, [2D:3D]=V (head-major, hd contiguous)
        "wqkv": nrm((L, D, 3 * D), BF16), "bqkv": nrm((L, 1, 3 * D)),
        # out_proj split per head: (L, H, hd, D)
        "wo": nrm((L, H, HD, D), BF16),   "bo": nrm((L, 1, D)),
        "ln2w": jnp.ones((L, 1, D), jnp.float32),
        "ln2b": jnp.zeros((L, 1, D), jnp.float32),
        "w1": nrm((L, D, FF), BF16),      "b1": nrm((L, 1, FF)),
        "w2": nrm((L, FF, D), BF16),      "b2": nrm((L, 1, D)),
        "fln_w": jnp.ones((1, D), jnp.float32),
        "fln_b": jnp.zeros((1, D), jnp.float32),
    }
    return params


# ---------------- pure-JAX reference (for correctness check) -------------------
def _bdot(a, b):
    # mirrors the kernel: bf16 MXU operands, f32 accumulation
    return jnp.dot(a.astype(BF16), b.astype(BF16), preferred_element_type=jnp.float32)


def _ln_ref(x, w, b, eps):
    mu = jnp.mean(x, axis=-1, keepdims=True)
    xc = x - mu
    var = jnp.mean(xc * xc, axis=-1, keepdims=True)
    return xc * lax.rsqrt(var + eps) * w + b


def reference_forward(x, params):
    h = _bdot(prepare_patches(x), params["proj_w"]) + params["proj_b"] + params["pos"][None]
    B, S, D = h.shape
    for l in range(N_LAYERS):
        y = _ln_ref(h, params["ln1w"][l], params["ln1b"][l], LN_EPS)
        qkv = _bdot(y, params["wqkv"][l]) + params["bqkv"][l]            # (B,S,3D) f32
        q = qkv[..., :D].reshape(B, S, NHEAD, HEAD_DIM).transpose(0, 2, 1, 3)
        k = qkv[..., D:2 * D].reshape(B, S, NHEAD, HEAD_DIM).transpose(0, 2, 1, 3)
        v = qkv[..., 2 * D:].reshape(B, S, NHEAD, HEAD_DIM).transpose(0, 2, 1, 3)
        s = jnp.einsum("bhqe,bhke->bhqk", q.astype(BF16), k.astype(BF16),
                       preferred_element_type=jnp.float32) / math.sqrt(HEAD_DIM)
        p = jax.nn.softmax(s, axis=-1)
        ctx = jnp.einsum("bhqk,bhke->bhqe", p.astype(BF16), v.astype(BF16),
                         preferred_element_type=jnp.float32)              # (B,H,S,hd)
        attn = jnp.einsum("bhqe,hed->bqd", ctx.astype(BF16),
                          params["wo"][l].astype(BF16),
                          preferred_element_type=jnp.float32) + params["bo"][l]
        h = h + attn
        y2 = _ln_ref(h, params["ln2w"][l], params["ln2b"][l], LN_EPS)
        f = jax.nn.gelu(_bdot(y2, params["w1"][l]) + params["b1"][l], approximate=False)
        h = h + _bdot(f, params["w2"][l]) + params["b2"][l]
    return _ln_ref(h, params["fln_w"], params["fln_b"], FINAL_EPS)


if __name__ == "__main__":
    key = jax.random.PRNGKey(0)
    pkey, xkey = jax.random.split(key)
    params = init_params(pkey)
    x = jax.random.normal(xkey, (BATCH, IN_CHAN, IMG, IMG), jnp.float32)

    fwd = jax.jit(encoder_forward)
    out = jax.block_until_ready(fwd(x, params))
    assert out.shape == (BATCH, SEQ, D_MODEL), out.shape
    assert bool(jnp.all(jnp.isfinite(out)))

    ref = reference_forward(x, params)
    max_err = float(jnp.max(jnp.abs(out - ref)))
    # kernel and reference use identical bf16-operand / f32-accumulate matmuls;
    # tolerance covers accumulation-order differences only.
    assert max_err < 5e-3, max_err
    print("KERNEL_OK")
</pallas_src>

<mosaic_0001>
module attributes {stable_mosaic.version = 11 : i64} {
  func.func @fused_encoder_kernel(%arg0: i32, %arg1: i32, %arg2: memref<32x128xf32, #tpu.memory_space<vmem>>, %arg3: memref<128x128xbf16, #tpu.memory_space<vmem>>, %arg4: memref<1x128xf32, #tpu.memory_space<vmem>>, %arg5: memref<32x128xf32, #tpu.memory_space<vmem>>, %arg6: memref<1x1x128xf32, #tpu.memory_space<vmem>>, %arg7: memref<1x1x128xf32, #tpu.memory_space<vmem>>, %arg8: memref<1x128x384xbf16, #tpu.memory_space<vmem>>, %arg9: memref<1x1x384xf32, #tpu.memory_space<vmem>>, %arg10: memref<1x4x32x128xbf16, #tpu.memory_space<vmem>>, %arg11: memref<1x1x128xf32, #tpu.memory_space<vmem>>, %arg12: memref<1x1x128xf32, #tpu.memory_space<vmem>>, %arg13: memref<1x1x128xf32, #tpu.memory_space<vmem>>, %arg14: memref<1x128x512xbf16, #tpu.memory_space<vmem>>, %arg15: memref<1x1x512xf32, #tpu.memory_space<vmem>>, %arg16: memref<1x512x128xbf16, #tpu.memory_space<vmem>>, %arg17: memref<1x1x128xf32, #tpu.memory_space<vmem>>, %arg18: memref<1x128xf32, #tpu.memory_space<vmem>>, %arg19: memref<1x128xf32, #tpu.memory_space<vmem>>, %arg20: memref<32x128xf32, #tpu.memory_space<vmem>>, %arg21: memref<32x128xf32, #tpu.memory_space<vmem>>) attributes {dimension_semantics = [#tpu.dimension_semantics<parallel>, #tpu.dimension_semantics<arbitrary>], iteration_bounds = array<i64: 2, 2>, scalar_prefetch = 0 : i64, scratch_operands = 1 : i64, tpu.core_type = #tpu.core_type<tc>, window_params = [{transform_indices = @transform_0, window_bounds = array<i64: 32, 128>}, {pipeline_mode = #tpu.pipeline_mode<synchronous>, transform_indices = @transform_1, window_bounds = array<i64: 128, 128>}, {pipeline_mode = #tpu.pipeline_mode<synchronous>, transform_indices = @transform_2, window_bounds = array<i64: 1, 128>}, {pipeline_mode = #tpu.pipeline_mode<synchronous>, transform_indices = @transform_3, window_bounds = array<i64: 32, 128>}, {transform_indices = @transform_4, window_bounds = array<i64: 1, 1, 128>}, {transform_indices = @transform_5, window_bounds = array<i64: 1, 1, 128>}, {transform_indices = @transform_6, window_bounds = array<i64: 1, 128, 384>}, {transform_indices = @transform_7, window_bounds = array<i64: 1, 1, 384>}, {transform_indices = @transform_8, window_bounds = array<i64: 1, 4, 32, 128>}, {transform_indices = @transform_9, window_bounds = array<i64: 1, 1, 128>}, {transform_indices = @transform_10, window_bounds = array<i64: 1, 1, 128>}, {transform_indices = @transform_11, window_bounds = array<i64: 1, 1, 128>}, {transform_indices = @transform_12, window_bounds = array<i64: 1, 128, 512>}, {transform_indices = @transform_13, window_bounds = array<i64: 1, 1, 512>}, {transform_indices = @transform_14, window_bounds = array<i64: 1, 512, 128>}, {transform_indices = @transform_15, window_bounds = array<i64: 1, 1, 128>}, {pipeline_mode = #tpu.pipeline_mode<synchronous>, transform_indices = @transform_16, window_bounds = array<i64: 1, 128>}, {pipeline_mode = #tpu.pipeline_mode<synchronous>, transform_indices = @transform_17, window_bounds = array<i64: 1, 128>}, {transform_indices = @transform_18, window_bounds = array<i64: 32, 128>}]} {
    %c0_i32 = arith.constant 0 : i32
    %0 = arith.cmpi eq, %arg1, %c0_i32 : i32
    %1 = arith.extui %0 : i1 to i32
    %c0_i32_0 = arith.constant 0 : i32
    %2 = arith.cmpi ne, %1, %c0_i32_0 : i32
    scf.if %2 {
      %c0_111 = arith.constant 0 : index
      %c0_112 = arith.constant 0 : index
      %299 = vector.load %arg2[%c0_111, %c0_112] : memref<32x128xf32, #tpu.memory_space<vmem>>, vector<32x128xf32>
      %300 = arith.truncf %299 : vector<32x128xf32> to vector<32x128xbf16>
      %c0_113 = arith.constant 0 : index
      %c0_114 = arith.constant 0 : index
      %301 = vector.load %arg3[%c0_113, %c0_114] : memref<128x128xbf16, #tpu.memory_space<vmem>>, vector<128x128xbf16>
      %cst_115 = arith.constant dense<0.000000e+00> : vector<32x128xf32>
      %302 = tpu.matmul %300, %301, %cst_115 {dimension_numbers = #tpu.dot_dimension_numbers<[1], [0], [0], [1], [0, 0, 1, 1], [], []>} : vector<32x128xbf16>, vector<128x128xbf16>, vector<32x128xf32> -> vector<32x128xf32>
      %c0_116 = arith.constant 0 : index
      %c0_117 = arith.constant 0 : index
      %303 = vector.load %arg4[%c0_116, %c0_117] : memref<1x128xf32, #tpu.memory_space<vmem>>, vector<1x128xf32>
      %304 = vector.broadcast %303 : vector<1x128xf32> to vector<32x128xf32>
      %305 = arith.addf %302, %304 : vector<32x128xf32>
      %c0_118 = arith.constant 0 : index
      %c0_119 = arith.constant 0 : index
      %306 = vector.load %arg5[%c0_118, %c0_119] : memref<32x128xf32, #tpu.memory_space<vmem>>, vector<32x128xf32>
      %307 = arith.addf %305, %306 : vector<32x128xf32>
      %c0_120 = arith.constant 0 : index
      %c0_121 = arith.constant 0 : index
      %308 = vector.load %arg21[%c0_120, %c0_121] : memref<32x128xf32, #tpu.memory_space<vmem>>, vector<32x128xf32>
      tpu.vector_store %arg21[%c0_120, %c0_121], %307 {strides = array<i32>} : memref<32x128xf32, #tpu.memory_space<vmem>>, vector<32x128xf32>,
    } else {
    }
    %c0 = arith.constant 0 : index
    %c0_1 = arith.constant 0 : index
    %3 = vector.load %arg21[%c0, %c0_1] : memref<32x128xf32, #tpu.memory_space<vmem>>, vector<32x128xf32>
    %c0_2 = arith.constant 0 : index
    %c0_3 = arith.constant 0 : index
    %c0_4 = arith.constant 0 : index
    %4 = vector.load %arg6[%c0_2, %c0_3, %c0_4] : memref<1x1x128xf32, #tpu.memory_space<vmem>>, vector<1x1x128xf32>
    %5 = vector.shape_cast %4 : vector<1x1x128xf32> to vector<1x128xf32>
    %c0_5 = arith.constant 0 : index
    %c0_6 = arith.constant 0 : index
    %c0_7 = arith.constant 0 : index
    %6 = vector.load %arg7[%c0_5, %c0_6, %c0_7] : memref<1x1x128xf32, #tpu.memory_space<vmem>>, vector<1x1x128xf32>
    %7 = vector.shape_cast %6 : vector<1x1x128xf32> to vector<1x128xf32>
    %cst = arith.constant dense<0.000000e+00> : vector<32xf32>
    %8 = vector.multi_reduction <add>, %3, %cst [1] : vector<32x128xf32> to vector<32xf32>
    %9 = vector.shape_cast %8 : vector<32xf32> to vector<32x1xf32>
    %cst_8 = arith.constant 1.280000e+02 : f32
    %10 = vector.broadcast %cst_8 : f32 to vector<32x1xf32>
    %11 = arith.divf %9, %10 : vector<32x1xf32>
    %12 = vector.broadcast %11 : vector<32x1xf32> to vector<32x128xf32>
    %13 = arith.subf %3, %12 : vector<32x128xf32>
    %14 = arith.mulf %13, %13 : vector<32x128xf32>
    %cst_9 = arith.constant dense<0.000000e+00> : vector<32xf32>
    %15 = vector.multi_reduction <add>, %14, %cst_9 [1] : vector<32x128xf32> to vector<32xf32>
    %16 = vector.shape_cast %15 : vector<32xf32> to vector<32x1xf32>
    %cst_10 = arith.constant 1.280000e+02 : f32
    %17 = vector.broadcast %cst_10 : f32 to vector<32x1xf32>
    %18 = arith.divf %16, %17 : vector<32x1xf32>
    %cst_11 = arith.constant 9.99999974E-6 : f32
    %19 = vector.broadcast %cst_11 : f32 to vector<32x1xf32>
    %20 = arith.addf %18, %19 : vector<32x1xf32>
    %21 = math.rsqrt %20 : vector<32x1xf32>
    %22 = vector.broadcast %21 : vector<32x1xf32> to vector<32x128xf32>
    %23 = arith.mulf %13, %22 : vector<32x128xf32>
    %24 = vector.broadcast %5 : vector<1x128xf32> to vector<32x128xf32>
    %25 = arith.mulf %23, %24 : vector<32x128xf32>
    %26 = vector.broadcast %7 : vector<1x128xf32> to vector<32x128xf32>
    %27 = arith.addf %25, %26 : vector<32x128xf32>
    %28 = arith.truncf %27 : vector<32x128xf32> to vector<32x128xbf16>
    %c0_12 = arith.constant 0 : index
    %c0_13 = arith.constant 0 : index
    %c0_14 = arith.constant 0 : index
    %29 = vector.load %arg8[%c0_12, %c0_13, %c0_14] : memref<1x128x384xbf16, #tpu.memory_space<vmem>>, vector<1x128x384xbf16>
    %30 = vector.shape_cast %29 : vector<1x128x384xbf16> to vector<128x384xbf16>
    %cst_15 = arith.constant dense<0.000000e+00> : vector<32x384xf32>
    %31 = tpu.matmul %28, %30, %cst_15 {dimension_numbers = #tpu.dot_dimension_numbers<[1], [0], [0], [1], [0, 0, 1, 1], [], []>} : vector<32x128xbf16>, vector<128x384xbf16>, vector<32x384xf32> -> vector<32x384xf32>
    %c0_16 = arith.constant 0 : index
    %c0_17 = arith.constant 0 : index
    %c0_18 = arith.constant 0 : index
    %32 = vector.load %arg9[%c0_16, %c0_17, %c0_18] : memref<1x1x384xf32, #tpu.memory_space<vmem>>, vector<1x1x384xf32>
    %33 = vector.shape_cast %32 : vector<1x1x384xf32> to vector<1x384xf32>
    %34 = vector.broadcast %33 : vector<1x384xf32> to vector<32x384xf32>
    %35 = arith.addf %31, %34 : vector<32x384xf32>
    %cst_19 = arith.constant 0.000000e+00 : f32
    %36 = vector.broadcast %cst_19 : f32 to vector<32x128xf32>
    %37 = vector.extract_strided_slice %35 {offsets = [0, 0], sizes = [32, 32], strides = [1, 1]} : vector<32x384xf32> to vector<32x32xf32>
    %38 = vector.extract_strided_slice %35 {offsets = [0, 128], sizes = [32, 32], strides = [1, 1]} : vector<32x384xf32> to vector<32x32xf32>
    %39 = vector.extract_strided_slice %35 {offsets = [0, 256], sizes = [32, 32], strides = [1, 1]} : vector<32x384xf32> to vector<32x32xf32>
    %40 = vector.extract_strided_slice %37 {offsets = [0, 0], sizes = [16, 32], strides = [1, 1]} : vector<32x32xf32> to vector<16x32xf32>
    %41 = arith.truncf %40 : vector<16x32xf32> to vector<16x32xbf16>
    %42 = vector.extract_strided_slice %38 {offsets = [0, 0], sizes = [16, 32], strides = [1, 1]} : vector<32x32xf32> to vector<16x32xf32>
    %43 = arith.truncf %42 : vector<16x32xf32> to vector<16x32xbf16>
    %44 = vector.extract_strided_slice %39 {offsets = [0, 0], sizes = [16, 32], strides = [1, 1]} : vector<32x32xf32> to vector<16x32xf32>
    %45 = arith.truncf %44 : vector<16x32xf32> to vector<16x32xbf16>
    %cst_20 = arith.constant dense<0.000000e+00> : vector<16x16xf32>
    %46 = tpu.matmul %41, %43, %cst_20 {dimension_numbers = #tpu.dot_dimension_numbers<[1], [1], [0], [0], [0, 0, 1, 0], [], []>} : vector<16x32xbf16>, vector<16x32xbf16>, vector<16x16xf32> -> vector<16x16xf32>
    %cst_21 = arith.constant 0.176776692 : f32
    %47 = vector.broadcast %cst_21 : f32 to vector<16x16xf32>
    %48 = arith.mulf %46, %47 : vector<16x16xf32>
    %cst_22 = arith.constant dense<0xFF800000> : vector<16xf32>
    %49 = vector.multi_reduction <maximumf>, %48, %cst_22 [1] : vector<16x16xf32> to vector<16xf32>
    %50 = vector.shape_cast %49 : vector<16xf32> to vector<16x1xf32>
    %51 = vector.broadcast %50 : vector<16x1xf32> to vector<16x16xf32>
    %52 = arith.subf %48, %51 : vector<16x16xf32>
    %53 = math.exp %52 : vector<16x16xf32>
    %cst_23 = arith.constant dense<0.000000e+00> : vector<16xf32>
    %54 = vector.multi_reduction <add>, %53, %cst_23 [1] : vector<16x16xf32> to vector<16xf32>
    %55 = vector.shape_cast %54 : vector<16xf32> to vector<16x1xf32>
    %56 = tpu.reciprocal %55 : vector<16x1xf32> -> vector<16x1xf32>
    %57 = vector.broadcast %56 : vector<16x1xf32> to vector<16x16xf32>
    %58 = arith.mulf %53, %57 : vector<16x16xf32>
    %59 = arith.truncf %58 : vector<16x16xf32> to vector<16x16xbf16>
    %cst_24 = arith.constant dense<0.000000e+00> : vector<16x32xf32>
    %60 = tpu.matmul %59, %45, %cst_24 {dimension_numbers = #tpu.dot_dimension_numbers<[1], [0], [0], [1], [0, 0, 1, 1], [], []>} : vector<16x16xbf16>, vector<16x32xbf16>, vector<16x32xf32> -> vector<16x32xf32>
    %61 = vector.extract_strided_slice %37 {offsets = [16, 0], sizes = [16, 32], strides = [1, 1]} : vector<32x32xf32> to vector<16x32xf32>
    %62 = arith.truncf %61 : vector<16x32xf32> to vector<16x32xbf16>
    %63 = vector.extract_strided_slice %38 {offsets = [16, 0], sizes = [16, 32], strides = [1, 1]} : vector<32x32xf32> to vector<16x32xf32>
    %64 = arith.truncf %63 : vector<16x32xf32> to vector<16x32xbf16>
    %65 = vector.extract_strided_slice %39 {offsets = [16, 0], sizes = [16, 32], strides = [1, 1]} : vector<32x32xf32> to vector<16x32xf32>
    %66 = arith.truncf %65 : vector<16x32xf32> to vector<16x32xbf16>
    %cst_25 = arith.constant dense<0.000000e+00> : vector<16x16xf32>
    %67 = tpu.matmul %62, %64, %cst_25 {dimension_numbers = #tpu.dot_dimension_numbers<[1], [1], [0], [0], [0, 0, 1, 0], [], []>} : vector<16x32xbf16>, vector<16x32xbf16>, vector<16x16xf32> -> vector<16x16xf32>
    %cst_26 = arith.constant 0.176776692 : f32
    %68 = vector.broadcast %cst_26 : f32 to vector<16x16xf32>
    %69 = arith.mulf %67, %68 : vector<16x16xf32>
    %cst_27 = arith.constant dense<0xFF800000> : vector<16xf32>
    %70 = vector.multi_reduction <maximumf>, %69, %cst_27 [1] : vector<16x16xf32> to vector<16xf32>
    %71 = vector.shape_cast %70 : vector<16xf32> to vector<16x1xf32>
    %72 = vector.broadcast %71 : vector<16x1xf32> to vector<16x16xf32>
    %73 = arith.subf %69, %72 : vector<16x16xf32>
    %74 = math.exp %73 : vector<16x16xf32>
    %cst_28 = arith.constant dense<0.000000e+00> : vector<16xf32>
    %75 = vector.multi_reduction <add>, %74, %cst_28 [1] : vector<16x16xf32> to vector<16xf32>
    %76 = vector.shape_cast %75 : vector<16xf32> to vector<16x1xf32>
    %77 = tpu.reciprocal %76 : vector<16x1xf32> -> vector<16x1xf32>
    %78 = vector.broadcast %77 : vector<16x1xf32> to vector<16x16xf32>
    %79 = arith.mulf %74, %78 : vector<16x16xf32>
    %80 = arith.truncf %79 : vector<16x16xf32> to vector<16x16xbf16>
    %cst_29 = arith.constant dense<0.000000e+00> : vector<16x32xf32>
    %81 = tpu.matmul %80, %66, %cst_29 {dimension_numbers = #tpu.dot_dimension_numbers<[1], [0], [0], [1], [0, 0, 1, 1], [], []>} : vector<16x16xbf16>, vector<16x32xbf16>, vector<16x32xf32> -> vector<16x32xf32>
    %82 = tpu.concatenate %60, %81 in 0 : vector<16x32xf32>, vector<16x32xf32> -> vector<32x32xf32>
    %83 = arith.truncf %82 : vector<32x32xf32> to vector<32x32xbf16>
    %c0_30 = arith.constant 0 : index
    %c0_31 = arith.constant 0 : index
    %c0_32 = arith.constant 0 : index
    %c0_33 = arith.constant 0 : index
    %84 = vector.load %arg10[%c0_30, %c0_31, %c0_32, %c0_33] : memref<1x4x32x128xbf16, #tpu.memory_space<vmem>>, vector<1x1x32x128xbf16>
    %85 = vector.shape_cast %84 : vector<1x1x32x128xbf16> to vector<32x128xbf16>
    %cst_34 = arith.constant dense<0.000000e+00> : vector<32x128xf32>
    %86 = tpu.matmul %83, %85, %cst_34 {dimension_numbers = #tpu.dot_dimension_numbers<[1], [0], [0], [1], [0, 0, 1, 1], [], []>} : vector<32x32xbf16>, vector<32x128xbf16>, vector<32x128xf32> -> vector<32x128xf32>
    %87 = arith.addf %36, %86 : vector<32x128xf32>
    %88 = vector.extract_strided_slice %35 {offsets = [0, 32], sizes = [32, 32], strides = [1, 1]} : vector<32x384xf32> to vector<32x32xf32>
    %89 = vector.extract_strided_slice %35 {offsets = [0, 160], sizes = [32, 32], strides = [1, 1]} : vector<32x384xf32> to vector<32x32xf32>
    %90 = vector.extract_strided_slice %35 {offsets = [0, 288], sizes = [32, 32], strides = [1, 1]} : vector<32x384xf32> to vector<32x32xf32>
    %91 = vector.extract_strided_slice %88 {offsets = [0, 0], sizes = [16, 32], strides = [1, 1]} : vector<32x32xf32> to vector<16x32xf32>
    %92 = arith.truncf %91 : vector<16x32xf32> to vector<16x32xbf16>
    %93 = vector.extract_strided_slice %89 {offsets = [0, 0], sizes = [16, 32], strides = [1, 1]} : vector<32x32xf32> to vector<16x32xf32>
    %94 = arith.truncf %93 : vector<16x32xf32> to vector<16x32xbf16>
    %95 = vector.extract_strided_slice %90 {offsets = [0, 0], sizes = [16, 32], strides = [1, 1]} : vector<32x32xf32> to vector<16x32xf32>
    %96 = arith.truncf %95 : vector<16x32xf32> to vector<16x32xbf16>
    %cst_35 = arith.constant dense<0.000000e+00> : vector<16x16xf32>
    %97 = tpu.matmul %92, %94, %cst_35 {dimension_numbers = #tpu.dot_dimension_numbers<[1], [1], [0], [0], [0, 0, 1, 0], [], []>} : vector<16x32xbf16>, vector<16x32xbf16>, vector<16x16xf32> -> vector<16x16xf32>
    %cst_36 = arith.constant 0.176776692 : f32
    %98 = vector.broadcast %cst_36 : f32 to vector<16x16xf32>
    %99 = arith.mulf %97, %98 : vector<16x16xf32>
    %cst_37 = arith.constant dense<0xFF800000> : vector<16xf32>
    %100 = vector.multi_reduction <maximumf>, %99, %cst_37 [1] : vector<16x16xf32> to vector<16xf32>
    %101 = vector.shape_cast %100 : vector<16xf32> to vector<16x1xf32>
    %102 = vector.broadcast %101 : vector<16x1xf32> to vector<16x16xf32>
    %103 = arith.subf %99, %102 : vector<16x16xf32>
    %104 = math.exp %103 : vector<16x16xf32>
    %cst_38 = arith.constant dense<0.000000e+00> : vector<16xf32>
    %105 = vector.multi_reduction <add>, %104, %cst_38 [1] : vector<16x16xf32> to vector<16xf32>
    %106 = vector.shape_cast %105 : vector<16xf32> to vector<16x1xf32>
    %107 = tpu.reciprocal %106 : vector<16x1xf32> -> vector<16x1xf32>
    %108 = vector.broadcast %107 : vector<16x1xf32> to vector<16x16xf32>
    %109 = arith.mulf %104, %108 : vector<16x16xf32>
    %110 = arith.truncf %109 : vector<16x16xf32> to vector<16x16xbf16>
    %cst_39 = arith.constant dense<0.000000e+00> : vector<16x32xf32>
    %111 = tpu.matmul %110, %96, %cst_39 {dimension_numbers = #tpu.dot_dimension_numbers<[1], [0], [0], [1], [0, 0, 1, 1], [], []>} : vector<16x16xbf16>, vector<16x32xbf16>, vector<16x32xf32> -> vector<16x32xf32>
    %112 = vector.extract_strided_slice %88 {offsets = [16, 0], sizes = [16, 32], strides = [1, 1]} : vector<32x32xf32> to vector<16x32xf32>
    %113 = arith.truncf %112 : vector<16x32xf32> to vector<16x32xbf16>
    %114 = vector.extract_strided_slice %89 {offsets = [16, 0], sizes = [16, 32], strides = [1, 1]} : vector<32x32xf32> to vector<16x32xf32>
    %115 = arith.truncf %114 : vector<16x32xf32> to vector<16x32xbf16>
    %116 = vector.extract_strided_slice %90 {offsets = [16, 0], sizes = [16, 32], strides = [1, 1]} : vector<32x32xf32> to vector<16x32xf32>
    %117 = arith.truncf %116 : vector<16x32xf32> to vector<16x32xbf16>
    %cst_40 = arith.constant dense<0.000000e+00> : vector<16x16xf32>
    %118 = tpu.matmul %113, %115, %cst_40 {dimension_numbers = #tpu.dot_dimension_numbers<[1], [1], [0], [0], [0, 0, 1, 0], [], []>} : vector<16x32xbf16>, vector<16x32xbf16>, vector<16x16xf32> -> vector<16x16xf32>
    %cst_41 = arith.constant 0.176776692 : f32
    %119 = vector.broadcast %cst_41 : f32 to vector<16x16xf32>
    %120 = arith.mulf %118, %119 : vector<16x16xf32>
    %cst_42 = arith.constant dense<0xFF800000> : vector<16xf32>
    %121 = vector.multi_reduction <maximumf>, %120, %cst_42 [1] : vector<16x16xf32> to vector<16xf32>
    %122 = vector.shape_cast %121 : vector<16xf32> to vector<16x1xf32>
    %123 = vector.broadcast %122 : vector<16x1xf32> to vector<16x16xf32>
    %124 = arith.subf %120, %123 : vector<16x16xf32>
    %125 = math.exp %124 : vector<16x16xf32>
    %cst_43 = arith.constant dense<0.000000e+00> : vector<16xf32>
    %126 = vector.multi_reduction <add>, %125, %cst_43 [1] : vector<16x16xf32> to vector<16xf32>
    %127 = vector.shape_cast %126 : vector<16xf32> to vector<16x1xf32>
    %128 = tpu.reciprocal %127 : vector<16x1xf32> -> vector<16x1xf32>
    %129 = vector.broadcast %128 : vector<16x1xf32> to vector<16x16xf32>
    %130 = arith.mulf %125, %129 : vector<16x16xf32>
    %131 = arith.truncf %130 : vector<16x16xf32> to vector<16x16xbf16>
    %cst_44 = arith.constant dense<0.000000e+00> : vector<16x32xf32>
    %132 = tpu.matmul %131, %117, %cst_44 {dimension_numbers = #tpu.dot_dimension_numbers<[1], [0], [0], [1], [0, 0, 1, 1], [], []>} : vector<16x16xbf16>, vector<16x32xbf16>, vector<16x32xf32> -> vector<16x32xf32>
    %133 = tpu.concatenate %111, %132 in 0 : vector<16x32xf32>, vector<16x32xf32> -> vector<32x32xf32>
    %134 = arith.truncf %133 : vector<32x32xf32> to vector<32x32xbf16>
    %c0_45 = arith.constant 0 : index
    %c1 = arith.constant 1 : index
    %c0_46 = arith.constant 0 : index
    %c0_47 = arith.constant 0 : index
    %135 = vector.load %arg10[%c0_45, %c1, %c0_46, %c0_47] : memref<1x4x32x128xbf16, #tpu.memory_space<vmem>>, vector<1x1x32x128xbf16>
    %136 = vector.shape_cast %135 : vector<1x1x32x128xbf16> to vector<32x128xbf16>
    %cst_48 = arith.constant dense<0.000000e+00> : vector<32x128xf32>
    %137 = tpu.matmul %134, %136, %cst_48 {dimension_numbers = #tpu.dot_dimension_numbers<[1], [0], [0], [1], [0, 0, 1, 1], [], []>} : vector<32x32xbf16>, vector<32x128xbf16>, vector<32x128xf32> -> vector<32x128xf32>
    %138 = arith.addf %87, %137 : vector<32x128xf32>
    %139 = vector.extract_strided_slice %35 {offsets = [0, 64], sizes = [32, 32], strides = [1, 1]} : vector<32x384xf32> to vector<32x32xf32>
    %140 = vector.extract_strided_slice %35 {offsets = [0, 192], sizes = [32, 32], strides = [1, 1]} : vector<32x384xf32> to vector<32x32xf32>
    %141 = vector.extract_strided_slice %35 {offsets = [0, 320], sizes = [32, 32], strides = [1, 1]} : vector<32x384xf32> to vector<32x32xf32>
    %142 = vector.extract_strided_slice %139 {offsets = [0, 0], sizes = [16, 32], strides = [1, 1]} : vector<32x32xf32> to vector<16x32xf32>
    %143 = arith.truncf %142 : vector<16x32xf32> to vector<16x32xbf16>
    %144 = vector.extract_strided_slice %140 {offsets = [0, 0], sizes = [16, 32], strides = [1, 1]} : vector<32x32xf32> to vector<16x32xf32>
    %145 = arith.truncf %144 : vector<16x32xf32> to vector<16x32xbf16>
    %146 = vector.extract_strided_slice %141 {offsets = [0, 0], sizes = [16, 32], strides = [1, 1]} : vector<32x32xf32> to vector<16x32xf32>
    %147 = arith.truncf %146 : vector<16x32xf32> to vector<16x32xbf16>
    %cst_49 = arith.constant dense<0.000000e+00> : vector<16x16xf32>
    %148 = tpu.matmul %143, %145, %cst_49 {dimension_numbers = #tpu.dot_dimension_numbers<[1], [1], [0], [0], [0, 0, 1, 0], [], []>} : vector<16x32xbf16>, vector<16x32xbf16>, vector<16x16xf32> -> vector<16x16xf32>
    %cst_50 = arith.constant 0.176776692 : f32
    %149 = vector.broadcast %cst_50 : f32 to vector<16x16xf32>
    %150 = arith.mulf %148, %149 : vector<16x16xf32>
    %cst_51 = arith.constant dense<0xFF800000> : vector<16xf32>
    %151 = vector.multi_reduction <maximumf>, %150, %cst_51 [1] : vector<16x16xf32> to vector<16xf32>
    %152 = vector.shape_cast %151 : vector<16xf32> to vector<16x1xf32>
    %153 = vector.broadcast %152 : vector<16x1xf32> to vector<16x16xf32>
    %154 = arith.subf %150, %153 : vector<16x16xf32>
    %155 = math.exp %154 : vector<16x16xf32>
    %cst_52 = arith.constant dense<0.000000e+00> : vector<16xf32>
    %156 = vector.multi_reduction <add>, %155, %cst_52 [1] : vector<16x16xf32> to vector<16xf32>
    %157 = vector.shape_cast %156 : vector<16xf32> to vector<16x1xf32>
    %158 = tpu.reciprocal %157 : vector<16x1xf32> -> vector<16x1xf32>
    %159 = vector.broadcast %158 : vector<16x1xf32> to vector<16x16xf32>
    %160 = arith.mulf %155, %159 : vector<16x16xf32>
    %161 = arith.truncf %160 : vector<16x16xf32> to vector<16x16xbf16>
    %cst_53 = arith.constant dense<0.000000e+00> : vector<16x32xf32>
    %162 = tpu.matmul %161, %147, %cst_53 {dimension_numbers = #tpu.dot_dimension_numbers<[1], [0], [0], [1], [0, 0, 1, 1], [], []>} : vector<16x16xbf16>, vector<16x32xbf16>, vector<16x32xf32> -> vector<16x32xf32>
    %163 = vector.extract_strided_slice %139 {offsets = [16, 0], sizes = [16, 32], strides = [1, 1]} : vector<32x32xf32> to vector<16x32xf32>
    %164 = arith.truncf %163 : vector<16x32xf32> to vector<16x32xbf16>
    %165 = vector.extract_strided_slice %140 {offsets = [16, 0], sizes = [16, 32], strides = [1, 1]} : vector<32x32xf32> to vector<16x32xf32>
    %166 = arith.truncf %165 : vector<16x32xf32> to vector<16x32xbf16>
    %167 = vector.extract_strided_slice %141 {offsets = [16, 0], sizes = [16, 32], strides = [1, 1]} : vector<32x32xf32> to vector<16x32xf32>
    %168 = arith.truncf %167 : vector<16x32xf32> to vector<16x32xbf16>
    %cst_54 = arith.constant dense<0.000000e+00> : vector<16x16xf32>
    %169 = tpu.matmul %164, %166, %cst_54 {dimension_numbers = #tpu.dot_dimension_numbers<[1], [1], [0], [0], [0, 0, 1, 0], [], []>} : vector<16x32xbf16>, vector<16x32xbf16>, vector<16x16xf32> -> vector<16x16xf32>
    %cst_55 = arith.constant 0.176776692 : f32
    %170 = vector.broadcast %cst_55 : f32 to vector<16x16xf32>
    %171 = arith.mulf %169, %170 : vector<16x16xf32>
    %cst_56 = arith.constant dense<0xFF800000> : vector<16xf32>
    %172 = vector.multi_reduction <maximumf>, %171, %cst_56 [1] : vector<16x16xf32> to vector<16xf32>
    %173 = vector.shape_cast %172 : vector<16xf32> to vector<16x1xf32>
    %174 = vector.broadcast %173 : vector<16x1xf32> to vector<16x16xf32>
    %175 = arith.subf %171, %174 : vector<16x16xf32>
    %176 = math.exp %175 : vector<16x16xf32>
    %cst_57 = arith.constant dense<0.000000e+00> : vector<16xf32>
    %177 = vector.multi_reduction <add>, %176, %cst_57 [1] : vector<16x16xf32> to vector<16xf32>
    %178 = vector.shape_cast %177 : vector<16xf32> to vector<16x1xf32>
    %179 = tpu.reciprocal %178 : vector<16x1xf32> -> vector<16x1xf32>
    %180 = vector.broadcast %179 : vector<16x1xf32> to vector<16x16xf32>
    %181 = arith.mulf %176, %180 : vector<16x16xf32>
    %182 = arith.truncf %181 : vector<16x16xf32> to vector<16x16xbf16>
    %cst_58 = arith.constant dense<0.000000e+00> : vector<16x32xf32>
    %183 = tpu.matmul %182, %168, %cst_58 {dimension_numbers = #tpu.dot_dimension_numbers<[1], [0], [0], [1], [0, 0, 1, 1], [], []>} : vector<16x16xbf16>, vector<16x32xbf16>, vector<16x32xf32> -> vector<16x32xf32>
    %184 = tpu.concatenate %162, %183 in 0 : vector<16x32xf32>, vector<16x32xf32> -> vector<32x32xf32>
    %185 = arith.truncf %184 : vector<32x32xf32> to vector<32x32xbf16>
    %c0_59 = arith.constant 0 : index
    %c2 = arith.constant 2 : index
    %c0_60 = arith.constant 0 : index
    %c0_61 = arith.constant 0 : index
    %186 = vector.load %arg10[%c0_59, %c2, %c0_60, %c0_61] : memref<1x4x32x128xbf16, #tpu.memory_space<vmem>>, vector<1x1x32x128xbf16>
    %187 = vector.shape_cast %186 : vector<1x1x32x128xbf16> to vector<32x128xbf16>
    %cst_62 = arith.constant dense<0.000000e+00> : vector<32x128xf32>
    %188 = tpu.matmul %185, %187, %cst_62 {dimension_numbers = #tpu.dot_dimension_numbers<[1], [0], [0], [1], [0, 0, 1, 1], [], []>} : vector<32x32xbf16>, vector<32x128xbf16>, vector<32x128xf32> -> vector<32x128xf32>
    %189 = arith.addf %138, %188 : vector<32x128xf32>
    %190 = vector.extract_strided_slice %35 {offsets = [0, 96], sizes = [32, 32], strides = [1, 1]} : vector<32x384xf32> to vector<32x32xf32>
    %191 = vector.extract_strided_slice %35 {offsets = [0, 224], sizes = [32, 32], strides = [1, 1]} : vector<32x384xf32> to vector<32x32xf32>
    %192 = vector.extract_strided_slice %35 {offsets = [0, 352], sizes = [32, 32], strides = [1, 1]} : vector<32x384xf32> to vector<32x32xf32>
    %193 = vector.extract_strided_slice %190 {offsets = [0, 0], sizes = [16, 32], strides = [1, 1]} : vector<32x32xf32> to vector<16x32xf32>
    %194 = arith.truncf %193 : vector<16x32xf32> to vector<16x32xbf16>
    %195 = vector.extract_strided_slice %191 {offsets = [0, 0], sizes = [16, 32], strides = [1, 1]} : vector<32x32xf32> to vector<16x32xf32>
    %196 = arith.truncf %195 : vector<16x32xf32> to vector<16x32xbf16>
    %197 = vector.extract_strided_slice %192 {offsets = [0, 0], sizes = [16, 32], strides = [1, 1]} : vector<32x32xf32> to vector<16x32xf32>
    %198 = arith.truncf %197 : vector<16x32xf32> to vector<16x32xbf16>
    %cst_63 = arith.constant dense<0.000000e+00> : vector<16x16xf32>
    %199 = tpu.matmul %194, %196, %cst_63 {dimension_numbers = #tpu.dot_dimension_numbers<[1], [1], [0], [0], [0, 0, 1, 0], [], []>} : vector<16x32xbf16>, vector<16x32xbf16>, vector<16x16xf32> -> vector<16x16xf32>
    %cst_64 = arith.constant 0.176776692 : f32
    %200 = vector.broadcast %cst_64 : f32 to vector<16x16xf32>
    %201 = arith.mulf %199, %200 : vector<16x16xf32>
    %cst_65 = arith.constant dense<0xFF800000> : vector<16xf32>
    %202 = vector.multi_reduction <maximumf>, %201, %cst_65 [1] : vector<16x16xf32> to vector<16xf32>
    %203 = vector.shape_cast %202 : vector<16xf32> to vector<16x1xf32>
    %204 = vector.broadcast %203 : vector<16x1xf32> to vector<16x16xf32>
    %205 = arith.subf %201, %204 : vector<16x16xf32>
    %206 = math.exp %205 : vector<16x16xf32>
    %cst_66 = arith.constant dense<0.000000e+00> : vector<16xf32>
    %207 = vector.multi_reduction <add>, %206, %cst_66 [1] : vector<16x16xf32> to vector<16xf32>
    %208 = vector.shape_cast %207 : vector<16xf32> to vector<16x1xf32>
    %209 = tpu.reciprocal %208 : vector<16x1xf32> -> vector<16x1xf32>
    %210 = vector.broadcast %209 : vector<16x1xf32> to vector<16x16xf32>
    %211 = arith.mulf %206, %210 : vector<16x16xf32>
    %212 = arith.truncf %211 : vector<16x16xf32> to vector<16x16xbf16>
    %cst_67 = arith.constant dense<0.000000e+00> : vector<16x32xf32>
    %213 = tpu.matmul %212, %198, %cst_67 {dimension_numbers = #tpu.dot_dimension_numbers<[1], [0], [0], [1], [0, 0, 1, 1], [], []>} : vector<16x16xbf16>, vector<16x32xbf16>, vector<16x32xf32> -> vector<16x32xf32>
    %214 = vector.extract_strided_slice %190 {offsets = [16, 0], sizes = [16, 32], strides = [1, 1]} : vector<32x32xf32> to vector<16x32xf32>
    %215 = arith.truncf %214 : vector<16x32xf32> to vector<16x32xbf16>
    %216 = vector.extract_strided_slice %191 {offsets = [16, 0], sizes = [16, 32], strides = [1, 1]} : vector<32x32xf32> to vector<16x32xf32>
    %217 = arith.truncf %216 : vector<16x32xf32> to vector<16x32xbf16>
    %218 = vector.extract_strided_slice %192 {offsets = [16, 0], sizes = [16, 32], strides = [1, 1]} : vector<32x32xf32> to vector<16x32xf32>
    %219 = arith.truncf %218 : vector<16x32xf32> to vector<16x32xbf16>
    %cst_68 = arith.constant dense<0.000000e+00> : vector<16x16xf32>
    %220 = tpu.matmul %215, %217, %cst_68 {dimension_numbers = #tpu.dot_dimension_numbers<[1], [1], [0], [0], [0, 0, 1, 0], [], []>} : vector<16x32xbf16>, vector<16x32xbf16>, vector<16x16xf32> -> vector<16x16xf32>
    %cst_69 = arith.constant 0.176776692 : f32
    %221 = vector.broadcast %cst_69 : f32 to vector<16x16xf32>
    %222 = arith.mulf %220, %221 : vector<16x16xf32>
    %cst_70 = arith.constant dense<0xFF800000> : vector<16xf32>
    %223 = vector.multi_reduction <maximumf>, %222, %cst_70 [1] : vector<16x16xf32> to vector<16xf32>
    %224 = vector.shape_cast %223 : vector<16xf32> to vector<16x1xf32>
    %225 = vector.broadcast %224 : vector<16x1xf32> to vector<16x16xf32>
    %226 = arith.subf %222, %225 : vector<16x16xf32>
    %227 = math.exp %226 : vector<16x16xf32>
    %cst_71 = arith.constant dense<0.000000e+00> : vector<16xf32>
    %228 = vector.multi_reduction <add>, %227, %cst_71 [1] : vector<16x16xf32> to vector<16xf32>
    %229 = vector.shape_cast %228 : vector<16xf32> to vector<16x1xf32>
    %230 = tpu.reciprocal %229 : vector<16x1xf32> -> vector<16x1xf32>
    %231 = vector.broadcast %230 : vector<16x1xf32> to vector<16x16xf32>
    %232 = arith.mulf %227, %231 : vector<16x16xf32>
    %233 = arith.truncf %232 : vector<16x16xf32> to vector<16x16xbf16>
    %cst_72 = arith.constant dense<0.000000e+00> : vector<16x32xf32>
    %234 = tpu.matmul %233, %219, %cst_72 {dimension_numbers = #tpu.dot_dimension_numbers<[1], [0], [0], [1], [0, 0, 1, 1], [], []>} : vector<16x16xbf16>, vector<16x32xbf16>, vector<16x32xf32> -> vector<16x32xf32>
    %235 = tpu.concatenate %213, %234 in 0 : vector<16x32xf32>, vector<16x32xf32> -> vector<32x32xf32>
    %236 = arith.truncf %235 : vector<32x32xf32> to vector<32x32xbf16>
    %c0_73 = arith.constant 0 : index
    %c3 = arith.constant 3 : index
    %c0_74 = arith.constant 0 : index
    %c0_75 = arith.constant 0 : index
    %237 = vector.load %arg10[%c0_73, %c3, %c0_74, %c0_75] : memref<1x4x32x128xbf16, #tpu.memory_space<vmem>>, vector<1x1x32x128xbf16>
    %238 = vector.shape_cast %237 : vector<1x1x32x128xbf16> to vector<32x128xbf16>
    %cst_76 = arith.constant dense<0.000000e+00> : vector<32x128xf32>
    %239 = tpu.matmul %236, %238, %cst_76 {dimension_numbers = #tpu.dot_dimension_numbers<[1], [0], [0], [1], [0, 0, 1, 1], [], []>} : vector<32x32xbf16>, vector<32x128xbf16>, vector<32x128xf32> -> vector<32x128xf32>
    %240 = arith.addf %189, %239 : vector<32x128xf32>
    %241 = arith.addf %3, %240 : vector<32x128xf32>
    %c0_77 = arith.constant 0 : index
    %c0_78 = arith.constant 0 : index
    %c0_79 = arith.constant 0 : index
    %242 = vector.load %arg11[%c0_77, %c0_78, %c0_79] : memref<1x1x128xf32, #tpu.memory_space<vmem>>, vector<1x1x128xf32>
    %243 = vector.shape_cast %242 : vector<1x1x128xf32> to vector<1x128xf32>
    %244 = vector.broadcast %243 : vector<1x128xf32> to vector<32x128xf32>
    %245 = arith.addf %241, %244 : vector<32x128xf32>
    %c0_80 = arith.constant 0 : index
    %c0_81 = arith.constant 0 : index
    %c0_82 = arith.constant 0 : index
    %246 = vector.load %arg12[%c0_80, %c0_81, %c0_82] : memref<1x1x128xf32, #tpu.memory_space<vmem>>, vector<1x1x128xf32>
    %247 = vector.shape_cast %246 : vector<1x1x128xf32> to vector<1x128xf32>
    %c0_83 = arith.constant 0 : index
    %c0_84 = arith.constant 0 : index
    %c0_85 = arith.constant 0 : index
    %248 = vector.load %arg13[%c0_83, %c0_84, %c0_85] : memref<1x1x128xf32, #tpu.memory_space<vmem>>, vector<1x1x128xf32>
    %249 = vector.shape_cast %248 : vector<1x1x128xf32> to vector<1x128xf32>
    %cst_86 = arith.constant dense<0.000000e+00> : vector<32xf32>
    %250 = vector.multi_reduction <add>, %245, %cst_86 [1] : vector<32x128xf32> to vector<32xf32>
    %251 = vector.shape_cast %250 : vector<32xf32> to vector<32x1xf32>
    %cst_87 = arith.constant 1.280000e+02 : f32
    %252 = vector.broadcast %cst_87 : f32 to vector<32x1xf32>
    %253 = arith.divf %251, %252 : vector<32x1xf32>
    %254 = vector.broadcast %253 : vector<32x1xf32> to vector<32x128xf32>
    %255 = arith.subf %245, %254 : vector<32x128xf32>
    %256 = arith.mulf %255, %255 : vector<32x128xf32>
    %cst_88 = arith.constant dense<0.000000e+00> : vector<32xf32>
    %257 = vector.multi_reduction <add>, %256, %cst_88 [1] : vector<32x128xf32> to vector<32xf32>
    %258 = vector.shape_cast %257 : vector<32xf32> to vector<32x1xf32>
    %cst_89 = arith.constant 1.280000e+02 : f32
    %259 = vector.broadcast %cst_89 : f32 to vector<32x1xf32>
    %260 = arith.divf %258, %259 : vector<32x1xf32>
    %cst_90 = arith.constant 9.99999974E-6 : f32
    %261 = vector.broadcast %cst_90 : f32 to vector<32x1xf32>
    %262 = arith.addf %260, %261 : vector<32x1xf32>
    %263 = math.rsqrt %262 : vector<32x1xf32>
    %264 = vector.broadcast %263 : vector<32x1xf32> to vector<32x128xf32>
    %265 = arith.mulf %255, %264 : vector<32x128xf32>
    %266 = vector.broadcast %247 : vector<1x128xf32> to vector<32x128xf32>
    %267 = arith.mulf %265, %266 : vector<32x128xf32>
    %268 = vector.broadcast %249 : vector<1x128xf32> to vector<32x128xf32>
    %269 = arith.addf %267, %268 : vector<32x128xf32>
    %270 = arith.truncf %269 : vector<32x128xf32> to vector<32x128xbf16>
    %c0_91 = arith.constant 0 : index
    %c0_92 = arith.constant 0 : index
    %c0_93 = arith.constant 0 : index
    %271 = vector.load %arg14[%c0_91, %c0_92, %c0_93] : memref<1x128x512xbf16, #tpu.memory_space<vmem>>, vector<1x128x512xbf16>
    %272 = vector.shape_cast %271 : vector<1x128x512xbf16> to vector<128x512xbf16>
    %cst_94 = arith.constant dense<0.000000e+00> : vector<32x512xf32>
    %273 = tpu.matmul %270, %272, %cst_94 {dimension_numbers = #tpu.dot_dimension_numbers<[1], [0], [0], [1], [0, 0, 1, 1], [], []>} : vector<32x128xbf16>, vector<128x512xbf16>, vector<32x512xf32> -> vector<32x512xf32>
    %c0_95 = arith.constant 0 : index
    %c0_96 = arith.constant 0 : index
    %c0_97 = arith.constant 0 : index
    %274 = vector.load %arg15[%c0_95, %c0_96, %c0_97] : memref<1x1x512xf32, #tpu.memory_space<vmem>>, vector<1x1x512xf32>
    %275 = vector.shape_cast %274 : vector<1x1x512xf32> to vector<1x512xf32>
    %276 = vector.broadcast %275 : vector<1x512xf32> to vector<32x512xf32>
    %277 = arith.addf %273, %276 : vector<32x512xf32>
    %cst_98 = arith.constant 5.000000e-01 : f32
    %278 = vector.broadcast %cst_98 : f32 to vector<32x512xf32>
    %279 = arith.mulf %278, %277 : vector<32x512xf32>
    %cst_99 = arith.constant 0.707106769 : f32
    %280 = vector.broadcast %cst_99 : f32 to vector<32x512xf32>
    %281 = arith.mulf %277, %280 : vector<32x512xf32>
    %282 = math.erf %281 : vector<32x512xf32>
    %cst_100 = arith.constant 1.000000e+00 : f32
    %283 = vector.broadcast %cst_100 : f32 to vector<32x512xf32>
    %284 = arith.addf %283, %282 : vector<32x512xf32>
    %285 = arith.mulf %279, %284 : vector<32x512xf32>
    %286 = arith.truncf %285 : vector<32x512xf32> to vector<32x512xbf16>
    %c0_101 = arith.constant 0 : index
    %c0_102 = arith.constant 0 : index
    %c0_103 = arith.constant 0 : index
    %287 = vector.load %arg16[%c0_101, %c0_102, %c0_103] : memref<1x512x128xbf16, #tpu.memory_space<vmem>>, vector<1x512x128xbf16>
    %288 = vector.shape_cast %287 : vector<1x512x128xbf16> to vector<512x128xbf16>
    %cst_104 = arith.constant dense<0.000000e+00> : vector<32x128xf32>
    %289 = tpu.matmul %286, %288, %cst_104 {dimension_numbers = #tpu.dot_dimension_numbers<[1], [0], [0], [1], [0, 0, 1, 1], [], []>} : vector<32x512xbf16>, vector<512x128xbf16>, vector<32x128xf32> -> vector<32x128xf32>
    %c0_105 = arith.constant 0 : index
    %c0_106 = arith.constant 0 : index
    %c0_107 = arith.constant 0 : index
    %290 = vector.load %arg17[%c0_105, %c0_106, %c0_107] : memref<1x1x128xf32, #tpu.memory_space<vmem>>, vector<1x1x128xf32>
    %291 = vector.shape_cast %290 : vector<1x1x128xf32> to vector<1x128xf32>
    %292 = vector.broadcast %291 : vector<1x128xf32> to vector<32x128xf32>
    %293 = arith.addf %289, %292 : vector<32x128xf32>
    %294 = arith.addf %245, %293 : vector<32x128xf32>
    %c0_108 = arith.constant 0 : index
    %c0_109 = arith.constant 0 : index
    %295 = vector.load %arg21[%c0_108, %c0_109] : memref<32x128xf32, #tpu.memory_space<vmem>>, vector<32x128xf32>
    tpu.vector_store %arg21[%c0_108, %c0_109], %294 {strides = array<i32>} : memref<32x128xf32, #tpu.memory_space<vmem>>, vector<32x128xf32>,
    %c1_i32 = arith.constant 1 : i32
    %296 = arith.cmpi eq, %arg1, %c1_i32 : i32
    %297 = arith.extui %296 : i1 to i32
    %c0_i32_110 = arith.constant 0 : i32
    %298 = arith.cmpi ne, %297, %c0_i32_110 : i32
    scf.if %298 {
      %c0_111 = arith.constant 0 : index
      %c0_112 = arith.constant 0 : index
      %299 = vector.load %arg18[%c0_111, %c0_112] : memref<1x128xf32, #tpu.memory_space<vmem>>, vector<1x128xf32>
      %c0_113 = arith.constant 0 : index
      %c0_114 = arith.constant 0 : index
      %300 = vector.load %arg19[%c0_113, %c0_114] : memref<1x128xf32, #tpu.memory_space<vmem>>, vector<1x128xf32>
      %cst_115 = arith.constant dense<0.000000e+00> : vector<32xf32>
      %301 = vector.multi_reduction <add>, %294, %cst_115 [1] : vector<32x128xf32> to vector<32xf32>
      %302 = vector.shape_cast %301 : vector<32xf32> to vector<32x1xf32>
      %cst_116 = arith.constant 1.280000e+02 : f32
      %303 = vector.broadcast %cst_116 : f32 to vector<32x1xf32>
      %304 = arith.divf %302, %303 : vector<32x1xf32>
      %305 = vector.broadcast %304 : vector<32x1xf32> to vector<32x128xf32>
      %306 = arith.subf %294, %305 : vector<32x128xf32>
      %307 = arith.mulf %306, %306 : vector<32x128xf32>
      %cst_117 = arith.constant dense<0.000000e+00> : vector<32xf32>
      %308 = vector.multi_reduction <add>, %307, %cst_117 [1] : vector<32x128xf32> to vector<32xf32>
      %309 = vector.shape_cast %308 : vector<32xf32> to vector<32x1xf32>
      %cst_118 = arith.constant 1.280000e+02 : f32
      %310 = vector.broadcast %cst_118 : f32 to vector<32x1xf32>
      %311 = arith.divf %309, %310 : vector<32x1xf32>
      %cst_119 = arith.constant 9.99999997E-7 : f32
      %312 = vector.broadcast %cst_119 : f32 to vector<32x1xf32>
      %313 = arith.addf %311, %312 : vector<32x1xf32>
      %314 = math.rsqrt %313 : vector<32x1xf32>
      %315 = vector.broadcast %314 : vector<32x1xf32> to vector<32x128xf32>
      %316 = arith.mulf %306, %315 : vector<32x128xf32>
      %317 = vector.broadcast %299 : vector<1x128xf32> to vector<32x128xf32>
      %318 = arith.mulf %316, %317 : vector<32x128xf32>
      %319 = vector.broadcast %300 : vector<1x128xf32> to vector<32x128xf32>
      %320 = arith.addf %318, %319 : vector<32x128xf32>
      %c0_120 = arith.constant 0 : index
      %c0_121 = arith.constant 0 : index
      %321 = vector.load %arg20[%c0_120, %c0_121] : memref<32x128xf32, #tpu.memory_space<vmem>>, vector<32x128xf32>
      tpu.vector_store %arg20[%c0_120, %c0_121], %320 {strides = array<i32>} : memref<32x128xf32, #tpu.memory_space<vmem>>, vector<32x128xf32>,
    } else {
    }
    return
  }
  func.func @transform_0(%arg0: i32, %arg1: i32) -> (i32, i32) {
    %c0_i32 = arith.constant 0 : i32
    %c0_i32_0 = arith.constant 0 : i32
    return %arg0, %c0_i32 : i32, i32
  }
  func.func @transform_1(%arg0: i32, %arg1: i32) -> (i32, i32) {
    %c0_i32 = arith.constant 0 : i32
    %c0_i32_0 = arith.constant 0 : i32
    %c0_i32_1 = arith.constant 0 : i32
    return %c0_i32, %c0_i32_0 : i32, i32
  }
  func.func @transform_2(%arg0: i32, %arg1: i32) -> (i32, i32) {
    %c0_i32 = arith.constant 0 : i32
    %c0_i32_0 = arith.constant 0 : i32
    %c0_i32_1 = arith.constant 0 : i32
    return %c0_i32, %c0_i32_0 : i32, i32
  }
  func.func @transform_3(%arg0: i32, %arg1: i32) -> (i32, i32) {
    %c0_i32 = arith.constant 0 : i32
    %c0_i32_0 = arith.constant 0 : i32
    %c0_i32_1 = arith.constant 0 : i32
    return %c0_i32, %c0_i32_0 : i32, i32
  }
  func.func @transform_4(%arg0: i32, %arg1: i32) -> (i32, i32, i32) {
    %c0_i32 = arith.constant 0 : i32
    %c0_i32_0 = arith.constant 0 : i32
    %c0_i32_1 = arith.constant 0 : i32
    return %arg1, %c0_i32, %c0_i32_0 : i32, i32, i32
  }
  func.func @transform_5(%arg0: i32, %arg1: i32) -> (i32, i32, i32) {
    %c0_i32 = arith.constant 0 : i32
    %c0_i32_0 = arith.constant 0 : i32
    %c0_i32_1 = arith.constant 0 : i32
    return %arg1, %c0_i32, %c0_i32_0 : i32, i32, i32
  }
  func.func @transform_6(%arg0: i32, %arg1: i32) -> (i32, i32, i32) {
    %c0_i32 = arith.constant 0 : i32
    %c0_i32_0 = arith.constant 0 : i32
    %c0_i32_1 = arith.constant 0 : i32
    return %arg1, %c0_i32, %c0_i32_0 : i32, i32, i32
  }
  func.func @transform_7(%arg0: i32, %arg1: i32) -> (i32, i32, i32) {
    %c0_i32 = arith.constant 0 : i32
    %c0_i32_0 = arith.constant 0 : i32
    %c0_i32_1 = arith.constant 0 : i32
    return %arg1, %c0_i32, %c0_i32_0 : i32, i32, i32
  }
  func.func @transform_8(%arg0: i32, %arg1: i32) -> (i32, i32, i32, i32) {
    %c0_i32 = arith.constant 0 : i32
    %c0_i32_0 = arith.constant 0 : i32
    %c0_i32_1 = arith.constant 0 : i32
    %c0_i32_2 = arith.constant 0 : i32
    return %arg1, %c0_i32, %c0_i32_0, %c0_i32_1 : i32, i32, i32, i32
  }
  func.func @transform_9(%arg0: i32, %arg1: i32) -> (i32, i32, i32) {
    %c0_i32 = arith.constant 0 : i32
    %c0_i32_0 = arith.constant 0 : i32
    %c0_i32_1 = arith.constant 0 : i32
    return %arg1, %c0_i32, %c0_i32_0 : i32, i32, i32
  }
  func.func @transform_10(%arg0: i32, %arg1: i32) -> (i32, i32, i32) {
    %c0_i32 = arith.constant 0 : i32
    %c0_i32_0 = arith.constant 0 : i32
    %c0_i32_1 = arith.constant 0 : i32
    return %arg1, %c0_i32, %c0_i32_0 : i32, i32, i32
  }
  func.func @transform_11(%arg0: i32, %arg1: i32) -> (i32, i32, i32) {
    %c0_i32 = arith.constant 0 : i32
    %c0_i32_0 = arith.constant 0 : i32
    %c0_i32_1 = arith.constant 0 : i32
    return %arg1, %c0_i32, %c0_i32_0 : i32, i32, i32
  }
  func.func @transform_12(%arg0: i32, %arg1: i32) -> (i32, i32, i32) {
    %c0_i32 = arith.constant 0 : i32
    %c0_i32_0 = arith.constant 0 : i32
    %c0_i32_1 = arith.constant 0 : i32
    return %arg1, %c0_i32, %c0_i32_0 : i32, i32, i32
  }
  func.func @transform_13(%arg0: i32, %arg1: i32) -> (i32, i32, i32) {
    %c0_i32 = arith.constant 0 : i32
    %c0_i32_0 = arith.constant 0 : i32
    %c0_i32_1 = arith.constant 0 : i32
    return %arg1, %c0_i32, %c0_i32_0 : i32, i32, i32
  }
  func.func @transform_14(%arg0: i32, %arg1: i32) -> (i32, i32, i32) {
    %c0_i32 = arith.constant 0 : i32
    %c0_i32_0 = arith.constant 0 : i32
    %c0_i32_1 = arith.constant 0 : i32
    return %arg1, %c0_i32, %c0_i32_0 : i32, i32, i32
  }
  func.func @transform_15(%arg0: i32, %arg1: i32) -> (i32, i32, i32) {
    %c0_i32 = arith.constant 0 : i32
    %c0_i32_0 = arith.constant 0 : i32
    %c0_i32_1 = arith.constant 0 : i32
    return %arg1, %c0_i32, %c0_i32_0 : i32, i32, i32
  }
  func.func @transform_16(%arg0: i32, %arg1: i32) -> (i32, i32) {
    %c0_i32 = arith.constant 0 : i32
    %c0_i32_0 = arith.constant 0 : i32
    %c0_i32_1 = arith.constant 0 : i32
    return %c0_i32, %c0_i32_0 : i32, i32
  }
  func.func @transform_17(%arg0: i32, %arg1: i32) -> (i32, i32) {
    %c0_i32 = arith.constant 0 : i32
    %c0_i32_0 = arith.constant 0 : i32
    %c0_i32_1 = arith.constant 0 : i32
    return %c0_i32, %c0_i32_0 : i32, i32
  }
  func.func @transform_18(%arg0: i32, %arg1: i32) -> (i32, i32) {
    %c0_i32 = arith.constant 0 : i32
    %c0_i32_0 = arith.constant 0 : i32
    return %arg0, %c0_i32 : i32, i32
  }
}

</mosaic_0001>

<bundles_post_ra>
// kernel: encoder_forward.1
= control target key start
LH: loop header
LB: loop body
LE: loop exit
PB: predicated region body
PF: predicated region fallthrough
CT: control target
= control target key end

     0   :  { %s6499_s0 = inlined_call_operand.vmem [shape: f32[64,128], index: 0, kind: input, shape index: {}]   ;;  %s6500_s1 = inlined_call_operand.vmem [shape: bf16[128,128], index: 1, kind: input, shape index: {}]   ;;  %s6501_s2 = inlined_call_operand.vmem [shape: f32[1,128], index: 2, kind: input, shape index: {}]   ;;  %s6502_s3 = inlined_call_operand.vmem [shape: f32[32,128], index: 3, kind: input, shape index: {}]   ;;  %s6503_s4 = inlined_call_operand.vmem [shape: f32[2,1,128], index: 4, kind: input, shape index: {}]   ;;  %s6504_s5 = inlined_call_operand.vmem [shape: f32[2,1,128], index: 5, kind: input, shape index: {}]   ;;  %s6505_s6 = inlined_call_operand.vmem [shape: bf16[2,128,384], index: 6, kind: input, shape index: {}]   ;;  %s6506_s7 = inlined_call_operand.vmem [shape: f32[2,1,384], index: 7, kind: input, shape index: {}]   ;;  %s6507_s8 = inlined_call_operand.vmem [shape: bf16[2,4,32,128], index: 8, kind: input, shape index: {}]   ;;  %s6508_s9 = inlined_call_operand.vmem [shape: f32[2,1,128], index: 9, kind: input, shape index: {}]   ;;  %s6509_s10 = inlined_call_operand.vmem [shape: f32[2,1,128], index: 10, kind: input, shape index: {}]   ;;  %s6510_s11 = inlined_call_operand.vmem [shape: f32[2,1,128], index: 11, kind: input, shape index: {}]   ;;  %s6511_s12 = inlined_call_operand.vmem [shape: bf16[2,128,512], index: 12, kind: input, shape index: {}]   ;;  %s6512_s13 = inlined_call_operand.vmem [shape: f32[2,1,512], index: 13, kind: input, shape index: {}]   ;;  %s6513_s14 = inlined_call_operand.vmem [shape: bf16[2,512,128], index: 14, kind: input, shape index: {}]   ;;  %s6514_s15 = inlined_call_operand.vmem [shape: f32[2,1,128], index: 15, kind: input, shape index: {}]   ;;  %s6515_s16 = inlined_call_operand.vmem [shape: f32[1,128], index: 16, kind: input, shape index: {}]   ;;  %s6516_s17 = inlined_call_operand.vmem [shape: f32[1,128], index: 17, kind: input, shape index: {}]   ;;  %s6517_s18 = inlined_call_operand.hbm [shape: f32[64,128], index: 18, kind: output, shape index: {}]  }
   0x1   :  { %6535 = sst [smem:[#allocation19_spill]] %s6499_s0 }
   0x2   :  { %6536 = sst [smem:[#allocation20_spill]] %s6500_s1 }
   0x3   :  { %6537 = sst [smem:[#allocation21_spill]] %s6501_s2 }
   0x4   :  { %6538 = sst [smem:[#allocation22_spill]] %s6502_s3 }
   0x5   :  { %6539 = sst [smem:[#allocation23_spill]] %s6504_s5 }
   0x6   :  { %6540 = sst [smem:[#allocation24_spill]] %s6505_s6 }
   0x7   :  { %6541 = sst [smem:[#allocation25_spill]] %s6506_s7 }
   0x8   :  { %6542 = sst [smem:[#allocation26_spill]] %s6507_s8 }
   0x9   :  { %6543 = sst [smem:[#allocation27_spill]] %s6515_s16 }
   0xa   :  { %6544 = sst [smem:[#allocation28_spill]] %s6516_s17 }
   0xb   :  { %6545 = sst [smem:[#allocation29_spill]] %s6517_s18 }
   0xc   :  { %23 = vsyncpa [#allocation4], 0 }
   0xd   :  { %25 = vsyncpa [#allocation4 + $0x1], 0  ;;  %s4955_s27 = smov 0   ;;  %s4957_s28 = smov 0  }
   0xe   :  { %s4959_s29 = smov 0   ;;  %s4961_s30 = smov 0  }
   0xf   :  { %s4963_s0 = smov 0   ;;  %s4965_s19 = smov 0  }
  0x10   :  { %s4967_s1 = smov 0   ;;  %s4969_s20 = smov 0  }
  0x11 LB: > { %6546 = sst [smem:[#allocation6_spill]] %s4824_s27  ;;  %s3937_s21 = sadd.s32 4294967295, %s4852_s20   ;;  %s4852_s20 = sphi %s4969_s20, %s31_s20   ;;  %s4848_s1 = sphi %s4967_s1, %s6631_s1   ;;  %s4844_s19 = sphi %s4965_s19, %s6630_s19   ;;  %s4840_s0 = sphi %s4963_s0, %s6629_s0   ;;  %s4836_s30 = sphi %s4961_s30, %s6628_s30   ;;  %s4832_s29 = sphi %s4959_s29, %s6627_s29   ;;  %s4828_s28 = sphi %s4957_s28, %s6626_s28   ;;  %s4824_s27 = sphi %s4955_s27, %s6625_s27  }
  0x12   : > { %6547 = sst [smem:[#allocation7_spill]] %s4828_s28  ;;  %s3938_s22 = sadd.s32 4294967294, %s4852_s20  }
  0x13   : > { %6548 = sst [smem:[#allocation8_spill]] %s4832_s29  ;;  %s40_s2 = sadd.s32 1, %s4844_s19 }
  0x14   : > { %6549 = sst [smem:[#allocation9_spill]] %s4836_s30  ;;  %p41_p0 = scmp.ge.s32.totalorder %s40_s2, 2 }
  0x15   : > { %6550 = sst [smem:[#allocation10_spill]] %s4840_s0  ;;  %s43_s23 = sadd.s32 1, %s4848_s1 }
  0x16   : > { %6551 = sst [smem:[#allocation11_spill]] %s4844_s19  ;;  %p503_p1 = scmp.ne.s32.totalorder %s4832_s29, %s4828_s28 }
  0x17   : > { %6552 = sst [smem:[#allocation12_spill]] %s4848_s1  ;;  %p504_p2 = scmp.eq.s32.totalorder %s3937_s21, 3 }
  0x18   : > { %6553 = sst [smem:[#allocation13_spill]] %s4852_s20  ;;  %s6633_s2 = smov (%p41_p0, %s40_s2), 0 }
  0x19   : > { %6554 = sst [smem:[#allocation14_spill]] %s6633_s2  ;;  %s6635_s23 = smov (!%p41_p0, %s43_s23), %s4848_s1 }
  0x1a   : > { %p5004_p3 = por %p504_p2, %p503_p1  ;;  %p509_p4 = scmp.ne.s32.totalorder %s4828_s28, %s4824_s27 }
  0x1b   : > { %p45_p5 = scmp.ge.s32.totalorder %s6635_s23, 2  ;;  %p510_p6 = scmp.eq.s32.totalorder %s3938_s22, 3 }
  0x1c   : > { %s6555_s24 = scalar_select %p5004_p3, 1, 0 }
  0x1d   : > { %p3941_p7 = scmp.ge.s32.totalorder %s4852_s20, 1  ;;  %p634_p8 = scmp.lt.s32.totalorder %s4852_s20, 5 }
  0x1e   : > { %6556 = sst [smem:[#allocation15_spill]] %s6555_s24  ;;  %s6637_s23 = smov (%p45_p5, %s6635_s23), 0 }
  0x1f   : > { %6557 = sst [smem:[#allocation16_spill]] %s6637_s23  ;;  %p5014_p9 = por %p510_p6, %p509_p4 }
  0x20   : > { %p635_p10 = pnand %p3941_p7, %p634_p8  ;;  %s490_s26 = ssub.s32 %s4848_s1, %s6637_s23 }
  0x21   : > { %s6558_s25 = scalar_select %p5014_p9, 1, 0 }
  0x22   : > { %s493_s21 = sadd.s32 1, %s4832_s29  ;;  %p491_p11 = scmp.eq.s32.totalorder %s490_s26, 0 }
  0x23   : > { %6559 = sst [smem:[#allocation17_spill]] %s6558_s25  ;;  %638 = sbr.rel (%p635_p10) target bundleno = 3390 (0xd3e), region = 92 }
  0x24   : > { %s5022_s2 = scalar_select %p491_p11, %s4832_s29, %s493_s21  }
  0x25   : > { %s6524_s22 = sand.u32 (!%p635_p10), 1, %s4828_s28   ;;  %s3943_s19 = sshll.u32 (!%p635_p10), %s4840_s0, 2 }
  0x26   : > { %6560 = sst [smem:[#allocation18_spill]] %s5022_s2  ;;  %s3942_s27 = sshll.u32 (!%p635_p10), %s6524_s22, 5 }
  0x27   : > { %p735_p12 = scmp.lt.s32.totalorder (!%p635_p10), %s3943_s19, 7  ;;  %p740_p13 = scmp.lt.s32.totalorder (!%p635_p10), %s4836_s30, 1 }
  0x28   : > { %s6561_s1 = sld [smem:[#allocation19_spill]] }
  0x29   : > { %s6639_s19 = smov (!%p735_p12, %s3943_s19), 7  ;;  %s6563_s6 = sld [smem:[#allocation24_spill]] }
  0x2a   : > { %s5030_s25 = scalar_select %p740_p13, %s4836_s30, 1 }
  0x2b   : > { %s3944_s26 = sshll.u32 %s6639_s19, 3  ;;  %s6564_s8 = sld [smem:[#allocation26_spill]] }
  0x2c   : > { %s4544_s0 = smul.u32 192, %s5030_s25  ;;  %s4428_s16 = sshll.u32 %s5030_s25, 6 }
  0x2d   : > { %s4545_s17 = smul.u32 3, %s5030_s25  ;;  %s6565_s7 = sld [smem:[#allocation25_spill]] }
  0x2e   : > { %s5035_s22 = scalar_lea.vmem %s6561_s1, %s3944_s26  ;;  %s4429_s23 = sshll.u32 %s5030_s25, 8 }
  0x2f   : > { %s5051_s19 = scalar_lea.vmem %s6563_s6, %s4544_s0  ;;  %s5080_s29 = scalar_lea.vmem %s6511_s12, %s4429_s23 }
  0x30   : > { %s5090_s5 = scalar_lea.vmem %s6513_s14, %s4429_s23  ;;  %s785_s0 = scalar_lea.vmem %s6514_s15, %s5030_s25 }
  0x31   : > { %s5056_s26 = scalar_lea.vmem %s6564_s8, %s4428_s16  ;;  %s3950_s16 = sshll.u32 %s5030_s25, 2 }
  0x32   : > { %s5085_s18 = scalar_lea.vmem %s6512_s13, %s3950_s16  ;;  %s5096_s6 = scalar_lea.vmem [#allocation3], %s3942_s27 }
  0x33   : > { %s5061_s21 = scalar_lea.vmem %s6565_s7, %s4545_s17  ;;  %s6566_s3 = sld [smem:[#allocation9_spill]] }
  0x39   : > { %p3953_p0 = scmp.ne.s32.totalorder %s6566_s3, 0 }
  0x3a   : > { %s6567_s7 = sld [smem:[#allocation20_spill]] (!%p3953_p0) }
  0x3b   : > { %791 = sbr.rel (%p3953_p0) target bundleno = 236 (0xec), region = 96  ;;  %s6568_s27 = sld [smem:[#allocation21_spill]] (!%p3953_p0) }
  0x3c   : > { %s6569_s24 = sld [smem:[#allocation22_spill]] (!%p3953_p0) }
  0x40   : > { %v4438_v0 = vld [vmem:[%s6567_s7 + $0x38] sm:$0xff]  ;;  %v4437_v1 = vld [vmem:[%s6567_s7 + $0x30] sm:$0xff]  ;;  %v4436_v2 = vld [vmem:[%s6567_s7 + $0x28] sm:$0xff] }
  0x41   : > { %866 = vmatpush.bf16.msra.mxu0 %v4438_v0  ;;  %4536 = vmatpush.bf16.msra.mxu1 %v4438_v0  ;;  %v4435_v3 = vld [vmem:[%s6567_s7 + $0x20] sm:$0xff]  ;;  %v4434_v4 = vld [vmem:[%s6567_s7 + $0x18] sm:$0xff]  ;;  %v4433_v5 = vld [vmem:[%s6567_s7 + $0x10] sm:$0xff] }
  0x42   : > { %v4432_v6 = vld [vmem:[%s6567_s7 + $0x8] sm:$0xff]  ;;  %v4431_v7 = vld [vmem:[%s6567_s7] sm:$0xff]  ;;  %v794_v10 = vld [vmem:[%s5035_s22 + $0x10] sm:$0xff] }
  0x43   : > { %v792_v8 = vld [vmem:[%s5035_s22] sm:$0xff]  ;;  %v793_v9 = vld [vmem:[%s5035_s22 + $0x8] sm:$0xff]  ;;  %v795_v11 = vld [vmem:[%s5035_s22 + $0x18] sm:$0xff] }
  0x44   : > { %v796_v12 = vpack.c.bf16 %v793_v9, %v792_v8  ;;  %v797_v13 = vpack.c.bf16 %v795_v11, %v794_v10  ;;  %v4623_v14 = vld [vmem:[%s6568_s27] ss:$0 sm:$0xff]  ;;  %v887_v18 = vld [vmem:[%s6569_s24 + $0x10] sm:$0xff]  ;;  %v886_v24 = vld [vmem:[%s6569_s24 + $0x8] sm:$0xff] }
  0x45   : > { %867 = vmatpush.bf16.msra.mxu0 %v4437_v1  ;;  %4537 = vmatpush.bf16.msra.mxu1 %v4437_v1  ;;  %v885_v16 = vld [vmem:[%s6569_s24] sm:$0xff]  ;;  %v888_v26 = vld [vmem:[%s6569_s24 + $0x18] sm:$0xff] }
  0x49   : > { %868 = vmatpush.bf16.msra.mxu0 %v4436_v2  ;;  %4538 = vmatpush.bf16.msra.mxu1 %v4436_v2 }
  0x4d   : > { %869 = vmatpush.bf16.msra.mxu0 %v4435_v3  ;;  %4539 = vmatpush.bf16.msra.mxu1 %v4435_v3 }
  0x51   : > { %870 = vmatpush.bf16.msra.mxu0 %v4434_v4  ;;  %4540 = vmatpush.bf16.msra.mxu1 %v4434_v4 }
  0x55   : > { %871 = vmatpush.bf16.msra.mxu0 %v4433_v5  ;;  %4541 = vmatpush.bf16.msra.mxu1 %v4433_v5 }
  0x59   : > { %872 = vmatpush.bf16.msra.mxu0 %v4432_v6  ;;  %4542 = vmatpush.bf16.msra.mxu1 %v4432_v6 }
  0x5d   : > { %873 = vmatpush.bf16.msra.mxu0 %v4431_v7  ;;  %4543 = vmatpush.bf16.msra.mxu1 %v4431_v7 }
  0x60   : > { %874 = vmatmul.bf16.vlgmr.msra.gmra.mxu0 %v796_v12  ;;  %879 = vmatmul.bf16.vlgmr.msra.gmra.mxu1 %v797_v13 }
  0xdd   : > { %v875_v15 = vpop.f32.mrf.mxu0  ;;  %v880_v17 = vpop.f32.mrf.mxu1 }
  0xde   : > { %v876_v19 = vadd.f32 %v4623_v14, %v875_v15  ;;  %v881_v20 = vadd.f32 %v4623_v14, %v880_v17 }
  0xe0   : > { %v889_v21 = vadd.f32 %v885_v16, %v876_v19  ;;  %v891_v22 = vadd.f32 %v887_v18, %v881_v20 }
  0xe2   : > { %893 = vst [vmem:[#allocation2 + $0x10] sm:$0xff] %v889_v21 }
  0xe3   : > { %895 = vst [vmem:[#allocation2 + $0x18] sm:$0xff] %v891_v22 }
  0xe5   : > { %v877_v23 = vpop.f32.mrf.mxu0  ;;  %v882_v25 = vpop.f32.mrf.mxu1 }
  0xe6   : > { %v878_v27 = vadd.f32 %v4623_v14, %v877_v23  ;;  %v883_v28 = vadd.f32 %v4623_v14, %v882_v25 }
  0xe8   : > { %v890_v29 = vadd.f32 %v886_v24, %v878_v27  ;;  %v892_v30 = vadd.f32 %v888_v26, %v883_v28 }
  0xea   : > { %894 = vst [vmem:[#allocation2] sm:$0xff] %v890_v29 }
  0xeb   : > { %896 = vst [vmem:[#allocation2 + $0x8] sm:$0xff] %v892_v30 }
  0xec PF: > { %v897_v31 = vld [vmem:[#allocation2 + $0x10] sm:$0xff]  ;;  %v4854_v33 = vmov 128.0   ;;  %v4072_v48 = vld [vmem:[%s5051_s19 + $0xa8] sm:$0xf]  ;;  %v4460_v50 = vld [vmem:[%s5051_s19 + $0xac] sm:$0xf]  ;;  %s6570_s28 = scalar_lea.vmem %s6503_s4, %s5030_s25  ;;  %s6581_s8 = scalar_lea.vmem %s6508_s9, %s5030_s25 }
  0xed   : > { %903 = vadd.xlane.f32.xlu0 %v897_v31  ;;  %4630 = vrcp.f32 %v4854_v33  ;;  %v4461_v49 = vld [vmem:[%s5051_s19 + $0xb0] sm:$0xf0]  ;;  %v4074_v52 = vld [vmem:[%s5051_s19 + $0xb4] sm:$0xf0]  ;;  %v4080_v53 = vld [vmem:[%s5051_s19 + $0xb0] sm:$0xf]  ;;  %s6582_s16 = scalar_lea.vmem %s6509_s10, %s5030_s25 }
  0xee   : > { %v4073_v51 = vor.u32 %v4461_v49, %v4072_v48  ;;  %v4462_v54 = vld [vmem:[%s5051_s19 + $0xb8] sm:$0xf0]  ;;  %v4077_v55 = vor.u32 %v4460_v50, %v4074_v52  ;;  %v4060_v57 = vld [vmem:[%s5051_s19 + $0x90] sm:$0xf]  ;;  %v4457_v59 = vld [vmem:[%s5051_s19 + $0x94] sm:$0xf] }
  0xef   : > { %v4081_v56 = vor.u32 %v4462_v54, %v4080_v53  ;;  %v4458_v58 = vld [vmem:[%s5051_s19 + $0x98] sm:$0xf0]  ;;  %v4062_v61 = vld [vmem:[%s5051_s19 + $0x9c] sm:$0xf0]  ;;  %v4068_v62 = vld [vmem:[%s5051_s19 + $0x98] sm:$0xf] }
  0xf0   : > { %1174 = vmatpush.bf16.msra.mxu0 %v4073_v51  ;;  %1193 = vmatpush.bf16.msra.mxu1 %v4077_v55  ;;  %v4061_v60 = vor.u32 %v4458_v58, %v4060_v57  ;;  %v4459_v63 = vld [vmem:[%s5051_s19 + $0xa0] sm:$0xf0]  ;;  %v4065_v0 = vor.u32 %v4457_v59, %v4062_v61  ;;  %v4048_v2 = vld [vmem:[%s5051_s19 + $0x78] sm:$0xf]  ;;  %v4454_v4 = vld [vmem:[%s5051_s19 + $0x7c] sm:$0xf] }
  0xf1   : > { %v898_v32 = vld [vmem:[#allocation2] sm:$0xff]  ;;  %1212 = vmatpush.bf16.msra.mxu2 %v4081_v56  ;;  %v4069_v1 = vor.u32 %v4459_v63, %v4068_v62  ;;  %v4050_v6 = vld [vmem:[%s5051_s19 + $0x84] sm:$0xf0]  ;;  %v4456_v8 = vld [vmem:[%s5051_s19 + $0x88] sm:$0xf0]  ;;  %s6571_s3 = sld [smem:[#allocation23_spill]] }
  0xf2   : > { %v4455_v3 = vld [vmem:[%s5051_s19 + $0x80] sm:$0xf0]  ;;  %v4056_v7 = vld [vmem:[%s5051_s19 + $0x80] sm:$0xf]  ;;  %v4053_v9 = vor.u32 %v4454_v4, %v4050_v6  ;;  %v4452_v12 = vld [vmem:[%s5051_s19 + $0x68] sm:$0xf0] }
  0xf3   : > { %v4631_v34 = vpop.eup %4630  ;;  %v4049_v5 = vor.u32 %v4455_v3, %v4048_v2  ;;  %v4057_v10 = vor.u32 %v4456_v8, %v4056_v7  ;;  %v4036_v11 = vld [vmem:[%s5051_s19 + $0x60] sm:$0xf]  ;;  %v4451_v13 = vld [vmem:[%s5051_s19 + $0x64] sm:$0xf]  ;;  %v4038_v15 = vld [vmem:[%s5051_s19 + $0x6c] sm:$0xf0] }
  0xf4   : > { %v912_v35 = vmul.f32 128.0, %v4631_v34  ;;  %vm916_vm0 = vweird.f32 %v4631_v34  ;;  %1175 = vmatpush.bf16.msra.mxu0 %v4061_v60  ;;  %1194 = vmatpush.bf16.msra.mxu1 %v4065_v0  ;;  %v4037_v14 = vor.u32 %v4452_v12, %v4036_v11  ;;  %v4044_v16 = vld [vmem:[%s5051_s19 + $0x68] sm:$0xf]  ;;  %v4453_v17 = vld [vmem:[%s5051_s19 + $0x70] sm:$0xf0]  ;;  %v4041_v18 = vor.u32 %v4451_v13, %v4038_v15  ;;  %v5181_v23 = vld [vmem:[#allocation2 + $0x18] sm:$0xff] }
  0xf5   : > { %905 = vadd.xlane.f32.xlu0 %v898_v32  ;;  %1213 = vmatpush.bf16.msra.mxu2 %v4069_v1  ;;  %v4045_v19 = vor.u32 %v4453_v17, %v4044_v16  ;;  %v4024_v20 = vld [vmem:[%s5051_s19 + $0x48] sm:$0xf]  ;;  %v4449_v21 = vld [vmem:[%s5051_s19 + $0x50] sm:$0xf0]  ;;  %v4448_v22 = vld [vmem:[%s5051_s19 + $0x4c] sm:$0xf] }
  0xf6   : > { %v913_v36 = vsub.f32 1.0, %v912_v35  ;;  %v4025_v24 = vor.u32 %v4449_v21, %v4024_v20  ;;  %v4026_v25 = vld [vmem:[%s5051_s19 + $0x54] sm:$0xf0]  ;;  %v4032_v26 = vld [vmem:[%s5051_s19 + $0x50] sm:$0xf]  ;;  %907 = vadd.xlane.f32.xlu2 %v5181_v23  ;;  %vm1234_vm7 = vcmask 261120  }
  0xf7   : > { %v4029_v27 = vor.u32 %v4448_v22, %v4026_v25  ;;  %v4450_v28 = vld [vmem:[%s5051_s19 + $0x58] sm:$0xf0]  ;;  %v4012_v30 = vld [vmem:[%s5051_s19 + $0x30] sm:$0xf]  ;;  %v4020_v35 = vld [vmem:[%s5051_s19 + $0x38] sm:$0xf]  ;;  %s6572_s2 = scalar_lea.vmem %s6571_s3, %s5030_s25 }
  0xf8   : > { %v914_v37 = vmul.f32 %v4631_v34, %v913_v36  ;;  %1176 = vmatpush.bf16.msra.mxu0 %v4049_v5  ;;  %1195 = vmatpush.bf16.msra.mxu1 %v4053_v9  ;;  %v4033_v29 = vor.u32 %v4450_v28, %v4032_v26  ;;  %v4447_v36 = vld [vmem:[%s5051_s19 + $0x40] sm:$0xf0]  ;;  %v4008_v48 = vld [vmem:[%s5051_s19 + $0x20] sm:$0xf]  ;;  %v4444_v50 = vld [vmem:[%s5051_s19 + $0x28] sm:$0xf0] }
  0xf9   : > { %1214 = vmatpush.bf16.msra.mxu2 %v4057_v10  ;;  %v3988_v51 = vld [vmem:[%s5051_s19] sm:$0xf]  ;;  %v4440_v52 = vld [vmem:[%s5051_s19 + $0x8] sm:$0xf0]  ;;  %v4009_v54 = vor.u32 %v4444_v50, %v4008_v48  ;;  %v4439_v56 = vld [vmem:[%s5051_s19 + $0x4] sm:$0xf] }
  0xfa   : > { %v915_v38 = vadd.f32 %v4631_v34, %v914_v37  ;;  %v3989_v55 = vor.u32 %v4440_v52, %v3988_v51  ;;  %v3990_v57 = vld [vmem:[%s5051_s19 + $0xc] sm:$0xf0]  ;;  %v3996_v58 = vld [vmem:[%s5051_s19 + $0x8] sm:$0xf]  ;;  %v4441_v61 = vld [vmem:[%s5051_s19 + $0x10] sm:$0xf0] }
  0xfb   : > { %v3993_v60 = vor.u32 %v4439_v56, %v3990_v57  ;;  %v3997_v62 = vor.u32 %v4441_v61, %v3996_v58  ;;  %v5216_v16 = vld [vmem:[%s6570_s28] ss:$0 sm:$0xff]  ;;  %vm1257_vm14 = vcmask 130048   ;;  %s4856_s20 = smov 64   ;;  %s4857_s30 = smov 32  }
  0xfc   : > { %v5142_v39 = vsel %vm916_vm0, %v4631_v34, %v915_v38  ;;  %1177 = vmatpush.bf16.msra.mxu0 %v4037_v14  ;;  %1196 = vmatpush.bf16.msra.mxu1 %v4041_v18  ;;  %v4014_v34 = vld [vmem:[%s5051_s19 + $0x3c] sm:$0xf0]  ;;  %v4021_v38 = vor.u32 %v4447_v36, %v4020_v35  ;;  %s6583_s28 = scalar_lea.vmem %s6510_s11, %s5030_s25  ;;  %s6613_s25 = sld [smem:[#allocation9_spill]] }
  0xfd   : > { %1215 = vmatpush.bf16.msra.mxu2 %v4045_v19  ;;  %v5225_v21 = vld [vmem:[%s6572_s2] ss:$0 sm:$0xff] }
 0x100   : > { %1178 = vmatpush.bf16.msra.mxu0 %v4025_v24  ;;  %1197 = vmatpush.bf16.msra.mxu1 %v4029_v27 }
 0x101   : > { %1216 = vmatpush.bf16.msra.mxu2 %v4033_v29 }
 0x102   : > { %p4422_p1 = scmp.ne.s32.totalorder %s6613_s25, 1 }
 0x103   : > { %s6614_s27 = sld [smem:[#allocation27_spill]] (!%p4422_p1) }
 0x105   : > { %1217 = vmatpush.bf16.msra.mxu2 %v4021_v38 }
 0x109   : > { %1218 = vmatpush.bf16.msra.mxu2 %v4009_v54 }
 0x10d   : > { %1219 = vmatpush.bf16.msra.mxu2 %v3997_v62 }
 0x160   : > { %v904_v40 = vpop.xlane.xlu0 %903 }
 0x161   : > { %v918_v41 = vmul.f32 %v5142_v39, %v904_v40  ;;  %v4000_v40 = vld [vmem:[%s5051_s19 + $0x18] sm:$0xf] }
 0x163   : > { %v5145_v42 = vsub.f32 %v897_v31, %v918_v41  ;;  %v4446_v31 = vld [vmem:[%s5051_s19 + $0x38] sm:$0xf0]  ;;  %v4443_v41 = vld [vmem:[%s5051_s19 + $0x20] sm:$0xf0] }
 0x164   : > { %v4013_v33 = vor.u32 %v4446_v31, %v4012_v30 }
 0x165   : > { %v926_v43 = vmul.f32 %v5145_v42, %v5145_v42 }
 0x166   : > { %1179 = vmatpush.bf16.msra.mxu0 %v4013_v33 }
 0x167   : > { %930 = vadd.xlane.f32.xlu1 %v926_v43  ;;  %v4442_v43 = vld [vmem:[%s5051_s19 + $0x1c] sm:$0xf] }
 0x168   : > { %v906_v44 = vpop.xlane.xlu0 %905 }
 0x169   : > { %v919_v45 = vmul.f32 %v5142_v39, %v906_v44  ;;  %v5196_v44 = vld [vmem:[#allocation2 + $0x8] sm:$0xff] }
 0x16a   : > { %909 = vadd.xlane.f32.xlu2 %v5196_v44 }
 0x16b   : > { %v5150_v46 = vsub.f32 %v898_v32, %v919_v45  ;;  %v4445_v32 = vld [vmem:[%s5051_s19 + $0x34] sm:$0xf]  ;;  %v4001_v45 = vor.u32 %v4443_v41, %v4000_v40 }
 0x16c   : > { %v4017_v37 = vor.u32 %v4445_v32, %v4014_v34  ;;  %v1038_v34 = vld [vmem:[%s5061_s21] sm:$0x7]  ;;  %s4855_s21 = smov 96  }
 0x16d   : > { %v927_v47 = vmul.f32 %v5150_v46, %v5150_v46  ;;  %1180 = vmatpush.bf16.msra.mxu0 %v4001_v45  ;;  %v5235_v36 = vperm.slane %v1038_v34, 1 }
 0x16e   : > { %1198 = vmatpush.bf16.msra.mxu1 %v4017_v37 }
 0x16f   : > { %932 = vadd.xlane.f32.xlu1 %v927_v47  ;;  %v4002_v47 = vld [vmem:[%s5051_s19 + $0x24] sm:$0xf0] }
 0x170   : > { %v4005_v49 = vor.u32 %v4442_v43, %v4002_v47  ;;  %v5241_v43 = vperm.slane %v1038_v34, 2 }
 0x171   : > { %1181 = vmatpush.bf16.msra.mxu0 %v3989_v55 }
 0x172   : > { %1199 = vmatpush.bf16.msra.mxu1 %v4005_v49 }
 0x176   : > { %1200 = vmatpush.bf16.msra.mxu1 %v3993_v60 }
 0x1da   : > { %v931_v53 = vpop.xlane.xlu1 %930 }
 0x1db   : > { %v938_v59 = vmul.f32 %v931_v53, %v5142_v39 }
 0x1dd   : > { %v942_v63 = vadd.f32 1e-05, %v938_v59 }
 0x1df   : > { %4632 = vrsqrt.f32 %v942_v63  ;;  %vm952_vm2 = vweird.f32 %v942_v63 }
 0x1e2   : > { %v933_v0 = vpop.xlane.xlu1 %932 }
 0x1e3   : > { %v939_v1 = vmul.f32 %v933_v0, %v5142_v39 }
 0x1e5   : > { %v4633_v2 = vpop.eup %4632  ;;  %v943_v3 = vadd.f32 1e-05, %v939_v1 }
 0x1e6   : > { %v947_v4 = vmul.f32 %v4633_v2, %v942_v63  ;;  %vm953_vm1 = vweird.f32 %v4633_v2 }
 0x1e7   : > { %4634 = vrsqrt.f32 %v943_v3  ;;  %vm954_vm3 = vmor %vm952_vm2, %vm953_vm1  ;;  %vm962_vm5 = vweird.f32 %v943_v3 }
 0x1e8   : > { %v948_v5 = vmul.f32 %v4633_v2, %v947_v4 }
 0x1ea   : > { %v949_v6 = vmul.f32 0.5, %v948_v5 }
 0x1ec   : > { %v950_v7 = vsub.f32 1.5, %v949_v6 }
 0x1ed   : > { %v4635_v8 = vpop.eup %4634 }
 0x1ee   : > { %v951_v9 = vmul.f32 %v4633_v2, %v950_v7  ;;  %v957_v10 = vmul.f32 %v4635_v8, %v943_v3  ;;  %vm963_vm4 = vweird.f32 %v4635_v8 }
 0x1ef   : > { %vm964_vm6 = vmor %vm962_vm5, %vm963_vm4 }
 0x1f0   : > { %v958_v11 = vmul.f32 %v4635_v8, %v957_v10  ;;  %v955_v12 = vsel %vm954_vm3, %v4633_v2, %v951_v9 }
 0x1f1   : > { %v986_v15 = vmul.f32 %v955_v12, %v5145_v42 }
 0x1f2   : > { %v959_v13 = vmul.f32 0.5, %v958_v11 }
 0x1f3   : > { %v993_v20 = vmul.f32 %v5216_v16, %v986_v15 }
 0x1f4   : > { %v960_v14 = vsub.f32 1.5, %v959_v13 }
 0x1f5   : > { %v1000_v22 = vadd.f32 %v5225_v21, %v993_v20 }
 0x1f6   : > { %v961_v17 = vmul.f32 %v4635_v8, %v960_v14 }
 0x1f8   : > { %v965_v18 = vsel %vm964_vm6, %v4635_v8, %v961_v17 }
 0x1f9   : > { %v987_v19 = vmul.f32 %v965_v18, %v5150_v46  ;;  %v908_v46 = vpop.xlane.xlu2 %907 }
 0x1fa   : > { %v920_v26 = vmul.f32 %v5142_v39, %v908_v46 }
 0x1fb   : > { %v994_v42 = vmul.f32 %v5216_v16, %v987_v19 }
 0x1fc   : > { %v924_v27 = vsub.f32 %v5181_v23, %v920_v26 }
 0x1fd   : > { %v1001_v24 = vadd.f32 %v5225_v21, %v994_v42 }
 0x1fe   : > { %v928_v28 = vmul.f32 %v924_v27, %v924_v27 }
 0x1ff   : > { %v1004_v25 = vpack.c.bf16 %v1001_v24, %v1000_v22 }
 0x200   : > { %934 = vadd.xlane.f32.xlu0 %v928_v28 }
 0x201   : > { %1182 = vmatmul.bf16.vlgmr.msra.gmra.mxu0 %v1004_v25  ;;  %1201 = vmatmul.bf16.vlgmr.msra.gmra.mxu1 %v1004_v25  ;;  %v910_v29 = vpop.xlane.xlu2 %909 }
 0x202   : > { %1220 = vmatmul.bf16.vlgmr.msra.gmra.mxu2 %v1004_v25  ;;  %v921_v30 = vmul.f32 %v5142_v39, %v910_v29 }
 0x204   : > { %v925_v31 = vsub.f32 %v5196_v44, %v921_v30  ;;  %v5243_v44 = vperm.slane %v1038_v34, 0 }
 0x206   : > { %v929_v32 = vmul.f32 %v925_v31, %v925_v31 }
 0x208   : > { %936 = vadd.xlane.f32.xlu1 %v929_v32 }
 0x273   : > { %v935_v55 = vpop.xlane.xlu0 %934 }
 0x274   : > { %v940_v56 = vmul.f32 %v935_v55, %v5142_v39 }
 0x276   : > { %v944_v57 = vadd.f32 1e-05, %v940_v56 }
 0x278   : > { %4636 = vrsqrt.f32 %v944_v57  ;;  %vm972_vm8 = vweird.f32 %v944_v57 }
 0x27b   : > { %v937_v58 = vpop.xlane.xlu1 %936 }
 0x27c   : > { %v941_v59 = vmul.f32 %v937_v58, %v5142_v39 }
 0x27e   : > { %v1202_v33 = vpop.f32.mrf.mxu1  ;;  %v1183_v35 = vpop.f32.mrf.mxu0  ;;  %v945_v61 = vadd.f32 1e-05, %v941_v59 }
 0x27f   : > { %v1203_v40 = vadd.f32 %v1202_v33, %v5235_v36  ;;  %v1184_v52 = vadd.f32 %v1183_v35, %v5243_v44  ;;  %v4637_v60 = vpop.eup %4636 }
 0x280   : > { %v967_v62 = vmul.f32 %v4637_v60, %v944_v57  ;;  %4638 = vrsqrt.f32 %v945_v61  ;;  %vm973_vm9 = vweird.f32 %v4637_v60  ;;  %vm982_vm11 = vweird.f32 %v945_v61 }
 0x281   : > { %vm974_vm10 = vmor %vm972_vm8, %vm973_vm9 }
 0x282   : > { %v968_v63 = vmul.f32 %v4637_v60, %v967_v62 }
 0x284   : > { %v969_v0 = vmul.f32 0.5, %v968_v63 }
 0x285   : > { %v1221_v37 = vpop.f32.mrf.mxu2 }
 0x286   : > { %v1204_v38 = vpop.f32.mrf.mxu1  ;;  %v1185_v45 = vpop.f32.mrf.mxu0  ;;  %v1222_v50 = vadd.f32 %v1221_v37, %v5241_v43  ;;  %v970_v1 = vsub.f32 1.5, %v969_v0 }
 0x287   : > { %v1205_v23 = vadd.f32 %v1204_v38, %v5235_v36  ;;  %v1186_v48 = vadd.f32 %v1185_v45, %v5243_v44  ;;  %v4639_v2 = vpop.eup %4638 }
 0x288   : > { %v977_v3 = vmul.f32 %v4639_v2, %v945_v61  ;;  %v971_v4 = vmul.f32 %v4637_v60, %v970_v1  ;;  %vm983_vm12 = vweird.f32 %v4639_v2 }
 0x289   : > { %v5239_v41 = vpack.c.bf16 %v1205_v23, %v1203_v40  ;;  %v5253_v54 = vpack.c.bf16 %v1186_v48, %v1184_v52  ;;  %vm984_vm13 = vmor %vm982_vm11, %vm983_vm12 }
 0x28a   : > { %v978_v5 = vmul.f32 %v4639_v2, %v977_v3  ;;  %v975_v6 = vsel %vm974_vm10, %v4637_v60, %v971_v4 }
 0x28b   : > { %v1239_v47 = vsel %vm1234_vm7, %v5239_v41, 0  ;;  %v988_v8 = vmul.f32 %v975_v6, %v924_v27 }
 0x28c   : > { %1248 = vmatpush.bf16.xpose.msra.mxu3 %v1239_v47  ;;  %v979_v7 = vmul.f32 0.5, %v978_v5 }
 0x28d   : > { %v1223_v49 = vpop.f32.mrf.mxu2  ;;  %v995_v11 = vmul.f32 %v5216_v16, %v988_v8 }
 0x28e   : > { %v1224_v51 = vadd.f32 %v1223_v49, %v5241_v43  ;;  %v980_v9 = vsub.f32 1.5, %v979_v7 }
 0x28f   : > { %v1002_v15 = vadd.f32 %v5225_v21, %v995_v11 }
 0x290   : > { %v5251_v53 = vpack.c.bf16 %v1224_v51, %v1222_v50  ;;  %v981_v10 = vmul.f32 %v4639_v2, %v980_v9 }
 0x292   : > { %v985_v12 = vsel %vm984_vm13, %v4639_v2, %v981_v10 }
 0x293   : > { %4082 = vmatmul.msk.bf16.vlgmr.msra.gmra.mxu3 %vm1234_vm7, %v5253_v54  ;;  %v989_v13 = vmul.f32 %v985_v12, %v925_v31 }
 0x294   : > { %1317 = vmatpush.bf16.msrb.mxu3 %v5251_v53 }
 0x295   : > { %v996_v14 = vmul.f32 %v5216_v16, %v989_v13 }
 0x297   : > { %v1003_v17 = vadd.f32 %v5225_v21, %v996_v14 }
 0x299   : > { %v1005_v18 = vpack.c.bf16 %v1003_v17, %v1002_v15 }
 0x29b   : > { %1187 = vmatmul.bf16.gmra.mxu0 %v1005_v18  ;;  %1206 = vmatmul.bf16.gmra.mxu1 %v1005_v18 }
 0x29c   : > { %1225 = vmatmul.bf16.gmra.mxu2 %v1005_v18 }
 0x316   : > { %v1250_v19 = vpop.f32.mrf.mxu3 }
 0x317   : > { %v1255_v20 = vmul.f32 0.17677669, %v1250_v19 }
 0x318   : > { %v1188_v16 = vpop.f32.mrf.mxu0  ;;  %v1207_v21 = vpop.f32.mrf.mxu1 }
 0x319   : > { %v1258_v42 = vsel %vm1257_vm14, %v1255_v20, -inf  ;;  %v1189_v46 = vadd.f32 %v1188_v16, %v5243_v44  ;;  %v1208_v29 = vadd.f32 %v1207_v21, %v5235_v36 }
 0x31a   : > { %1259 = vmax.xlane.f32.xlu2 %v1258_v42 }
 0x31e   : > { %v1252_v22 = vpop.f32.mrf.mxu3 }
 0x31f   : > { %v1256_v24 = vmul.f32 0.17677669, %v1252_v22  ;;  %v1226_v57 = vpop.f32.mrf.mxu2 }
 0x320   : > { %v1190_v26 = vpop.f32.mrf.mxu0  ;;  %v1209_v30 = vpop.f32.mrf.mxu1  ;;  %v1227_v18 = vadd.f32 %v1226_v57, %v5241_v43 }
 0x321   : > { %v1261_v25 = vsel %vm1257_vm14, %v1256_v24, -inf  ;;  %v1191_v27 = vadd.f32 %v1190_v26, %v5243_v44  ;;  %v1210_v31 = vadd.f32 %v1209_v30, %v5235_v36 }
 0x322   : > { %1262 = vmax.xlane.f32.xlu0 %v1261_v25 }
 0x323   : > { %v5270_v28 = vpack.c.bf16 %v1191_v27, %v1189_v46  ;;  %v5276_v32 = vpack.c.bf16 %v1210_v31, %v1208_v29 }
 0x325   : > { %v1331_v33 = vsel %vm1234_vm7, %v5276_v32, 0 }
 0x326   : > { %1340 = vmatpush.bf16.xpose.msra.mxu3 %v1331_v33 }
 0x327   : > { %v1228_v9 = vpop.f32.mrf.mxu2 }
 0x328   : > { %v1229_v19 = vadd.f32 %v1228_v9, %v5241_v43 }
 0x32a   : > { %v5306_v21 = vpack.c.bf16 %v1229_v19, %v1227_v18 }
 0x336   : > { %1425 = vrot.lane.b32.xlu0 %v5239_v41, %s4855_s21 }
 0x33e   : > { %1520 = vrot.lane.b32.xlu0 %v5270_v28, %s4855_s21 }
 0x346   : > { %1795 = vrot.lane.b32.xlu0 %v5276_v32, %s4856_s20 }
 0x38d   : > { %v1260_v34 = vpop.xlane.xlu2 %1259 }
 0x38e   : > { %v1264_v35 = vsub.f32 %v1255_v20, %v1260_v34 }
 0x390   : > { %v1266_v37 = vmul.f32 1.442695, %v1264_v35 }
 0x392   : > { %4640 = vpow2.f32 %v1266_v37 }
 0x395   : > { %v1263_v38 = vpop.xlane.xlu0 %1262 }
 0x396   : > { %v1265_v40 = vsub.f32 %v1256_v24, %v1263_v38 }
 0x398   : > { %v5282_v23 = vpop.eup %4640  ;;  %v1268_v45 = vmul.f32 1.442695, %v1265_v40 }
 0x399   : > { %v1270_v36 = vsel %vm1257_vm14, %v5282_v23, 0.0 }
 0x39a   : > { %4642 = vpow2.f32 %v1268_v45  ;;  %1271 = vadd.xlane.f32.xlu1 %v1270_v36 }
 0x3a0   : > { %v4643_v44 = vpop.eup %4642 }
 0x3a1   : > { %v1273_v47 = vsel %vm1257_vm14, %v4643_v44, 0.0 }
 0x3a2   : > { %1274 = vadd.xlane.f32.xlu2 %v1273_v47 }
 0x3a8   : > { %v1426_v48 = vpop.permute.xlu0 %1425 }
 0x3a9   : > { %v1431_v49 = vsel %vm1234_vm7, %v1426_v48, 0 }
 0x3aa   : > { %1440 = vmatpush.bf16.xpose.msrb.mxu0 %v1431_v49 }
 0x3b0   : > { %v1521_v59 = vpop.permute.xlu0 %1520 }
 0x3b3   : > { %1422 = vrot.lane.b32.xlu1 %v5253_v54, %s4855_s21 }
 0x3b8   : > { %v1796_v11 = vpop.permute.xlu0 %1795 }
 0x3b9   : > { %v1801_v22 = vsel %vm1234_vm7, %v1796_v11, 0 }
 0x3ba   : > { %1523 = vrot.lane.b32.xlu2 %v5276_v32, %s4855_s21 }
 0x3bb   : > { %1698 = vrot.lane.b32.xlu1 %v5253_v54, %s4856_s20 }
 0x3c2   : > { %1700 = vrot.lane.b32.xlu2 %v5239_v41, %s4856_s20 }
 0x3ca   : > { %1793 = vrot.lane.b32.xlu2 %v5270_v28, %s4856_s20 }
 0x40d   : > { %v1272_v50 = vpop.xlane.xlu1 %1271 }
 0x40e   : > { %4644 = vrcp.f32 %v1272_v50  ;;  %v1287_v0 = vand.u32 2147483648, %v1272_v50  ;;  %vm1281_vm0 = vweird.f32 %v1272_v50  ;;  %v1285_v2 = vand.u32 2147483647, %v1272_v50 }
 0x410   : > { %v1288_v8 = vor.u32 1.1754944e-38, %v1287_v0  ;;  %vm1286_vm3 = vcmp.eq.f32.partialorder %v1285_v2, 8.507059e+37 }
 0x414   : > { %v4645_v51 = vpop.eup %4644 }
 0x415   : > { %v1277_v52 = vmul.f32 %v4645_v51, %v1272_v50  ;;  %v1275_v55 = vpop.xlane.xlu2 %1274  ;;  %vm1282_vm15 = vweird.f32 %v4645_v51 }
 0x416   : > { %4646 = vrcp.f32 %v1275_v55  ;;  %vm1283_vm1 = vmor %vm1281_vm0, %vm1282_vm15  ;;  %v1301_v4 = vand.u32 2147483648, %v1275_v55  ;;  %v1299_v7 = vand.u32 2147483647, %v1275_v55  ;;  %vm1295_vm4 = vweird.f32 %v1275_v55 }
 0x417   : > { %v1278_v56 = vsub.f32 1.0, %v1277_v52 }
 0x418   : > { %v1302_v12 = vor.u32 1.1754944e-38, %v1301_v4  ;;  %vm1300_vm6 = vcmp.eq.f32.partialorder %v1299_v7, 8.507059e+37 }
 0x419   : > { %v1279_v58 = vmul.f32 %v4645_v51, %v1278_v56 }
 0x41b   : > { %v1280_v61 = vadd.f32 %v4645_v51, %v1279_v58 }
 0x41c   : > { %v4647_v60 = vpop.eup %4646 }
 0x41d   : > { %v1291_v62 = vmul.f32 %v4647_v60, %v1275_v55  ;;  %v1524_v63 = vpop.permute.xlu2 %1523  ;;  %v1284_v5 = vsel %vm1283_vm1, %v4645_v51, %v1280_v61  ;;  %vm1296_vm2 = vweird.f32 %v4647_v60 }
 0x41e   : > { %v1529_v1 = vsel %vm1234_vm7, %v1524_v63, 0  ;;  %vm1297_vm5 = vmor %vm1295_vm4, %vm1296_vm2  ;;  %v1289_v13 = vsel %vm1286_vm3, %v1288_v8, %v1284_v5 }
 0x41f   : > { %v1292_v3 = vsub.f32 1.0, %v1291_v62  ;;  %1538 = vmatpush.bf16.xpose.msrb.mxu2 %v1529_v1  ;;  %v1304_v24 = vmul.f32 %v5282_v23, %v1289_v13 }
 0x421   : > { %v1293_v6 = vmul.f32 %v4647_v60, %v1292_v3 }
 0x423   : > { %v1294_v10 = vadd.f32 %v4647_v60, %v1293_v6 }
 0x425   : > { %v1298_v14 = vsel %vm1297_vm5, %v4647_v60, %v1294_v10  ;;  %v1423_v15 = vpop.permute.xlu1 %1422  ;;  %v1701_v17 = vpop.permute.xlu2 %1700 }
 0x426   : > { %v1706_v20 = vsel %vm1234_vm7, %v1701_v17, 0  ;;  %4086 = vmatmul.msk.bf16.vlgmr.msrb.gmra.mxu0 %vm1234_vm7, %v1423_v15  ;;  %4088 = vmatmul.msk.bf16.vlgmr.msrb.gmra.mxu2 %vm1234_vm7, %v1521_v59  ;;  %v1303_v42 = vsel %vm1300_vm6, %v1302_v12, %v1298_v14 }
 0x427   : > { %1715 = vmatpush.bf16.xpose.msra.mxu2 %v1706_v20  ;;  %v1305_v25 = vmul.f32 %v4643_v44, %v1303_v42 }
 0x429   : > { %v1306_v16 = vpack.c.bf16 %v1305_v25, %v1304_v24 }
 0x42b   : > { %4083 = vmatmul.msk.bf16.vlgmr.msrb.gmra.mxu3 %vm1257_vm14, %v1306_v16 }
 0x42c   : > { %1408 = vmatpush.bf16.msrb.mxu3 %v5306_v21 }
 0x42d   : > { %v1699_v43 = vpop.permute.xlu1 %1698  ;;  %v1794_v46 = vpop.permute.xlu2 %1793 }
 0x42f   : > { %1810 = vmatpush.bf16.xpose.msrb.mxu2 %v1801_v22 }
 0x436   : > { %4114 = vmatmul.msk.bf16.vlgmr.msra.gmra.mxu2 %vm1234_vm7, %v1699_v43 }
 0x43b   : > { %4084 = vmatmul.msk.bf16.vlgmr.msra.gmra.mxu3 %vm1234_vm7, %v5270_v28 }
 0x446   : > { %4116 = vmatmul.msk.bf16.vlgmr.msrb.gmra.mxu2 %vm1234_vm7, %v1794_v46 }
 0x4a3   : > { %v1442_v45 = vpop.f32.mrf.mxu0 }
 0x4a4   : > { %v1447_v36 = vmul.f32 0.17677669, %v1442_v45 }
 0x4a6   : > { %v1449_v47 = vsel %vm1257_vm14, %v1447_v36, -inf }
 0x4a9   : > { %v1540_v27 = vpop.f32.mrf.mxu2 }
 0x4aa   : > { %v1545_v5 = vmul.f32 0.17677669, %v1540_v27 }
 0x4ab   : > { %v1444_v63 = vpop.f32.mrf.mxu0 }
 0x4ac   : > { %v1448_v0 = vmul.f32 0.17677669, %v1444_v63  ;;  %v1547_v9 = vsel %vm1257_vm14, %v1545_v5, -inf }
 0x4ae   : > { %v5314_v26 = vpop.f32.mrf.mxu3  ;;  %v1452_v2 = vsel %vm1257_vm14, %v1448_v0, -inf }
 0x4b1   : > { %v1542_v31 = vpop.f32.mrf.mxu2 }
 0x4b2   : > { %v1546_v48 = vmul.f32 0.17677669, %v1542_v31 }
 0x4b4   : > { %v1550_v49 = vsel %vm1257_vm14, %v1546_v48, -inf }
 0x4b6   : > { %v5316_v29 = vpop.f32.mrf.mxu3 }
 0x4b7   : > { %v1415_v30 = vpack.c.bf16 %v5316_v29, %v5314_v26 }
 0x4b9   : > { %v1717_v37 = vpop.f32.mrf.mxu2 }
 0x4ba   : > { %v5337_v6 = vmul.f32 0.17677669, %v1717_v37 }
 0x4bc   : > { %v1724_v8 = vsel %vm1257_vm14, %v5337_v6, -inf }
 0x4be   : > { %v1342_v33 = vpop.f32.mrf.mxu3 }
 0x4bf   : > { %v1347_v34 = vmul.f32 0.17677669, %v1342_v33 }
 0x4c1   : > { %v1349_v35 = vsel %vm1257_vm14, %v1347_v34, -inf  ;;  %v1719_v44 = vpop.f32.mrf.mxu2 }
 0x4c2   : > { %1350 = vmax.xlane.f32.xlu1 %v1349_v35  ;;  %v5342_v12 = vmul.f32 0.17677669, %v1719_v44 }
 0x4c4   : > { %v1727_v18 = vsel %vm1257_vm14, %v5342_v12, -inf }
 0x4c6   : > { %v1344_v38 = vpop.f32.mrf.mxu3 }
 0x4c7   : > { %v1348_v40 = vmul.f32 0.17677669, %v1344_v38 }
 0x4c9   : > { %v1352_v23 = vsel %vm1257_vm14, %v1348_v40, -inf  ;;  %v1812_v50 = vpop.f32.mrf.mxu2 }
 0x4ca   : > { %1353 = vmax.xlane.f32.xlu0 %v1352_v23  ;;  %v5324_v51 = vmul.f32 0.17677669, %v1812_v50 }
 0x4cc   : > { %v1819_v52 = vsel %vm1257_vm14, %v5324_v51, -inf }
 0x4d1   : > { %v1814_v10 = vpop.f32.mrf.mxu2 }
 0x4d2   : > { %1450 = vmax.xlane.f32.xlu0 %v1449_v47  ;;  %v5344_v13 = vmul.f32 0.17677669, %v1814_v10 }
 0x4d4   : > { %v1822_v17 = vsel %vm1257_vm14, %v5344_v13, -inf }
 0x4da   : > { %1551 = vmax.xlane.f32.xlu0 %v1550_v49 }
 0x4e2   : > { %1820 = vmax.xlane.f32.xlu0 %v1819_v52 }
 0x535   : > { %v1351_v55 = vpop.xlane.xlu1 %1350 }
 0x536   : > { %v1355_v56 = vsub.f32 %v1347_v34, %v1351_v55 }
 0x538   : > { %v1357_v57 = vmul.f32 1.442695, %v1355_v56 }
 0x53a   : > { %4648 = vpow2.f32 %v1357_v57 }
 0x53d   : > { %v1354_v58 = vpop.xlane.xlu0 %1353 }
 0x53e   : > { %v1356_v59 = vsub.f32 %v1348_v40, %v1354_v58 }
 0x540   : > { %v5328_v60 = vpop.eup %4648  ;;  %v1359_v61 = vmul.f32 1.442695, %v1356_v59 }
 0x541   : > { %v1361_v62 = vsel %vm1257_vm14, %v5328_v60, 0.0 }
 0x542   : > { %4650 = vpow2.f32 %v1359_v61  ;;  %1362 = vadd.xlane.f32.xlu2 %v1361_v62 }
 0x545   : > { %v1451_v4 = vpop.xlane.xlu0 %1450 }
 0x546   : > { %v1455_v7 = vsub.f32 %v1447_v36, %v1451_v4 }
 0x548   : > { %v5332_v1 = vpop.eup %4650  ;;  %v1457_v11 = vmul.f32 1.442695, %v1455_v7 }
 0x549   : > { %v1364_v3 = vsel %vm1257_vm14, %v5332_v1, 0.0 }
 0x54a   : > { %1453 = vmax.xlane.f32.xlu2 %v1452_v2  ;;  %1365 = vadd.xlane.f32.xlu1 %v1364_v3  ;;  %4652 = vpow2.f32 %v1457_v11 }
 0x54d   : > { %v1552_v14 = vpop.xlane.xlu0 %1551 }
 0x54e   : > { %v1554_v15 = vsub.f32 %v1546_v48, %v1552_v14 }
 0x550   : > { %v1557_v19 = vmul.f32 1.442695, %v1554_v15  ;;  %v5350_v20 = vpop.eup %4652 }
 0x551   : > { %v1461_v42 = vsel %vm1257_vm14, %v5350_v20, 0.0 }
 0x552   : > { %1725 = vmax.xlane.f32.xlu2 %v1724_v8  ;;  %1548 = vmax.xlane.f32.xlu1 %v1547_v9  ;;  %4654 = vpow2.f32 %v1557_v19 }
 0x555   : > { %v1821_v7 = vpop.xlane.xlu0 %1820 }
 0x556   : > { %v1825_v15 = vsub.f32 %v5324_v51, %v1821_v7 }
 0x558   : > { %v5354_v22 = vpop.eup %4654  ;;  %v1827_v19 = vmul.f32 1.442695, %v1825_v15 }
 0x559   : > { %v1562_v24 = vsel %vm1257_vm14, %v5354_v22, 0.0 }
 0x55a   : > { %1823 = vmax.xlane.f32.xlu2 %v1822_v17  ;;  %1728 = vmax.xlane.f32.xlu1 %v1727_v18 }
 0x562   : > { %1462 = vadd.xlane.f32.xlu1 %v1461_v42 }
 0x56a   : > { %1563 = vadd.xlane.f32.xlu1 %v1562_v24 }
 0x5b5   : > { %v1363_v25 = vpop.xlane.xlu2 %1362 }
 0x5b6   : > { %4656 = vrcp.f32 %v1363_v25  ;;  %vm1372_vm9 = vweird.f32 %v1363_v25  ;;  %v1378_v45 = vand.u32 2147483648, %v1363_v25  ;;  %v1376_v48 = vand.u32 2147483647, %v1363_v25 }
 0x5b8   : > { %v1379_v62 = vor.u32 1.1754944e-38, %v1378_v45  ;;  %vm1377_vm12 = vcmp.eq.f32.partialorder %v1376_v48, 8.507059e+37 }
 0x5bc   : > { %v4657_v16 = vpop.eup %4656 }
 0x5bd   : > { %v1368_v43 = vmul.f32 %v4657_v16, %v1363_v25  ;;  %v1454_v46 = vpop.xlane.xlu2 %1453  ;;  %v1366_v27 = vpop.xlane.xlu1 %1365  ;;  %vm1373_vm8 = vweird.f32 %v4657_v16 }
 0x5be   : > { %v1456_v31 = vsub.f32 %v1448_v0, %v1454_v46  ;;  %4658 = vrcp.f32 %v1366_v27  ;;  %vm5358_vm10 = vmor %vm1372_vm9, %vm1373_vm8  ;;  %v1390_v55 = vand.u32 2147483647, %v1366_v27  ;;  %v1392_v56 = vand.u32 2147483648, %v1366_v27 }
 0x5bf   : > { %v1369_v33 = vsub.f32 1.0, %v1368_v43  ;;  %vm1386_vm13 = vweird.f32 %v1366_v27 }
 0x5c0   : > { %v1459_v34 = vmul.f32 1.442695, %v1456_v31  ;;  %v1393_v2 = vor.u32 1.1754944e-38, %v1392_v56  ;;  %vm1391_vm0 = vcmp.eq.f32.partialorder %v1390_v55, 8.507059e+37 }
 0x5c1   : > { %v1370_v35 = vmul.f32 %v4657_v16, %v1369_v33 }
 0x5c2   : > { %4660 = vpow2.f32 %v1459_v34 }
 0x5c3   : > { %v1371_v38 = vadd.f32 %v4657_v16, %v1370_v35 }
 0x5c4   : > { %v4659_v37 = vpop.eup %4658 }
 0x5c5   : > { %v1382_v40 = vmul.f32 %v4659_v37, %v1366_v27  ;;  %v1549_v23 = vpop.xlane.xlu1 %1548  ;;  %v1726_v36 = vpop.xlane.xlu2 %1725  ;;  %v1375_v52 = vsel %vm5358_vm10, %v4657_v16, %v1371_v38  ;;  %vm1387_vm11 = vweird.f32 %v4659_v37 }
 0x5c6   : > { %v1553_v44 = vsub.f32 %v1545_v5, %v1549_v23  ;;  %v1730_v59 = vsub.f32 %v5337_v6, %v1726_v36  ;;  %v1380_v0 = vsel %vm1377_vm12, %v1379_v62, %v1375_v52  ;;  %vm1388_vm15 = vmor %vm1386_vm13, %vm1387_vm11 }
 0x5c7   : > { %v1383_v49 = vsub.f32 1.0, %v1382_v40  ;;  %v1395_v9 = vmul.f32 %v5328_v60, %v1380_v0 }
 0x5c8   : > { %v5362_v50 = vpop.eup %4660  ;;  %v1555_v57 = vmul.f32 1.442695, %v1553_v44  ;;  %v1732_v4 = vmul.f32 1.442695, %v1730_v59 }
 0x5c9   : > { %v1384_v58 = vmul.f32 %v4659_v37, %v1383_v49  ;;  %v1464_v61 = vsel %vm1257_vm14, %v5362_v50, 0.0 }
 0x5ca   : > { %1465 = vadd.xlane.f32.xlu0 %v1464_v61  ;;  %4662 = vpow2.f32 %v1555_v57 }
 0x5cb   : > { %v1385_v63 = vadd.f32 %v4659_v37, %v1384_v58  ;;  %4664 = vpow2.f32 %v1732_v4 }
 0x5cd   : > { %v1389_v3 = vsel %vm1388_vm15, %v4659_v37, %v1385_v63  ;;  %v1729_v5 = vpop.xlane.xlu1 %1728  ;;  %v1824_v25 = vpop.xlane.xlu2 %1823 }
 0x5ce   : > { %v1394_v8 = vsel %vm1391_vm0, %v1393_v2, %v1389_v3  ;;  %v1731_v6 = vsub.f32 %v5342_v12, %v1729_v5  ;;  %v1826_v16 = vsub.f32 %v5344_v13, %v1824_v25  ;;  %v4463_v25 = vld [vmem:[%s5056_s26] sm:$0xff] }
 0x5cf   : > { %v1396_v10 = vmul.f32 %v5332_v1, %v1394_v8  ;;  %v4464_v8 = vld [vmem:[%s5056_s26 + $0x8] sm:$0xff] }
 0x5d0   : > { %v1734_v11 = vmul.f32 1.442695, %v1731_v6  ;;  %v5372_v14 = vpop.eup %4662  ;;  %v1829_v43 = vmul.f32 1.442695, %v1826_v16 }
 0x5d1   : > { %v1397_v17 = vpack.c.bf16 %v1396_v10, %v1395_v9  ;;  %v1559_v18 = vsel %vm1257_vm14, %v5372_v14, 0.0  ;;  %v5378_v12 = vpop.eup %4664 }
 0x5d2   : > { %4666 = vpow2.f32 %v1734_v11  ;;  %1560 = vadd.xlane.f32.xlu2 %v1559_v18  ;;  %v1736_v1 = vsel %vm1257_vm14, %v5378_v12, 0.0 }
 0x5d3   : > { %4085 = vmatmul.msk.bf16.vlgmr.msrb.gmra.mxu3 %vm1257_vm14, %v1397_v17  ;;  %4668 = vpow2.f32 %v1827_v19 }
 0x5d4   : > { %4670 = vpow2.f32 %v1829_v43 }
 0x5d8   : > { %v5380_v60 = vpop.eup %4666 }
 0x5d9   : > { %v1739_v51 = vsel %vm1257_vm14, %v5380_v60, 0.0  ;;  %v5388_v42 = vpop.eup %4668 }
 0x5da   : > { %1737 = vadd.xlane.f32.xlu2 %v1736_v1  ;;  %1740 = vadd.xlane.f32.xlu1 %v1739_v51  ;;  %v1831_v24 = vsel %vm1257_vm14, %v5388_v42, 0.0  ;;  %v5401_v46 = vpop.eup %4670 }
 0x5db   : > { %v1834_v13 = vsel %vm1257_vm14, %v5401_v46, 0.0 }
 0x5de   : > { %1499 = vrot.lane.b32.xlu0 %v5251_v53, %s4855_s21 }
 0x5e2   : > { %1832 = vadd.xlane.f32.xlu1 %v1831_v24 }
 0x5f2   : > { %1597 = vrot.lane.b32.xlu2 %v5306_v21, %s4855_s21  ;;  %s6615_s21 = sld [smem:[#allocation28_spill]] (!%p4422_p1) }
 0x5fa   : > { %1938 = vrot.lane.b32.xlu2 %v5239_v41, %s4857_s30  ;;  %v1463_v41 = vpop.xlane.xlu1 %1462 }
 0x5fb   : > { %1773 = vrot.lane.b32.xlu1 %v5251_v53, %s4856_s20  ;;  %4672 = vrcp.f32 %v1463_v41  ;;  %vm1472_vm2 = vweird.f32 %v1463_v41  ;;  %v1478_v44 = vand.u32 2147483648, %v1463_v41  ;;  %v1476_v48 = vand.u32 2147483647, %v1463_v41 }
 0x5fd   : > { %v1479_v59 = vor.u32 1.1754944e-38, %v1478_v44  ;;  %vm1477_vm8 = vcmp.eq.f32.partialorder %v1476_v48, 8.507059e+37 }
 0x601   : > { %v4673_v31 = vpop.eup %4672 }
 0x602   : > { %1868 = vrot.lane.b32.xlu2 %v5306_v21, %s4856_s20  ;;  %v5411_v27 = vpop.xlane.xlu1 %1563  ;;  %v1468_v33 = vmul.f32 %v4673_v31, %v1463_v41  ;;  %vm1473_vm1 = vweird.f32 %v4673_v31 }
 0x603   : > { %1936 = vrot.lane.b32.xlu1 %v5253_v54, %s4857_s30  ;;  %4674 = vrcp.f32 %v5411_v27  ;;  %vm5421_vm4 = vmor %vm1472_vm2, %vm1473_vm1  ;;  %v1590_v6 = vand.u32 2147483648, %v5411_v27  ;;  %vm1584_vm11 = vweird.f32 %v5411_v27  ;;  %v1588_v9 = vand.u32 2147483647, %v5411_v27 }
 0x604   : > { %v1469_v35 = vsub.f32 1.0, %v1468_v33 }
 0x605   : > { %v1591_v16 = vor.u32 1.1754944e-38, %v1590_v6  ;;  %vm1589_vm15 = vcmp.eq.f32.partialorder %v1588_v9, 8.507059e+37 }
 0x608   : > { %1835 = vadd.xlane.f32.xlu0 %v1834_v13 }
 0x609   : > { %v5414_v54 = vpop.eup %4674 }
 0x60a   : > { %2033 = vrot.lane.b32.xlu2 %v5276_v32, %s4857_s30  ;;  %v1580_v37 = vmul.f32 %v5414_v54, %v5411_v27  ;;  %v1470_v32 = vmul.f32 %v4673_v31, %v1469_v35  ;;  %vm1585_vm9 = vweird.f32 %v5414_v54 }
 0x60b   : > { %2031 = vrot.lane.b32.xlu1 %v5270_v28, %s4857_s30  ;;  %vm5443_vm12 = vmor %vm1584_vm11, %vm1585_vm9 }
 0x60c   : > { %v1581_v28 = vsub.f32 1.0, %v1580_v37  ;;  %v1471_v45 = vadd.f32 %v4673_v31, %v1470_v32 }
 0x60e   : > { %v1582_v56 = vmul.f32 %v5414_v54, %v1581_v28  ;;  %v1475_v57 = vsel %vm5421_vm4, %v4673_v31, %v1471_v45 }
 0x60f   : > { %v1480_v5 = vsel %vm1477_vm8, %v1479_v59, %v1475_v57 }
 0x610   : > { %v1583_v0 = vadd.f32 %v5414_v54, %v1582_v56  ;;  %v1495_v18 = vmul.f32 %v5350_v20, %v1480_v5 }
 0x612   : > { %v1587_v1 = vsel %vm5443_vm12, %v5414_v54, %v1583_v0 }
 0x613   : > { %v1592_v20 = vsel %vm1589_vm15, %v1591_v16, %v1587_v1 }
 0x614   : > { %v1594_v37 = vmul.f32 %v5354_v22, %v1592_v20 }
 0x63d   : > { %v1466_v34 = vpop.xlane.xlu0 %1465 }
 0x63e   : > { %4676 = vrcp.f32 %v1466_v34  ;;  %v1492_v47 = vand.u32 2147483648, %v1466_v34  ;;  %v1490_v52 = vand.u32 2147483647, %v1466_v34  ;;  %vm1486_vm5 = vweird.f32 %v1466_v34 }
 0x640   : > { %v1493_v61 = vor.u32 1.1754944e-38, %v1492_v47  ;;  %vm1491_vm10 = vcmp.eq.f32.partialorder %v1490_v52, 8.507059e+37 }
 0x644   : > { %v4677_v38 = vpop.eup %4676 }
 0x645   : > { %v1482_v40 = vmul.f32 %v4677_v38, %v1466_v34  ;;  %v5418_v23 = vpop.xlane.xlu2 %1560  ;;  %vm1487_vm3 = vweird.f32 %v4677_v38 }
 0x646   : > { %4678 = vrcp.f32 %v5418_v23  ;;  %vm1488_vm6 = vmor %vm1486_vm5, %vm1487_vm3  ;;  %v1576_v17 = vand.u32 2147483648, %v5418_v23  ;;  %v1574_v24 = vand.u32 2147483647, %v5418_v23  ;;  %vm1570_vm0 = vweird.f32 %v5418_v23 }
 0x647   : > { %v1483_v36 = vsub.f32 1.0, %v1482_v40 }
 0x648   : > { %vm1575_vm2 = vcmp.eq.f32.partialorder %v1574_v24, 8.507059e+37 }
 0x649   : > { %v1484_v49 = vmul.f32 %v4677_v38, %v1483_v36 }
 0x64b   : > { %v1485_v58 = vadd.f32 %v4677_v38, %v1484_v49 }
 0x64c   : > { %v4679_v62 = vpop.eup %4678 }
 0x64d   : > { %v1489_v63 = vsel %vm1488_vm6, %v4677_v38, %v1485_v58  ;;  %v1566_v2 = vmul.f32 %v4679_v62, %v5418_v23  ;;  %v5431_v3 = vpop.xlane.xlu2 %1737  ;;  %v5433_v4 = vpop.xlane.xlu1 %1740  ;;  %vm1571_vm13 = vweird.f32 %v4679_v62 }
 0x64e   : > { %v1494_v7 = vsel %vm1491_vm10, %v1493_v61, %v1489_v63  ;;  %4680 = vrcp.f32 %v5431_v3  ;;  %vm1572_vm1 = vmor %vm1570_vm0, %vm1571_vm13  ;;  %vm1747_vm5 = vweird.f32 %v5431_v3  ;;  %v1753_v22 = vand.u32 2147483648, %v5431_v3 }
 0x64f   : > { %v1567_v10 = vsub.f32 1.0, %v1566_v2  ;;  %4682 = vrcp.f32 %v5433_v4  ;;  %v1496_v19 = vmul.f32 %v5362_v50, %v1494_v7  ;;  %v1577_v50 = vor.u32 1.1754944e-38, %v1576_v17 }
 0x650   : > { %v1500_v11 = vpop.permute.xlu0 %1499  ;;  %v1751_v52 = vand.u32 2147483647, %v5431_v3  ;;  %vm1761_vm8 = vweird.f32 %v5433_v4  ;;  %v1765_v55 = vand.u32 2147483647, %v5433_v4 }
 0x651   : > { %1512 = vmatpush.bf16.msrb.mxu1 %v1500_v11  ;;  %v1568_v51 = vmul.f32 %v4679_v62, %v1567_v10  ;;  %v1497_v43 = vpack.c.bf16 %v1496_v19, %v1495_v18 }
 0x652   : > { %vm1752_vm10 = vcmp.eq.f32.partialorder %v1751_v52, 8.507059e+37  ;;  %vm1766_vm11 = vcmp.eq.f32.partialorder %v1765_v55, 8.507059e+37 }
 0x653   : > { %v1569_v13 = vadd.f32 %v4679_v62, %v1568_v51 }
 0x654   : > { %v4681_v41 = vpop.eup %4680  ;;  %4087 = vmatmul.msk.bf16.vlgmr.msrb.gmra.mxu1 %vm1257_vm14, %v1497_v43 }
 0x655   : > { %1685 = vmatpush.bf16.msra.mxu1 %v4464_v8  ;;  %v4683_v27 = vpop.eup %4682  ;;  %v1573_v31 = vsel %vm1572_vm1, %v4679_v62, %v1569_v13  ;;  %v1743_v33 = vmul.f32 %v4681_v41, %v5431_v3  ;;  %v1598_v34 = vpop.permute.xlu2 %1597  ;;  %vm1748_vm3 = vweird.f32 %v4681_v41  ;;  %v1754_v62 = vor.u32 1.1754944e-38, %v1753_v22 }
 0x656   : > { %v1578_v54 = vsel %vm1575_vm2, %v1577_v50, %v1573_v31  ;;  %v1757_v35 = vmul.f32 %v4683_v27, %v5433_v4  ;;  %1610 = vmatpush.bf16.msra.mxu3 %v1598_v34  ;;  %vm1762_vm4 = vweird.f32 %v4683_v27  ;;  %vm5466_vm6 = vmor %vm1747_vm5, %vm1748_vm3  ;;  %v1833_v56 = vpop.xlane.xlu1 %1832  ;;  %v1410_v59 = vpop.f32.mrf.mxu3 }
 0x657   : > { %v1593_v32 = vmul.f32 %v5372_v14, %v1578_v54  ;;  %v1744_v38 = vsub.f32 1.0, %v1743_v33  ;;  %v1767_v14 = vand.u32 2147483648, %v5433_v4  ;;  %vm1763_vm9 = vmor %vm1761_vm8, %vm1762_vm4  ;;  %4684 = vrcp.f32 %v1833_v56 }
 0x658   : > { %v1758_v40 = vsub.f32 1.0, %v1757_v35  ;;  %v1848_v18 = vand.u32 2147483648, %v1833_v56  ;;  %vm1842_vm13 = vweird.f32 %v1833_v56  ;;  %v1846_v1 = vand.u32 2147483647, %v1833_v56 }
 0x659   : > { %1686 = vmatpush.bf16.msra.mxu1 %v4463_v25  ;;  %v1595_v28 = vpack.c.bf16 %v1594_v37, %v1593_v32  ;;  %v1745_v23 = vmul.f32 %v4681_v41, %v1744_v38  ;;  %v1768_v63 = vor.u32 1.1754944e-38, %v1767_v14  ;;  %v4466_v37 = vld [vmem:[%s5056_s26 + $0x18] sm:$0xff]  ;;  %v4465_v32 = vld [vmem:[%s5056_s26 + $0x10] sm:$0xff] }
 0x65a   : > { %v1759_v45 = vmul.f32 %v4683_v27, %v1758_v40  ;;  %v1849_v13 = vor.u32 1.1754944e-38, %v1848_v18  ;;  %vm1847_vm1 = vcmp.eq.f32.partialorder %v1846_v1, 8.507059e+37  ;;  %1648 = vmatpush.bf16.msra.mxu0 %v4466_v37  ;;  %v4468_v40 = vld [vmem:[%s5056_s26 + $0x28] sm:$0xff] }
 0x65b   : > { %4089 = vmatmul.msk.bf16.vlgmr.msra.gmra.mxu3 %vm1257_vm14, %v1595_v28  ;;  %v1746_v47 = vadd.f32 %v4681_v41, %v1745_v23 }
 0x65c   : > { %v1760_v48 = vadd.f32 %v4683_v27, %v1759_v45 }
 0x65d   : > { %v1939_v36 = vpop.permute.xlu2 %1938  ;;  %v1750_v57 = vsel %vm5466_vm6, %v4681_v41, %v1746_v47  ;;  %v4685_v6 = vpop.eup %4684 }
 0x65e   : > { %v1944_v44 = vsel %vm1234_vm7, %v1939_v36, 0  ;;  %v1764_v58 = vsel %vm1763_vm9, %v4683_v27, %v1760_v48  ;;  %v1755_v0 = vsel %vm1752_vm10, %v1754_v62, %v1750_v57  ;;  %v1838_v9 = vmul.f32 %v4685_v6, %v1833_v56  ;;  %1649 = vmatpush.bf16.msra.mxu0 %v4465_v32 }
 0x65f   : > { %1953 = vmatpush.bf16.xpose.msrb.mxu1 %v1944_v44  ;;  %v1769_v2 = vsel %vm1766_vm11, %v1768_v63, %v1764_v58  ;;  %v1770_v3 = vmul.f32 %v5378_v12, %v1755_v0  ;;  %vm1843_vm12 = vweird.f32 %v4685_v6 }
 0x660   : > { %v1771_v4 = vmul.f32 %v5380_v60, %v1769_v2  ;;  %v1839_v12 = vsub.f32 1.0, %v1838_v9  ;;  %vm1844_vm15 = vmor %vm1842_vm13, %vm1843_vm12 }
 0x662   : > { %v1772_v5 = vpack.c.bf16 %v1771_v4, %v1770_v3  ;;  %v1840_v60 = vmul.f32 %v4685_v6, %v1839_v12  ;;  %1919 = vmatpush.bf16.msrb.mxu0 %v4468_v40 }
 0x664   : > { %4112 = vmatmul.msk.bf16.vlgmr.msra.gmra.mxu1 %vm1234_vm7, %v1415_v30  ;;  %v1412_v30 = vpop.f32.mrf.mxu3  ;;  %v1841_v15 = vadd.f32 %v4685_v6, %v1840_v60 }
 0x665   : > { %v1869_v61 = vpop.permute.xlu2 %1868  ;;  %v1416_v8 = vpack.c.bf16 %v1412_v30, %v1410_v59 }
 0x666   : > { %v1845_v25 = vsel %vm1844_vm15, %v4685_v6, %v1841_v15 }
 0x667   : > { %v1850_v20 = vsel %vm1847_vm1, %v1849_v13, %v1845_v25 }
 0x668   : > { %v1865_v33 = vmul.f32 %v5388_v42, %v1850_v20  ;;  %v4467_v42 = vld [vmem:[%s5056_s26 + $0x20] sm:$0xff] }
 0x669   : > { %1920 = vmatpush.bf16.msrb.mxu0 %v4467_v42 }
 0x66d   : > { %v1774_v26 = vpop.permute.xlu1 %1773  ;;  %v2034_v29 = vpop.permute.xlu2 %2033 }
 0x66e   : > { %1786 = vmatpush.bf16.msrb.mxu3 %v1774_v26  ;;  %v2039_v7 = vsel %vm1234_vm7, %v2034_v29, 0 }
 0x671   : > { %4115 = vmatmul.msk.bf16.vlgmr.msrb.gmra.mxu3 %vm1257_vm14, %v1772_v5 }
 0x672   : > { %1881 = vmatpush.bf16.msra.mxu3 %v1869_v61 }
 0x674   : > { %4113 = vmatmul.msk.bf16.gmra.mxu1 %vm1234_vm7, %v1416_v8 }
 0x675   : > { %v1937_v19 = vpop.permute.xlu1 %1936 }
 0x676   : > { %2048 = vmatpush.bf16.xpose.msrb.mxu3 %v2039_v7 }
 0x67b   : > { %v1836_v10 = vpop.xlane.xlu0 %1835 }
 0x67c   : > { %4686 = vrcp.f32 %v1836_v10  ;;  %v1862_v24 = vand.u32 2147483648, %v1836_v10  ;;  %v1860_v43 = vand.u32 2147483647, %v1836_v10  ;;  %vm1856_vm2 = vweird.f32 %v1836_v10 }
 0x67d   : > { %v2032_v35 = vpop.permute.xlu1 %2031 }
 0x67e   : > { %v1863_v50 = vor.u32 1.1754944e-38, %v1862_v24  ;;  %vm1861_vm4 = vcmp.eq.f32.partialorder %v1860_v43, 8.507059e+37 }
 0x682   : > { %v4687_v11 = vpop.eup %4686 }
 0x683   : > { %v1852_v17 = vmul.f32 %v4687_v11, %v1836_v10  ;;  %vm1857_vm0 = vweird.f32 %v4687_v11 }
 0x684   : > { %4132 = vmatmul.msk.bf16.vlgmr.msrb.gmra.mxu1 %vm1234_vm7, %v1937_v19  ;;  %vm1858_vm3 = vmor %vm1856_vm2, %vm1857_vm0 }
 0x685   : > { %v1853_v51 = vsub.f32 1.0, %v1852_v17 }
 0x687   : > { %v1854_v16 = vmul.f32 %v4687_v11, %v1853_v51 }
 0x689   : > { %v1855_v41 = vadd.f32 %v4687_v11, %v1854_v16 }
 0x68b   : > { %v1859_v27 = vsel %vm1858_vm3, %v4687_v11, %v1855_v41 }
 0x68c   : > { %v1864_v31 = vsel %vm1861_vm4, %v1863_v50, %v1859_v27 }
 0x68d   : > { %v1866_v34 = vmul.f32 %v5401_v46, %v1864_v31 }
 0x68f   : > { %v1867_v54 = vpack.c.bf16 %v1866_v34, %v1865_v33 }
 0x691   : > { %4117 = vmatmul.msk.bf16.vlgmr.msra.gmra.mxu3 %vm1257_vm14, %v1867_v54 }
 0x6a1   : > { %4134 = vmatmul.msk.bf16.vlgmr.msrb.gmra.mxu3 %vm1234_vm7, %v2032_v35 }
 0x6d1   : > { %v1514_v38 = vpop.f32.mrf.mxu1 }
 0x6d9   : > { %v1516_v28 = vpop.f32.mrf.mxu1 }
 0x6da   : > { %v1617_v23 = vpack.c.bf16 %v1516_v28, %v1514_v38 }
 0x6dc   : > { %4102 = vmatmul.msk.bf16.vlgmr.msra.gmra.mxu0 %vm1234_vm7, %v1617_v23 }
 0x6de   : > { %v1612_v45 = vpop.f32.mrf.mxu3 }
 0x6e1   : > { %v5494_v46 = vpop.f32.mrf.mxu1 }
 0x6e6   : > { %v1614_v36 = vpop.f32.mrf.mxu3 }
 0x6e7   : > { %v1618_v47 = vpack.c.bf16 %v1614_v36, %v1612_v45 }
 0x6e9   : > { %v5496_v44 = vpop.f32.mrf.mxu1 }
 0x6ec   : > { %4103 = vmatmul.msk.bf16.gmra.mxu0 %vm1234_vm7, %v1618_v47 }
 0x6f1   : > { %v5499_v48 = vpop.f32.mrf.mxu1 }
 0x6f4   : > { %v1788_v22 = vpop.f32.mrf.mxu3 }
 0x6f9   : > { %v5501_v14 = vpop.f32.mrf.mxu1 }
 0x6fc   : > { %v1790_v49 = vpop.f32.mrf.mxu3 }
 0x6fd   : > { %v1888_v52 = vpack.c.bf16 %v1790_v49, %v1788_v22 }
 0x6ff   : > { %4130 = vmatmul.msk.bf16.vlgmr.msrb.gmra.mxu0 %vm1234_vm7, %v1888_v52 }
 0x701   : > { %v1955_v55 = vpop.f32.mrf.mxu1 }
 0x702   : > { %v1960_v56 = vmul.f32 0.17677669, %v1955_v55 }
 0x704   : > { %v1962_v57 = vsel %vm1257_vm14, %v1960_v56, -inf }
 0x705   : > { %1963 = vmax.xlane.f32.xlu2 %v1962_v57 }
 0x709   : > { %v1957_v58 = vpop.f32.mrf.mxu1 }
 0x70a   : > { %v1961_v59 = vmul.f32 0.17677669, %v1957_v58 }
 0x70c   : > { %v1965_v61 = vsel %vm1257_vm14, %v1961_v59, -inf }
 0x70d   : > { %1966 = vmax.xlane.f32.xlu0 %v1965_v61 }
 0x714   : > { %v1883_v62 = vpop.f32.mrf.mxu3 }
 0x71c   : > { %v1885_v63 = vpop.f32.mrf.mxu3 }
 0x71d   : > { %v1889_v0 = vpack.c.bf16 %v1885_v63, %v1883_v62 }
 0x71f   : > { %4131 = vmatmul.msk.bf16.gmra.mxu0 %vm1234_vm7, %v1889_v0 }
 0x724   : > { %v2050_v2 = vpop.f32.mrf.mxu3 }
 0x725   : > { %v2055_v3 = vmul.f32 0.17677669, %v2050_v2 }
 0x727   : > { %v2057_v4 = vsel %vm1257_vm14, %v2055_v3, -inf }
 0x728   : > { %2058 = vmax.xlane.f32.xlu1 %v2057_v4 }
 0x72c   : > { %v2052_v26 = vpop.f32.mrf.mxu3 }
 0x72d   : > { %v2056_v29 = vmul.f32 0.17677669, %v2052_v26 }
 0x72f   : > { %v2060_v30 = vsel %vm1257_vm14, %v2056_v29, -inf }
 0x730   : > { %2061 = vmax.xlane.f32.xlu0 %v2060_v30 }
 0x778   : > { %v1964_v5 = vpop.xlane.xlu2 %1963 }
 0x779   : > { %v1968_v7 = vsub.f32 %v1960_v56, %v1964_v5 }
 0x77b   : > { %v1970_v8 = vmul.f32 1.442695, %v1968_v7 }
 0x77d   : > { %4688 = vpow2.f32 %v1970_v8 }
 0x780   : > { %v1967_v6 = vpop.xlane.xlu0 %1966 }
 0x781   : > { %v1969_v9 = vsub.f32 %v1961_v59, %v1967_v6 }
 0x783   : > { %v4689_v12 = vpop.eup %4688  ;;  %v1972_v10 = vmul.f32 1.442695, %v1969_v9 }
 0x784   : > { %v1974_v60 = vsel %vm1257_vm14, %v4689_v12, 0.0 }
 0x785   : > { %4690 = vpow2.f32 %v1972_v10  ;;  %1975 = vadd.xlane.f32.xlu0 %v1974_v60 }
 0x78b   : > { %v4691_v11 = vpop.eup %4690 }
 0x78c   : > { %v1977_v15 = vsel %vm1257_vm14, %v4691_v11, 0.0 }
 0x78d   : > { %1978 = vadd.xlane.f32.xlu0 %v1977_v15 }
 0x79b   : > { %v2059_v17 = vpop.xlane.xlu1 %2058 }
 0x79c   : > { %v2063_v18 = vsub.f32 %v2055_v3, %v2059_v17 }
 0x79e   : > { %v2065_v19 = vmul.f32 1.442695, %v2063_v18 }
 0x7a0   : > { %4692 = vpow2.f32 %v2065_v19 }
 0x7a1   : > { %2011 = vrot.lane.b32.xlu0 %v5251_v53, %s4857_s30 }
 0x7a3   : > { %v2062_v1 = vpop.xlane.xlu0 %2061 }
 0x7a4   : > { %v2064_v51 = vsub.f32 %v2056_v29, %v2062_v1  ;;  %v4470_v1 = vld [vmem:[%s5056_s26 + $0x38] sm:$0xff] }
 0x7a6   : > { %v5513_v24 = vpop.eup %4692  ;;  %v2067_v25 = vmul.f32 1.442695, %v2064_v51  ;;  %v4469_v51 = vld [vmem:[%s5056_s26 + $0x30] sm:$0xff] }
 0x7a7   : > { %v2069_v16 = vsel %vm1257_vm14, %v5513_v24, 0.0 }
 0x7a8   : > { %4694 = vpow2.f32 %v2067_v25  ;;  %2070 = vadd.xlane.f32.xlu2 %v2069_v16 }
 0x7ae   : > { %v5517_v43 = vpop.eup %4694 }
 0x7af   : > { %v2072_v13 = vsel %vm1257_vm14, %v5517_v43, 0.0 }
 0x7b0   : > { %2073 = vadd.xlane.f32.xlu1 %v2072_v13 }
 0x7c0   : > { %2106 = vrot.lane.b32.xlu2 %v5306_v21, %s4857_s30 }
 0x7f8   : > { %v1976_v53 = vpop.xlane.xlu0 %1975 }
 0x7f9   : > { %4696 = vrcp.f32 %v1976_v53  ;;  %v1991_v35 = vand.u32 2147483648, %v1976_v53  ;;  %vm1985_vm6 = vweird.f32 %v1976_v53  ;;  %v1989_v37 = vand.u32 2147483647, %v1976_v53 }
 0x7fb   : > { %v1992_v23 = vor.u32 1.1754944e-38, %v1991_v35  ;;  %vm1990_vm10 = vcmp.eq.f32.partialorder %v1989_v37, 8.507059e+37  ;;  %v4626_v37 = vld [vmem:[%s6581_s8] ss:$0 sm:$0xff] }
 0x7ff   : > { %v4697_v41 = vpop.eup %4696 }
 0x800   : > { %v1981_v20 = vmul.f32 %v4697_v41, %v1976_v53  ;;  %v1979_v50 = vpop.xlane.xlu0 %1978  ;;  %vm1986_vm5 = vweird.f32 %v4697_v41 }
 0x801   : > { %4698 = vrcp.f32 %v1979_v50  ;;  %vm1987_vm8 = vmor %vm1985_vm6, %vm1986_vm5  ;;  %v2005_v38 = vand.u32 2147483648, %v1979_v50  ;;  %v2003_v28 = vand.u32 2147483647, %v1979_v50  ;;  %vm1999_vm11 = vweird.f32 %v1979_v50 }
 0x802   : > { %v1982_v27 = vsub.f32 1.0, %v1981_v20 }
 0x803   : > { %v2006_v36 = vor.u32 1.1754944e-38, %v2005_v38  ;;  %vm2004_vm13 = vcmp.eq.f32.partialorder %v2003_v28, 8.507059e+37 }
 0x804   : > { %v1983_v31 = vmul.f32 %v4697_v41, %v1982_v27 }
 0x806   : > { %v1984_v34 = vadd.f32 %v4697_v41, %v1983_v31 }
 0x807   : > { %v4699_v33 = vpop.eup %4698 }
 0x808   : > { %v1995_v54 = vmul.f32 %v4699_v33, %v1979_v50  ;;  %v1988_v40 = vsel %vm1987_vm8, %v4697_v41, %v1984_v34  ;;  %vm2000_vm9 = vweird.f32 %v4699_v33 }
 0x809   : > { %v1993_v45 = vsel %vm1990_vm10, %v1992_v23, %v1988_v40  ;;  %vm2001_vm12 = vmor %vm1999_vm11, %vm2000_vm9 }
 0x80a   : > { %v1996_v32 = vsub.f32 1.0, %v1995_v54  ;;  %v2008_v49 = vmul.f32 %v4689_v12, %v1993_v45  ;;  %v4745_v45 = vld [vmem:[#allocation2] sm:$0xff] }
 0x80c   : > { %v1997_v21 = vmul.f32 %v4699_v33, %v1996_v32  ;;  %v4744_v32 = vld [vmem:[#allocation2 + $0x10] sm:$0xff] }
 0x80e   : > { %v1998_v42 = vadd.f32 %v4699_v33, %v1997_v21 }
 0x810   : > { %v2002_v47 = vsel %vm2001_vm12, %v4699_v33, %v1998_v42 }
 0x811   : > { %v2007_v22 = vsel %vm2004_vm13, %v2006_v36, %v2002_v47 }
 0x812   : > { %v2009_v52 = vmul.f32 %v4691_v11, %v2007_v22 }
 0x813   : > { %v2012_v55 = vpop.permute.xlu0 %2011 }
 0x814   : > { %2024 = vmatpush.bf16.msra.mxu2 %v2012_v55  ;;  %v2010_v56 = vpack.c.bf16 %v2009_v52, %v2008_v49 }
 0x817   : > { %4133 = vmatmul.msk.bf16.vlgmr.msra.gmra.mxu2 %vm1257_vm14, %v2010_v56 }
 0x818   : > { %2157 = vmatpush.bf16.msrb.mxu2 %v4470_v1  ;;  %v4499_v1 = vld [vmem:[%s5080_s29 + $0xe4] sm:$0xf] }
 0x81b   : > { %v2071_v57 = vpop.xlane.xlu2 %2070 }
 0x81c   : > { %4700 = vrcp.f32 %v2071_v57  ;;  %v2086_v26 = vand.u32 2147483648, %v2071_v57  ;;  %vm2080_vm0 = vweird.f32 %v2071_v57  ;;  %v2084_v29 = vand.u32 2147483647, %v2071_v57  ;;  %2158 = vmatpush.bf16.msrb.mxu2 %v4469_v51 }
 0x81e   : > { %v2087_v9 = vor.u32 1.1754944e-38, %v2086_v26  ;;  %vm2085_vm3 = vcmp.eq.f32.partialorder %v2084_v29, 8.507059e+37 }
 0x822   : > { %v4701_v58 = vpop.eup %4700 }
 0x823   : > { %v2076_v59 = vmul.f32 %v4701_v58, %v2071_v57  ;;  %v2107_v61 = vpop.permute.xlu2 %2106  ;;  %v2074_v62 = vpop.xlane.xlu1 %2073  ;;  %vm2081_vm15 = vweird.f32 %v4701_v58 }
 0x824   : > { %4702 = vrcp.f32 %v2074_v62  ;;  %2119 = vmatpush.bf16.msra.mxu1 %v2107_v61  ;;  %vm2082_vm1 = vmor %vm2080_vm0, %vm2081_vm15  ;;  %v2100_v5 = vand.u32 2147483648, %v2074_v62  ;;  %v2098_v6 = vand.u32 2147483647, %v2074_v62  ;;  %vm2094_vm4 = vweird.f32 %v2074_v62 }
 0x825   : > { %v2077_v63 = vsub.f32 1.0, %v2076_v59 }
 0x826   : > { %v2101_v60 = vor.u32 1.1754944e-38, %v2100_v5  ;;  %vm2099_vm6 = vcmp.eq.f32.partialorder %v2098_v6, 8.507059e+37 }
 0x827   : > { %v2078_v0 = vmul.f32 %v4701_v58, %v2077_v63 }
 0x829   : > { %v2079_v3 = vadd.f32 %v4701_v58, %v2078_v0 }
 0x82a   : > { %v4703_v2 = vpop.eup %4702 }
 0x82b   : > { %v2090_v4 = vmul.f32 %v4703_v2, %v2074_v62  ;;  %v2083_v7 = vsel %vm2082_vm1, %v4701_v58, %v2079_v3  ;;  %vm2095_vm2 = vweird.f32 %v4703_v2 }
 0x82c   : > { %v2088_v10 = vsel %vm2085_vm3, %v2087_v9, %v2083_v7  ;;  %vm2096_vm5 = vmor %vm2094_vm4, %vm2095_vm2 }
 0x82d   : > { %v2091_v30 = vsub.f32 1.0, %v2090_v4  ;;  %v2103_v17 = vmul.f32 %v5513_v24, %v2088_v10  ;;  %v1651_v24 = vpop.f32.mrf.mxu0 }
 0x82e   : > { %v1689_v33 = vadd.f32 %v5494_v46, %v1651_v24  ;;  %v4274_v24 = vld [vmem:[%s5080_s29 + $0xf8] sm:$0xf0] }
 0x82f   : > { %v2092_v8 = vmul.f32 %v4703_v2, %v2091_v30 }
 0x831   : > { %v2093_v12 = vadd.f32 %v4703_v2, %v2092_v8 }
 0x833   : > { %v2097_v11 = vsel %vm2096_vm5, %v4703_v2, %v2093_v12  ;;  %v4747_v2 = vld [vmem:[#allocation2 + $0x8] sm:$0xff] }
 0x834   : > { %v2102_v15 = vsel %vm2099_vm6, %v2101_v60, %v2097_v11 }
 0x835   : > { %v2104_v18 = vmul.f32 %v5517_v43, %v2102_v15  ;;  %v1653_v43 = vpop.f32.mrf.mxu0 }
 0x836   : > { %v1691_v21 = vadd.f32 %v5496_v44, %v1653_v43  ;;  %v4746_v44 = vld [vmem:[#allocation2 + $0x18] sm:$0xff] }
 0x837   : > { %v2105_v19 = vpack.c.bf16 %v2104_v18, %v2103_v17  ;;  %v4264_v18 = vld [vmem:[%s5080_s29 + $0xe0] sm:$0xf] }
 0x839   : > { %4135 = vmatmul.msk.bf16.vlgmr.msra.gmra.mxu1 %vm1257_vm14, %v2105_v19  ;;  %v4501_v19 = vld [vmem:[%s5080_s29 + $0xec] sm:$0xf0] }
 0x83a   : > { %v4265_v51 = vor.u32 %v4501_v19, %v4264_v18 }
 0x83c   : > { %2486 = vmatpush.bf16.msra.mxu0 %v4265_v51  ;;  %v4210_v51 = vld [vmem:[%s5080_s29 + $0x78] sm:$0xf0] }
 0x83d   : > { %v1656_v50 = vpop.f32.mrf.mxu0 }
 0x83e   : > { %v1694_v49 = vadd.f32 %v5499_v48, %v1656_v50  ;;  %v4248_v50 = vld [vmem:[%s5080_s29 + $0xc0] sm:$0xf] }
 0x845   : > { %v1658_v27 = vpop.f32.mrf.mxu0 }
 0x846   : > { %v1696_v59 = vadd.f32 %v5501_v14, %v1658_v27  ;;  %v4497_v27 = vld [vmem:[%s5080_s29 + $0xcc] sm:$0xf0] }
 0x84d   : > { %v1922_v31 = vpop.f32.mrf.mxu0 }
 0x84e   : > { %v1932_v34 = vadd.f32 %v1922_v31, %v1689_v33  ;;  %v4495_v31 = vld [vmem:[%s5080_s29 + $0xc4] sm:$0xf]  ;;  %v4249_v33 = vor.u32 %v4497_v27, %v4248_v50 }
 0x850   : > { %2487 = vmatpush.bf16.msra.mxu0 %v4249_v33  ;;  %v4194_v33 = vld [vmem:[%s5080_s29 + $0x58] sm:$0xf0] }
 0x855   : > { %v1924_v40 = vpop.f32.mrf.mxu0 }
 0x856   : > { %v1933_v23 = vadd.f32 %v1924_v40, %v1691_v21  ;;  %v4258_v40 = vld [vmem:[%s5080_s29 + $0xd8] sm:$0xf0] }
 0x85d   : > { %v1927_v22 = vpop.f32.mrf.mxu0 }
 0x85e   : > { %v1934_v52 = vadd.f32 %v1927_v22, %v1694_v49  ;;  %v4240_v22 = vld [vmem:[%s5080_s29 + $0xa8] sm:$0xf]  ;;  %v4494_v49 = vld [vmem:[%s5080_s29 + $0xb4] sm:$0xf0] }
 0x865   : > { %v1929_v58 = vpop.f32.mrf.mxu0 }
 0x866   : > { %v1935_v62 = vadd.f32 %v1929_v58, %v1696_v59  ;;  %v4216_v58 = vld [vmem:[%s5080_s29 + $0x80] sm:$0xf]  ;;  %v4489_v59 = vld [vmem:[%s5080_s29 + $0x8c] sm:$0xf0] }
 0x89a   : > { %v2026_v25 = vpop.f32.mrf.mxu2 }
 0x8a2   : > { %v2028_v16 = vpop.f32.mrf.mxu2 }
 0x8a3   : > { %v2126_v13 = vpack.c.bf16 %v2028_v16, %v2026_v25  ;;  %v4266_v25 = vld [vmem:[%s5080_s29 + $0xf0] sm:$0xf0]  ;;  %v4272_v16 = vld [vmem:[%s5080_s29 + $0xe8] sm:$0xf] }
 0x8a5   : > { %4148 = vmatmul.msk.bf16.vlgmr.msrb.gmra.mxu2 %vm1234_vm7, %v2126_v13  ;;  %v4502_v13 = vld [vmem:[%s5080_s29 + $0xf4] sm:$0xf0] }
 0x8b6   : > { %v2121_v53 = vpop.f32.mrf.mxu1 }
 0x8be   : > { %v2123_v41 = vpop.f32.mrf.mxu1 }
 0x8bf   : > { %v2127_v20 = vpack.c.bf16 %v2123_v41, %v2121_v53  ;;  %v4269_v53 = vor.u32 %v4499_v1, %v4266_v25  ;;  %v4273_v41 = vor.u32 %v4502_v13, %v4272_v16  ;;  %v4484_v1 = vld [vmem:[%s5080_s29 + $0x6c] sm:$0xf]  ;;  %v4184_v16 = vld [vmem:[%s5080_s29 + $0x40] sm:$0xf]  ;;  %v4481_v13 = vld [vmem:[%s5080_s29 + $0x4c] sm:$0xf0] }
 0x8c0   : > { %v4213_v25 = vor.u32 %v4484_v1, %v4210_v51 }
 0x8c1   : > { %4149 = vmatmul.msk.bf16.gmra.mxu2 %vm1234_vm7, %v2127_v20  ;;  %v4500_v20 = vld [vmem:[%s5080_s29 + $0xec] sm:$0xf]  ;;  %2505 = vmatpush.bf16.msra.mxu3 %v4269_v53  ;;  %v4479_v53 = vld [vmem:[%s5080_s29 + $0x44] sm:$0xf] }
 0x8c2   : > { %v4277_v43 = vor.u32 %v4500_v20, %v4274_v24  ;;  %2524 = vmatpush.bf16.msrb.mxu1 %v4273_v41  ;;  %v4185_v41 = vor.u32 %v4481_v13, %v4184_v16  ;;  %v4186_v20 = vld [vmem:[%s5080_s29 + $0x50] sm:$0xf0]  ;;  %v4192_v24 = vld [vmem:[%s5080_s29 + $0x48] sm:$0xf]  ;;  %v4627_v13 = vld [vmem:[%s6582_s16] ss:$0 sm:$0xff] }
 0x8c3   : > { %v4189_v50 = vor.u32 %v4479_v53, %v4186_v20 }
 0x8c4   : > { %2543 = vmatpush.bf16.msra.mxu2 %v4277_v43  ;;  %v4482_v43 = vld [vmem:[%s5080_s29 + $0x54] sm:$0xf0] }
 0x8c5   : > { %v4193_v27 = vor.u32 %v4482_v43, %v4192_v24 }
 0x928   : > { %v2160_v54 = vpop.f32.mrf.mxu2 }
 0x929   : > { %v2170_v35 = vadd.f32 %v2160_v54, %v1932_v34  ;;  %v4250_v34 = vld [vmem:[%s5080_s29 + $0xd0] sm:$0xf0]  ;;  %v4256_v54 = vld [vmem:[%s5080_s29 + $0xc8] sm:$0xf] }
 0x92b   : > { %v2174_v38 = vadd.f32 %v4744_v32, %v2170_v35  ;;  %v4498_v35 = vld [vmem:[%s5080_s29 + $0xd4] sm:$0xf0] }
 0x92c   : > { %v4257_v32 = vor.u32 %v4498_v35, %v4256_v54  ;;  %v4168_v54 = vld [vmem:[%s5080_s29 + $0x20] sm:$0xf]  ;;  %v4477_v35 = vld [vmem:[%s5080_s29 + $0x2c] sm:$0xf0] }
 0x92d   : > { %v5538_v28 = vadd.f32 %v4626_v37, %v2174_v38  ;;  %v4496_v38 = vld [vmem:[%s5080_s29 + $0xcc] sm:$0xf] }
 0x92e   : > { %v4261_v21 = vor.u32 %v4496_v38, %v4258_v40  ;;  %2525 = vmatpush.bf16.msrb.mxu1 %v4257_v32  ;;  %v4169_v38 = vor.u32 %v4477_v35, %v4168_v54  ;;  %v4170_v40 = vld [vmem:[%s5080_s29 + $0x30] sm:$0xf0] }
 0x92f   : > { %2188 = vadd.xlane.f32.xlu1 %v5538_v28 }
 0x930   : > { %v2162_v42 = vpop.f32.mrf.mxu2  ;;  %2544 = vmatpush.bf16.msra.mxu2 %v4261_v21  ;;  %v4176_v21 = vld [vmem:[%s5080_s29 + $0x28] sm:$0xf] }
 0x931   : > { %v2171_v46 = vadd.f32 %v2162_v42, %v1933_v23  ;;  %v4232_v23 = vld [vmem:[%s5080_s29 + $0xa0] sm:$0xf]  ;;  %v4493_v42 = vld [vmem:[%s5080_s29 + $0xac] sm:$0xf0] }
 0x933   : > { %v2175_v36 = vadd.f32 %v4745_v45, %v2171_v46  ;;  %v4491_v46 = vld [vmem:[%s5080_s29 + $0xa4] sm:$0xf]  ;;  %v4233_v45 = vor.u32 %v4493_v42, %v4232_v23  ;;  %v4478_v23 = vld [vmem:[%s5080_s29 + $0x34] sm:$0xf0] }
 0x935   : > { %v5541_v47 = vadd.f32 %v4626_v37, %v2175_v36  ;;  %v4234_v36 = vld [vmem:[%s5080_s29 + $0xb0] sm:$0xf0]  ;;  %2488 = vmatpush.bf16.msra.mxu0 %v4233_v45  ;;  %v4177_v45 = vor.u32 %v4478_v23, %v4176_v21 }
 0x937   : > { %2190 = vadd.xlane.f32.xlu0 %v5541_v47 }
 0x944   : > { %v2165_v55 = vpop.f32.mrf.mxu2 }
 0x945   : > { %v2172_v56 = vadd.f32 %v2165_v55, %v1934_v52  ;;  %v4237_v52 = vor.u32 %v4491_v46, %v4234_v36  ;;  %v4241_v55 = vor.u32 %v4494_v49, %v4240_v22  ;;  %v4476_v36 = vld [vmem:[%s5080_s29 + $0x2c] sm:$0xf]  ;;  %v4178_v22 = vld [vmem:[%s5080_s29 + $0x38] sm:$0xf0] }
 0x946   : > { %v4181_v49 = vor.u32 %v4476_v36, %v4178_v22 }
 0x947   : > { %v2176_v57 = vadd.f32 %v4746_v44, %v2172_v56  ;;  %v4492_v56 = vld [vmem:[%s5080_s29 + $0xac] sm:$0xf]  ;;  %v4242_v44 = vld [vmem:[%s5080_s29 + $0xb8] sm:$0xf0]  ;;  %2526 = vmatpush.bf16.msrb.mxu1 %v4241_v55  ;;  %v4152_v55 = vld [vmem:[%s5080_s29] sm:$0xf] }
 0x949   : > { %v5546_v61 = vadd.f32 %v4626_v37, %v2176_v57  ;;  %v4245_v57 = vor.u32 %v4492_v56, %v4242_v44  ;;  %v4473_v56 = vld [vmem:[%s5080_s29 + $0xc] sm:$0xf0] }
 0x94a   : > { %v4153_v44 = vor.u32 %v4473_v56, %v4152_v55 }
 0x94b   : > { %2192 = vadd.xlane.f32.xlu1 %v5546_v61  ;;  %2545 = vmatpush.bf16.msra.mxu2 %v4245_v57  ;;  %v4471_v57 = vld [vmem:[%s5080_s29 + $0x4] sm:$0xf] }
 0x94c   : > { %v2167_v63 = vpop.f32.mrf.mxu2 }
 0x94d   : > { %v2173_v0 = vadd.f32 %v2167_v63, %v1935_v62  ;;  %v4487_v62 = vld [vmem:[%s5080_s29 + $0x84] sm:$0xf]  ;;  %v4217_v63 = vor.u32 %v4489_v59, %v4216_v58  ;;  %v4154_v58 = vld [vmem:[%s5080_s29 + $0x10] sm:$0xf0]  ;;  %v4160_v59 = vld [vmem:[%s5080_s29 + $0x8] sm:$0xf] }
 0x94f   : > { %v2177_v3 = vadd.f32 %v4747_v2, %v2173_v0  ;;  %v4218_v0 = vld [vmem:[%s5080_s29 + $0x90] sm:$0xf0]  ;;  %v4224_v2 = vld [vmem:[%s5080_s29 + $0x88] sm:$0xf]  ;;  %2489 = vmatpush.bf16.msra.mxu0 %v4217_v63  ;;  %v4474_v63 = vld [vmem:[%s5080_s29 + $0x14] sm:$0xf0] }
 0x951   : > { %v5549_v4 = vadd.f32 %v4626_v37, %v2177_v3  ;;  %v4253_v37 = vor.u32 %v4495_v31, %v4250_v34  ;;  %v4490_v3 = vld [vmem:[%s5080_s29 + $0x94] sm:$0xf0]  ;;  %v4480_v31 = vld [vmem:[%s5080_s29 + $0x4c] sm:$0xf] }
 0x952   : > { %v4197_v34 = vor.u32 %v4480_v31, %v4194_v33 }
 0x953   : > { %2194 = vadd.xlane.f32.xlu1 %v5549_v4  ;;  %2506 = vmatpush.bf16.msra.mxu3 %v4253_v37  ;;  %v4475_v37 = vld [vmem:[%s5080_s29 + $0x24] sm:$0xf] }
 0x954   : > { %v4173_v46 = vor.u32 %v4475_v37, %v4170_v40 }
 0x957   : > { %2507 = vmatpush.bf16.msra.mxu3 %v4237_v52 }
 0x9a2   : > { %v2189_v48 = vpop.xlane.xlu1 %2188 }
 0x9a3   : > { %v2196_v26 = vmul.f32 %v2189_v48, %v5142_v39  ;;  %v4221_v48 = vor.u32 %v4487_v62, %v4218_v0  ;;  %v4157_v62 = vor.u32 %v4471_v57, %v4154_v58  ;;  %v4472_v0 = vld [vmem:[%s5080_s29 + $0xc] sm:$0xf] }
 0x9a5   : > { %v5554_v29 = vsub.f32 %v5538_v28, %v2196_v26  ;;  %v4225_v26 = vor.u32 %v4490_v3, %v4224_v2  ;;  %2508 = vmatpush.bf16.msra.mxu3 %v4221_v48  ;;  %v4162_v2 = vld [vmem:[%s5080_s29 + $0x18] sm:$0xf0]  ;;  %v4161_v3 = vor.u32 %v4474_v63, %v4160_v59 }
 0x9a6   : > { %v4165_v48 = vor.u32 %v4472_v0, %v4162_v2  ;;  %v2316_v0 = vld [vmem:[%s5085_s18] sm:$0xf] }
 0x9a7   : > { %v2204_v14 = vmul.f32 %v5554_v29, %v5554_v29  ;;  %2527 = vmatpush.bf16.msrb.mxu1 %v4225_v26  ;;  %v5659_v2 = vperm.slane %v2316_v0, 0 }
 0x9a9   : > { %2208 = vadd.xlane.f32.xlu2 %v2204_v14  ;;  %v4488_v14 = vld [vmem:[%s5080_s29 + $0x8c] sm:$0xf] }
 0x9aa   : > { %v2191_v30 = vpop.xlane.xlu0 %2190 }
 0x9ab   : > { %v2197_v5 = vmul.f32 %v2191_v30, %v5142_v39  ;;  %v4226_v30 = vld [vmem:[%s5080_s29 + $0x98] sm:$0xf0] }
 0x9ad   : > { %v5560_v7 = vsub.f32 %v5541_v47, %v2197_v5  ;;  %v4229_v5 = vor.u32 %v4488_v14, %v4226_v30 }
 0x9af   : > { %v2205_v8 = vmul.f32 %v5560_v7, %v5560_v7  ;;  %2546 = vmatpush.bf16.msra.mxu2 %v4229_v5 }
 0x9b1   : > { %2210 = vadd.xlane.f32.xlu1 %v2205_v8  ;;  %v4200_v8 = vld [vmem:[%s5080_s29 + $0x60] sm:$0xf] }
 0x9b3   : > { %2547 = vmatpush.bf16.msra.mxu2 %v4213_v25 }
 0x9b7   : > { %2548 = vmatpush.bf16.msra.mxu2 %v4197_v34 }
 0x9bb   : > { %2549 = vmatpush.bf16.msra.mxu2 %v4181_v49 }
 0x9be   : > { %v2193_v6 = vpop.xlane.xlu1 %2192 }
 0x9bf   : > { %v2198_v9 = vmul.f32 %v2193_v6, %v5142_v39  ;;  %v4485_v6 = vld [vmem:[%s5080_s29 + $0x6c] sm:$0xf0]  ;;  %2550 = vmatpush.bf16.msra.mxu2 %v4165_v48 }
 0x9c1   : > { %v5566_v12 = vsub.f32 %v5546_v61, %v2198_v9  ;;  %v4483_v9 = vld [vmem:[%s5080_s29 + $0x64] sm:$0xf] }
 0x9c3   : > { %v2206_v10 = vmul.f32 %v5566_v12, %v5566_v12 }
 0x9c5   : > { %2212 = vadd.xlane.f32.xlu1 %v2206_v10  ;;  %v4201_v10 = vor.u32 %v4485_v6, %v4200_v8 }
 0x9c6   : > { %v2195_v60 = vpop.xlane.xlu1 %2194 }
 0x9c7   : > { %v2199_v11 = vmul.f32 %v2195_v60, %v5142_v39  ;;  %v4202_v60 = vld [vmem:[%s5080_s29 + $0x70] sm:$0xf0]  ;;  %2490 = vmatpush.bf16.msra.mxu0 %v4201_v10 }
 0x9c8   : > { %v4205_v18 = vor.u32 %v4483_v9, %v4202_v60 }
 0x9c9   : > { %v5572_v15 = vsub.f32 %v5549_v4, %v2199_v11  ;;  %v4208_v11 = vld [vmem:[%s5080_s29 + $0x68] sm:$0xf] }
 0x9ca   : > { %2509 = vmatpush.bf16.msra.mxu3 %v4205_v18 }
 0x9cb   : > { %v2207_v17 = vmul.f32 %v5572_v15, %v5572_v15  ;;  %2491 = vmatpush.bf16.msra.mxu0 %v4185_v41 }
 0x9cd   : > { %2214 = vadd.xlane.f32.xlu1 %v2207_v17  ;;  %v4486_v17 = vld [vmem:[%s5080_s29 + $0x74] sm:$0xf0] }
 0x9ce   : > { %v4209_v19 = vor.u32 %v4486_v17, %v4208_v11  ;;  %2510 = vmatpush.bf16.msra.mxu3 %v4189_v50 }
 0x9cf   : > { %2492 = vmatpush.bf16.msra.mxu0 %v4169_v38 }
 0x9d0   : > { %2528 = vmatpush.bf16.msrb.mxu1 %v4209_v19 }
 0x9d2   : > { %2511 = vmatpush.bf16.msra.mxu3 %v4173_v46 }
 0x9d3   : > { %2493 = vmatpush.bf16.msra.mxu0 %v4153_v44 }
 0x9d4   : > { %2529 = vmatpush.bf16.msrb.mxu1 %v4193_v27 }
 0x9d6   : > { %2512 = vmatpush.bf16.msra.mxu3 %v4157_v62 }
 0x9d8   : > { %2530 = vmatpush.bf16.msrb.mxu1 %v4177_v45 }
 0x9dc   : > { %2531 = vmatpush.bf16.msrb.mxu1 %v4161_v3  ;;  %v5661_v3 = vperm.slane %v2316_v0, 2 }
 0xa1c   : > { %v2209_v32 = vpop.xlane.xlu2 %2208 }
 0xa1d   : > { %v2216_v42 = vmul.f32 %v2209_v32, %v5142_v39 }
 0xa1f   : > { %v2220_v52 = vadd.f32 1e-05, %v2216_v42 }
 0xa21   : > { %4704 = vrsqrt.f32 %v2220_v52  ;;  %vm2230_vm14 = vweird.f32 %v2220_v52 }
 0xa24   : > { %v2211_v26 = vpop.xlane.xlu1 %2210 }
 0xa25   : > { %v2217_v14 = vmul.f32 %v2211_v26, %v5142_v39 }
 0xa27   : > { %v4705_v30 = vpop.eup %4704  ;;  %v2221_v5 = vadd.f32 1e-05, %v2217_v14 }
 0xa28   : > { %v2225_v8 = vmul.f32 %v4705_v30, %v2220_v52  ;;  %vm2231_vm7 = vweird.f32 %v4705_v30 }
 0xa29   : > { %4706 = vrsqrt.f32 %v2221_v5  ;;  %vm2232_vm8 = vmor %vm2230_vm14, %vm2231_vm7  ;;  %vm2240_vm10 = vweird.f32 %v2221_v5 }
 0xa2a   : > { %v2226_v6 = vmul.f32 %v4705_v30, %v2225_v8  ;;  %v5677_v8 = vperm.slane %v2316_v0, 3 }
 0xa2c   : > { %v2227_v9 = vmul.f32 0.5, %v2226_v6 }
 0xa2e   : > { %v2228_v10 = vsub.f32 1.5, %v2227_v9 }
 0xa2f   : > { %v4707_v60 = vpop.eup %4706 }
 0xa30   : > { %v2229_v11 = vmul.f32 %v4705_v30, %v2228_v10  ;;  %v2235_v17 = vmul.f32 %v4707_v60, %v2221_v5  ;;  %vm2241_vm9 = vweird.f32 %v4707_v60 }
 0xa31   : > { %vm2242_vm11 = vmor %vm2240_vm10, %vm2241_vm9 }
 0xa32   : > { %v2236_v18 = vmul.f32 %v4707_v60, %v2235_v17  ;;  %v2233_v19 = vsel %vm2232_vm8, %v4705_v30, %v2229_v11  ;;  %v5672_v30 = vperm.slane %v2316_v0, 1 }
 0xa33   : > { %v2264_v25 = vmul.f32 %v2233_v19, %v5554_v29  ;;  %v4628_v29 = vld [vmem:[%s6583_s28] ss:$0 sm:$0xff] }
 0xa34   : > { %v2237_v1 = vmul.f32 0.5, %v2236_v18 }
 0xa35   : > { %v2271_v50 = vmul.f32 %v4627_v13, %v2264_v25 }
 0xa36   : > { %v2238_v51 = vsub.f32 1.5, %v2237_v1 }
 0xa37   : > { %v2278_v33 = vadd.f32 %v4628_v29, %v2271_v50 }
 0xa38   : > { %v2213_v16 = vpop.xlane.xlu1 %2212  ;;  %v2239_v53 = vmul.f32 %v4707_v60, %v2238_v51 }
 0xa39   : > { %v2218_v41 = vmul.f32 %v2213_v16, %v5142_v39 }
 0xa3a   : > { %v2243_v20 = vsel %vm2242_vm11, %v4707_v60, %v2239_v53 }
 0xa3b   : > { %v2222_v24 = vadd.f32 1e-05, %v2218_v41  ;;  %v2265_v43 = vmul.f32 %v2243_v20, %v5560_v7 }
 0xa3d   : > { %4708 = vrsqrt.f32 %v2222_v24  ;;  %v2272_v27 = vmul.f32 %v4627_v13, %v2265_v43  ;;  %vm2250_vm13 = vweird.f32 %v2222_v24 }
 0xa3f   : > { %v2279_v34 = vadd.f32 %v4628_v29, %v2272_v27 }
 0xa40   : > { %v2215_v31 = vpop.xlane.xlu1 %2214 }
 0xa41   : > { %v2219_v54 = vmul.f32 %v2215_v31, %v5142_v39  ;;  %v2282_v35 = vpack.c.bf16 %v2279_v34, %v2278_v33 }
 0xa43   : > { %v4709_v37 = vpop.eup %4708  ;;  %v2223_v32 = vadd.f32 1e-05, %v2219_v54  ;;  %2494 = vmatmul.bf16.vlgmr.msra.gmra.mxu0 %v2282_v35  ;;  %2513 = vmatmul.bf16.vlgmr.msra.gmra.mxu3 %v2282_v35 }
 0xa44   : > { %v2245_v38 = vmul.f32 %v4709_v37, %v2222_v24  ;;  %2532 = vmatmul.bf16.vlgmr.msrb.gmra.mxu1 %v2282_v35  ;;  %2551 = vmatmul.bf16.vlgmr.msra.gmra.mxu2 %v2282_v35  ;;  %vm2251_vm12 = vweird.f32 %v4709_v37 }
 0xa45   : > { %4710 = vrsqrt.f32 %v2223_v32  ;;  %vm2252_vm15 = vmor %vm2250_vm13, %vm2251_vm12  ;;  %vm2260_vm1 = vweird.f32 %v2223_v32 }
 0xa46   : > { %v2246_v7 = vmul.f32 %v4709_v37, %v2245_v38 }
 0xa48   : > { %v2247_v40 = vmul.f32 0.5, %v2246_v7 }
 0xa4a   : > { %v2248_v21 = vsub.f32 1.5, %v2247_v40 }
 0xa4b   : > { %v4711_v23 = vpop.eup %4710 }
 0xa4c   : > { %v2249_v42 = vmul.f32 %v4709_v37, %v2248_v21  ;;  %v2255_v46 = vmul.f32 %v4711_v23, %v2223_v32  ;;  %vm2261_vm0 = vweird.f32 %v4711_v23 }
 0xa4d   : > { %vm2262_vm2 = vmor %vm2260_vm1, %vm2261_vm0 }
 0xa4e   : > { %v2256_v45 = vmul.f32 %v4711_v23, %v2255_v46  ;;  %v2253_v36 = vsel %vm2252_vm15, %v4709_v37, %v2249_v42 }
 0xa4f   : > { %v2266_v52 = vmul.f32 %v2253_v36, %v5566_v12 }
 0xa50   : > { %v2257_v22 = vmul.f32 0.5, %v2256_v45 }
 0xa51   : > { %v2273_v57 = vmul.f32 %v4627_v13, %v2266_v52 }
 0xa52   : > { %v2258_v49 = vsub.f32 1.5, %v2257_v22 }
 0xa53   : > { %v2280_v59 = vadd.f32 %v4628_v29, %v2273_v57 }
 0xa54   : > { %v2259_v55 = vmul.f32 %v4711_v23, %v2258_v49 }
 0xa56   : > { %v2263_v56 = vsel %vm2262_vm2, %v4711_v23, %v2259_v55 }
 0xa57   : > { %v2267_v44 = vmul.f32 %v2263_v56, %v5572_v15 }
 0xa59   : > { %v2274_v58 = vmul.f32 %v4627_v13, %v2267_v44 }
 0xa5b   : > { %v2281_v62 = vadd.f32 %v4628_v29, %v2274_v58 }
 0xa5d   : > { %v2283_v63 = vpack.c.bf16 %v2281_v62, %v2280_v59 }
 0xa5f   : > { %2499 = vmatmul.bf16.gmra.mxu0 %v2283_v63  ;;  %2518 = vmatmul.bf16.gmra.mxu3 %v2283_v63 }
 0xa60   : > { %2537 = vmatmul.bf16.gmra.mxu1 %v2283_v63  ;;  %2556 = vmatmul.bf16.gmra.mxu2 %v2283_v63 }
 0xac0   : > { %v2495_v12 = vpop.f32.mrf.mxu0 }
 0xac1   : > { %v5664_v48 = vadd.f32 %v2495_v12, %v5659_v2  ;;  %v2533_v26 = vpop.f32.mrf.mxu1 }
 0xac2   : > { %v5667_v15 = vadd.f32 %v2533_v26, %v5661_v3 }
 0xac3   : > { %v5670_v14 = vmul.f32 0.70710677, %v5664_v48 }
 0xac4   : > { %v5675_v5 = vmul.f32 0.70710677, %v5667_v15 }
 0xac5   : > { %v2594_v6 = vmul.f32 %v5670_v14, %v5670_v14 }
 0xac6   : > { %v2674_v9 = vmul.f32 %v5675_v5, %v5675_v5  ;;  %v2514_v10 = vpop.f32.mrf.mxu3 }
 0xac7   : > { %v5683_v60 = vmin.f32 %v2594_v6, 16.0  ;;  %v5686_v11 = vadd.f32 %v2514_v10, %v5672_v30  ;;  %v2552_v17 = vpop.f32.mrf.mxu2 }
 0xac8   : > { %v5688_v18 = vmin.f32 %v2674_v9, 16.0  ;;  %v5691_v19 = vadd.f32 %v2552_v17, %v5677_v8  ;;  %v2497_v37 = vpop.f32.mrf.mxu0 }
 0xac9   : > { %v2596_v1 = vmul.f32 2.1237322e-06, %v5683_v60  ;;  %v2607_v51 = vmul.f32 3.8918573e-05, %v5683_v60  ;;  %v5698_v13 = vmul.f32 0.70710677, %v5686_v11  ;;  %v5720_v46 = vadd.f32 %v2497_v37, %v5659_v2 }
 0xaca   : > { %v2676_v25 = vmul.f32 2.1237322e-06, %v5688_v18  ;;  %v2687_v16 = vmul.f32 3.8918573e-05, %v5688_v18  ;;  %v5703_v50 = vmul.f32 0.70710677, %v5691_v19 }
 0xacb   : > { %v2597_v53 = vadd.f32 0.00028619796, %v2596_v1  ;;  %v2608_v41 = vadd.f32 0.001143296, %v2607_v51  ;;  %v2634_v43 = vmul.f32 %v5698_v13, %v5698_v13  ;;  %v5728_v59 = vmul.f32 0.70710677, %v5720_v46  ;;  %v2535_v51 = vpop.f32.mrf.mxu1 }
 0xacc   : > { %v2677_v20 = vadd.f32 0.00028619796, %v2676_v25  ;;  %v2688_v24 = vadd.f32 0.001143296, %v2687_v16  ;;  %v2714_v34 = vmul.f32 %v5703_v50, %v5703_v50 }
 0xacd   : > { %v2598_v29 = vmul.f32 %v2597_v53, %v5683_v60  ;;  %v2609_v27 = vmul.f32 %v2608_v41, %v5683_v60  ;;  %v5708_v33 = vmin.f32 %v2634_v43, 16.0  ;;  %v2754_v16 = vmul.f32 %v5728_v59, %v5728_v59 }
 0xace   : > { %v2689_v31 = vmul.f32 %v2688_v24, %v5688_v18  ;;  %v2678_v35 = vmul.f32 %v2677_v20, %v5688_v18  ;;  %v5716_v23 = vmin.f32 %v2714_v34, 16.0 }
 0xacf   : > { %v2610_v54 = vadd.f32 0.014752088, %v2609_v27  ;;  %v2599_v32 = vadd.f32 0.0036580483, %v2598_v29  ;;  %v2636_v40 = vmul.f32 2.1237322e-06, %v5708_v33  ;;  %v2536_v29 = vadd.f32 %v2535_v51, %v5661_v3 }
 0xad0   : > { %v2690_v38 = vadd.f32 0.014752088, %v2689_v31  ;;  %v2647_v21 = vmul.f32 3.8918573e-05, %v5708_v33  ;;  %v2679_v36 = vadd.f32 0.0036580483, %v2678_v35 }
 0xad1   : > { %v2611_v7 = vmul.f32 %v2610_v54, %v5683_v60  ;;  %v2600_v49 = vmul.f32 %v2599_v32, %v5683_v60  ;;  %v2637_v56 = vadd.f32 0.00028619796, %v2636_v40  ;;  %v2727_v57 = vmul.f32 3.8918573e-05, %v5716_v23 }
 0xad2   : > { %v2691_v42 = vmul.f32 %v2690_v38, %v5688_v18  ;;  %v2648_v22 = vadd.f32 0.001143296, %v2647_v21  ;;  %v2680_v63 = vmul.f32 %v2679_v36, %v5688_v18  ;;  %v2716_v12 = vmul.f32 2.1237322e-06, %v5716_v23 }
 0xad3   : > { %v2612_v45 = vadd.f32 0.112945676, %v2611_v7  ;;  %v2601_v26 = vadd.f32 0.05243302, %v2600_v49  ;;  %v2638_v10 = vmul.f32 %v2637_v56, %v5708_v33  ;;  %v2728_v1 = vadd.f32 0.001143296, %v2727_v57 }
 0xad4   : > { %v2692_v52 = vadd.f32 0.112945676, %v2691_v42  ;;  %v2649_v44 = vmul.f32 %v2648_v22, %v5708_v33  ;;  %v2681_v41 = vadd.f32 0.05243302, %v2680_v63  ;;  %v2717_v20 = vadd.f32 0.00028619796, %v2716_v12 }
 0xad5   : > { %v2613_v55 = vmul.f32 %v2612_v45, %v5683_v60  ;;  %v2602_v27 = vmul.f32 %v2601_v26, %v5683_v60  ;;  %v2639_v31 = vadd.f32 0.0036580483, %v2638_v10  ;;  %v2729_v34 = vmul.f32 %v2728_v1, %v5716_v23 }
 0xad6   : > { %v2693_v58 = vmul.f32 %v2692_v52, %v5688_v18  ;;  %v2650_v0 = vadd.f32 0.014752088, %v2649_v44  ;;  %v5746_v54 = vmin.f32 %v2754_v16, 16.0  ;;  %v2682_v35 = vmul.f32 %v2681_v41, %v5688_v18  ;;  %v2516_v16 = vpop.f32.mrf.mxu3 }
 0xad7   : > { %v2614_v62 = vadd.f32 0.4994258, %v2613_v55  ;;  %v2718_v37 = vmul.f32 %v2717_v20, %v5716_v23  ;;  %v5752_v38 = vmul.f32 0.70710677, %v2536_v29  ;;  %v2603_v7 = vadd.f32 0.18741608, %v2602_v27 }
 0xad8   : > { %v2694_v6 = vadd.f32 0.4994258, %v2693_v58  ;;  %v2651_v17 = vmul.f32 %v2650_v0, %v5708_v33  ;;  %v2640_v40 = vmul.f32 %v2639_v31, %v5708_v33  ;;  %v2730_v21 = vadd.f32 0.014752088, %v2729_v34 }
 0xad9   : > { %v2615_v9 = vmul.f32 %v2614_v62, %v5683_v60  ;;  %v2756_v45 = vmul.f32 2.1237322e-06, %v5746_v54  ;;  %v2683_v22 = vadd.f32 0.18741608, %v2682_v35  ;;  %v2719_v49 = vadd.f32 0.0036580483, %v2718_v37 }
 0xada   : > { %v2695_v25 = vmul.f32 %v2694_v6, %v5688_v18  ;;  %v2652_v43 = vadd.f32 0.112945676, %v2651_v17  ;;  %v2767_v52 = vmul.f32 3.8918573e-05, %v5746_v54  ;;  %v2834_v55 = vmul.f32 %v5752_v38, %v5752_v38 }
 0xadb   : > { %v5738_v53 = vadd.f32 1.0, %v2615_v9  ;;  %v2604_v44 = vmul.f32 %v2603_v7, %v5683_v60  ;;  %v2641_v57 = vadd.f32 0.05243302, %v2640_v40  ;;  %v2731_v62 = vmul.f32 %v2730_v21, %v5716_v23 }
 0xadc   : > { %v5740_v24 = vadd.f32 1.0, %v2695_v25  ;;  %v2653_v32 = vmul.f32 %v2652_v43, %v5708_v33  ;;  %v2757_v0 = vadd.f32 0.00028619796, %v2756_v45  ;;  %v5769_v12 = vmul.f32 0.5, %v5664_v48 }
 0xadd   : > { %4712 = vrcp.f32 %v5738_v53  ;;  %v2684_v26 = vmul.f32 %v2683_v22, %v5688_v18  ;;  %v2720_v6 = vmul.f32 %v2719_v49, %v5716_v23  ;;  %v2768_v9 = vadd.f32 0.001143296, %v2767_v52 }
 0xade   : > { %4714 = vrcp.f32 %v5740_v24  ;;  %v2654_v42 = vadd.f32 0.4994258, %v2653_v32  ;;  %v5774_v10 = vmul.f32 0.5, %v5667_v15  ;;  %v5779_v17 = vmul.f32 0.5, %v5720_v46 }
 0xadf   : > { %v5781_v1 = vmin.f32 %v2834_v55, 16.0  ;;  %v2605_v51 = vadd.f32 1.1283791, %v2604_v44  ;;  %v2642_v48 = vmul.f32 %v2641_v57, %v5708_v33  ;;  %v2732_v18 = vadd.f32 0.112945676, %v2731_v62 }
 0xae0   : > { %v2655_v58 = vmul.f32 %v2654_v42, %v5708_v33  ;;  %v2758_v20 = vmul.f32 %v2757_v0, %v5746_v54  ;;  %v2769_v15 = vmul.f32 %v2768_v9, %v5746_v54  ;;  %v5788_v43 = vmul.f32 0.5, %v2536_v29 }
 0xae1   : > { %v2626_v27 = vand.u32 2147483647, %v5738_v53  ;;  %v2685_v46 = vadd.f32 1.1283791, %v2684_v26  ;;  %v2721_v31 = vadd.f32 0.05243302, %v2720_v6  ;;  %v5793_v32 = vadd.f32 %v2516_v16, %v5672_v30 }
 0xae2   : > { %v5784_v25 = vadd.f32 1.0, %v2655_v58  ;;  %v2770_v35 = vadd.f32 0.014752088, %v2769_v15  ;;  %v2836_v37 = vmul.f32 2.1237322e-06, %v5781_v1  ;;  %v5796_v7 = vmul.f32 %v2605_v51, %v5670_v14 }
 0xae3   : > { %v5756_v36 = vpop.eup %4712  ;;  %v2643_v40 = vadd.f32 0.18741608, %v2642_v48  ;;  %v2733_v29 = vmul.f32 %v2732_v18, %v5716_v23  ;;  %vm2622_vm3 = vweird.f32 %v5738_v53  ;;  %v2759_v42 = vadd.f32 0.0036580483, %v2758_v20  ;;  %v4510_v18 = vld [vmem:[%s5090_s5 + $0x38] sm:$0xff] }
 0xae4   : > { %v5761_v56 = vpop.eup %4714  ;;  %v2618_v63 = vmul.f32 %v5756_v36, %v5738_v53  ;;  %4716 = vrcp.f32 %v5784_v25  ;;  %v2771_v45 = vmul.f32 %v2770_v35, %v5746_v54  ;;  %v2628_v22 = vand.u32 2147483648, %v5738_v53  ;;  %3534 = vmatpush.bf16.msrb.mxu0 %v4510_v18 }
 0xae5   : > { %v2698_v60 = vmul.f32 %v5761_v56, %v5740_v24  ;;  %v5805_v49 = vmul.f32 %v2685_v46, %v5675_v5  ;;  %vm2702_vm4 = vweird.f32 %v5740_v24  ;;  %v2722_v14 = vmul.f32 %v2721_v31, %v5716_v23 }
 0xae6   : > { %v2619_v41 = vsub.f32 1.0, %v2618_v63  ;;  %vm5809_vm5 = vcmp.eq.f32.partialorder %v2626_v27, 8.507059e+37  ;;  %v2837_v44 = vadd.f32 0.00028619796, %v2836_v37  ;;  %v2847_v57 = vmul.f32 3.8918573e-05, %v5781_v1 }
 0xae7   : > { %v2699_v34 = vsub.f32 1.0, %v2698_v60  ;;  %v2706_v58 = vand.u32 2147483647, %v5740_v24  ;;  %v2644_v5 = vmul.f32 %v2643_v40, %v5708_v33  ;;  %v2734_v62 = vadd.f32 0.4994258, %v2733_v29  ;;  %v4526_v33 = vld [vmem:[%s5090_s5 + $0xb8] sm:$0xff] }
 0xae8   : > { %v2620_v21 = vmul.f32 %v5756_v36, %v2619_v41  ;;  %v2772_v63 = vadd.f32 0.112945676, %v2771_v45  ;;  %vm2623_vm6 = vweird.f32 %v5756_v36  ;;  %v2708_v26 = vand.u32 2147483648, %v5740_v24  ;;  %3572 = vmatpush.bf16.msra.mxu1 %v4526_v33 }
 0xae9   : > { %v2700_v55 = vmul.f32 %v5761_v56, %v2699_v34  ;;  %v2760_v6 = vmul.f32 %v2759_v42, %v5746_v54  ;;  %v2629_v60 = vor.u32 1.1754944e-38, %v2628_v22  ;;  %vm2703_vm7 = vweird.f32 %v5761_v56  ;;  %vm5834_vm14 = vmor %vm2622_vm3, %vm2623_vm6 }
 0xaea   : > { %v2621_v0 = vadd.f32 %v5756_v36, %v2620_v21  ;;  %v5821_v9 = vpop.eup %4716  ;;  %v2723_v51 = vadd.f32 0.18741608, %v2722_v14  ;;  %v2773_v48 = vmul.f32 %v2772_v63, %v5746_v54  ;;  %v2838_v41 = vmul.f32 %v2837_v44, %v5781_v1  ;;  %vm5853_vm9 = vmor %vm2702_vm4, %vm2703_vm7 }
 0xaeb   : > { %v2701_v16 = vadd.f32 %v5761_v56, %v2700_v55  ;;  %v2848_v20 = vadd.f32 0.001143296, %v2847_v57  ;;  %v5830_v15 = vmul.f32 0.70710677, %v5793_v32  ;;  %vm5838_vm8 = vcmp.eq.f32.partialorder %v2706_v58, 8.507059e+37 }
 0xaec   : > { %v2645_v31 = vadd.f32 1.1283791, %v2644_v5  ;;  %v2735_v34 = vmul.f32 %v2734_v62, %v5716_v23  ;;  %v2774_v35 = vadd.f32 0.4994258, %v2773_v48  ;;  %v2625_v37 = vsel %vm5834_vm14, %v5756_v36, %v2621_v0 }
 0xaed   : > { %v2658_v53 = vmul.f32 %v5821_v9, %v5784_v25  ;;  %v2761_v40 = vadd.f32 0.05243302, %v2760_v6  ;;  %v2849_v29 = vmul.f32 %v2848_v20, %v5781_v1  ;;  %v2709_v42 = vor.u32 1.1754944e-38, %v2708_v26  ;;  %v2554_v26 = vpop.f32.mrf.mxu2 }
 0xaee   : > { %v2724_v45 = vmul.f32 %v2723_v51, %v5716_v23  ;;  %v2775_v22 = vmul.f32 %v2774_v35, %v5746_v54  ;;  %v2794_v36 = vmul.f32 %v5830_v15, %v5830_v15  ;;  %v2705_v14 = vsel %vm5853_vm9, %v5761_v56, %v2701_v16 }
 0xaef   : > { %v2668_v55 = vand.u32 2147483648, %v5784_v25  ;;  %v2839_v44 = vadd.f32 0.0036580483, %v2838_v41  ;;  %v2850_v24 = vadd.f32 0.014752088, %v2849_v29  ;;  %v2630_v57 = vsel %vm5809_vm5, %v2629_v60, %v2625_v37 }
 0xaf0   : > { %v5867_v58 = vadd.f32 1.0, %v2735_v34  ;;  %v5869_v5 = vadd.f32 1.0, %v2775_v22  ;;  %v5871_v23 = vmin.f32 %v2794_v36, 16.0  ;;  %v5874_v62 = vmul.f32 %v2645_v31, %v5698_v13  ;;  %v2500_v31 = vpop.f32.mrf.mxu0 }
 0xaf1   : > { %v2659_v63 = vsub.f32 1.0, %v2658_v53  ;;  %v2762_v0 = vmul.f32 %v2761_v40, %v5746_v54  ;;  %v2851_v56 = vmul.f32 %v2850_v24, %v5781_v1  ;;  %v2710_v6 = vsel %vm5838_vm8, %v2709_v42, %v2705_v14 }
 0xaf2   : > { %v2666_v52 = vand.u32 2147483647, %v5784_v25  ;;  %v2725_v60 = vadd.f32 1.1283791, %v2724_v45  ;;  %4718 = vrcp.f32 %v5869_v5  ;;  %v5883_v51 = vmul.f32 %v2630_v57, %v5796_v7 }
 0xaf3   : > { %v5885_v48 = vor.u32 1.1754944e-38, %v2668_v55  ;;  %v2840_v13 = vmul.f32 %v2839_v44, %v5781_v1  ;;  %v2852_v18 = vadd.f32 0.112945676, %v2851_v56  ;;  %4720 = vrcp.f32 %v5867_v58 }
 0xaf4   : > { %v2796_v33 = vmul.f32 2.1237322e-06, %v5871_v23  ;;  %v2807_v16 = vmul.f32 3.8918573e-05, %v5871_v23  ;;  %v5892_v41 = vadd.f32 %v2554_v26, %v5677_v8  ;;  %v5895_v20 = vmul.f32 %v2710_v6, %v5805_v49 }
 0xaf5   : > { %v2660_v7 = vmul.f32 %v5821_v9, %v2659_v63  ;;  %v2763_v27 = vadd.f32 0.18741608, %v2762_v0  ;;  %v2853_v46 = vmul.f32 %v2852_v18, %v5781_v1  ;;  %v5900_v34 = vmul.f32 %v2725_v60, %v5703_v50 }
 0xaf6   : > { %v2746_v35 = vand.u32 2147483647, %v5867_v58  ;;  %v2797_v37 = vadd.f32 0.00028619796, %v2796_v33  ;;  %v2808_v53 = vadd.f32 0.001143296, %v2807_v16  ;;  %vm2663_vm10 = vweird.f32 %v5821_v9 }
 0xaf7   : > { %v4278_v40 = vclamps-f32 %v5883_v51, 1.0  ;;  %v2841_v21 = vadd.f32 0.05243302, %v2840_v13  ;;  %v2854_v49 = vadd.f32 0.4994258, %v2853_v46  ;;  %v5914_v36 = vadd.f32 %v2500_v31, %v5659_v2  ;;  %v4509_v13 = vld [vmem:[%s5090_s5 + $0x30] sm:$0xff] }
 0xaf8   : > { %v5905_v42 = vpop.eup %4718  ;;  %v2798_v45 = vmul.f32 %v2797_v37, %v5871_v23  ;;  %v2809_v22 = vmul.f32 %v2808_v53, %v5871_v23  ;;  %v5911_v50 = vmul.f32 0.70710677, %v5892_v41  ;;  %v4280_v14 = vclamps-f32 %v5895_v20, 1.0  ;;  %v2538_v53 = vpop.f32.mrf.mxu1  ;;  %3535 = vmatpush.bf16.msrb.mxu0 %v4509_v13 }
 0xaf9   : > { %v5918_v55 = vadd.f32 %v5821_v9, %v2660_v7  ;;  %v2764_v44 = vmul.f32 %v2763_v27, %v5746_v54  ;;  %v2778_v24 = vmul.f32 %v5905_v42, %v5869_v5  ;;  %v5923_v57 = vpop.eup %4720  ;;  %vm2662_vm11 = vweird.f32 %v5784_v25  ;;  %v4525_v27 = vld [vmem:[%s5090_s5 + $0xb0] sm:$0xff] }
 0xafa   : > { %v2855_v63 = vmul.f32 %v2854_v49, %v5781_v1  ;;  %v2799_v0 = vadd.f32 0.0036580483, %v2798_v45  ;;  %v2810_v56 = vadd.f32 0.014752088, %v2809_v22  ;;  %v2874_v26 = vmul.f32 %v5911_v50, %v5911_v50  ;;  %v4534_v49 = vld [vmem:[%s5090_s5 + $0xf8] sm:$0xff]  ;;  %3573 = vmatpush.bf16.msra.mxu1 %v4525_v27  ;;  %vm5987_vm2 = vmor %vm2662_vm11, %vm2663_vm10 }
 0xafb   : > { %v2779_v6 = vsub.f32 1.0, %v2778_v24  ;;  %v2788_v60 = vand.u32 2147483648, %v5869_v5  ;;  %v2842_v54 = vmul.f32 %v2841_v21, %v5781_v1  ;;  %v5932_v51 = vmul.f32 0.70710677, %v5914_v36  ;;  %v4518_v21 = vld [vmem:[%s5090_s5 + $0x78] sm:$0xff]  ;;  %3591 = vmatpush.bf16.msrb.mxu2 %v4534_v49  ;;  %v4524_v49 = vld [vmem:[%s5090_s5 + $0xa8] sm:$0xff] }
 0xafc   : > { %v5935_v18 = vadd.f32 1.0, %v2855_v63  ;;  %v2800_v33 = vmul.f32 %v2799_v0, %v5871_v23  ;;  %v2811_v16 = vmul.f32 %v2810_v56, %v5871_v23  ;;  %v5939_v7 = vmin.f32 %v2874_v26, 16.0  ;;  %3553 = vmatpush.bf16.msrb.mxu3 %v4518_v21  ;;  %v4506_v45 = vld [vmem:[%s5090_s5 + $0x18] sm:$0xff] }
 0xafd   : > { %v5944_v46 = vmul.f32 %v5923_v57, %v5867_v58  ;;  %v2780_v31 = vmul.f32 %v5905_v42, %v2779_v6  ;;  %vm2783_vm12 = vweird.f32 %v5905_v42  ;;  %v2914_v37 = vmul.f32 %v5932_v51, %v5932_v51 }
 0xafe   : > { %vm5952_vm13 = vcmp.eq.f32.partialorder %v2666_v52, 8.507059e+37  ;;  %v2765_v22 = vadd.f32 1.1283791, %v2764_v44  ;;  %vm2782_vm15 = vweird.f32 %v5869_v5  ;;  %v2786_v24 = vand.u32 2147483647, %v5869_v5  ;;  %3574 = vmatpush.bf16.msra.mxu1 %v4524_v49 }
 0xaff   : > { %4722 = vrcp.f32 %v5935_v18  ;;  %v2781_v63 = vadd.f32 %v5905_v42, %v2780_v31  ;;  %v2843_v0 = vadd.f32 0.18741608, %v2842_v54  ;;  %v2812_v56 = vadd.f32 0.112945676, %v2811_v16  ;;  %vm5963_vm0 = vmor %vm2782_vm15, %vm2783_vm12  ;;  %v4508_v54 = vld [vmem:[%s5090_s5 + $0x28] sm:$0xff] }
 0xb00   : > { %v2876_v26 = vmul.f32 2.1237322e-06, %v5939_v7  ;;  %v2789_v5 = vor.u32 1.1754944e-38, %v2788_v60  ;;  %v2801_v44 = vadd.f32 0.05243302, %v2800_v33  ;;  %v5969_v13 = vadd.f32 %v2538_v53, %v5661_v3  ;;  %3536 = vmatpush.bf16.msrb.mxu0 %v4508_v54  ;;  %v4517_v53 = vld [vmem:[%s5090_s5 + $0x70] sm:$0xff] }
 0xb01   : > { %v2887_v6 = vmul.f32 3.8918573e-05, %v5939_v7  ;;  %v2785_v16 = vsel %vm5963_vm0, %v5905_v42, %v2781_v63  ;;  %v2813_v27 = vmul.f32 %v2812_v56, %v5871_v23  ;;  %v5976_v21 = vmin.f32 %v2914_v37, 16.0  ;;  %3554 = vmatpush.bf16.msrb.mxu3 %v4517_v53 }
 0xb02   : > { %v2877_v31 = vadd.f32 0.00028619796, %v2876_v26  ;;  %v5979_v29 = vadd.f32 1.0, %v4278_v40  ;;  %v2739_v60 = vsub.f32 1.0, %v5944_v46  ;;  %vm2787_vm1 = vcmp.eq.f32.partialorder %v2786_v24, 8.507059e+37  ;;  %v4533_v24 = vld [vmem:[%s5090_s5 + $0xf0] sm:$0xff] }
 0xb03   : > { %v2888_v33 = vadd.f32 0.001143296, %v2887_v6  ;;  %v2790_v37 = vsel %vm2787_vm1, %v2789_v5, %v2785_v16  ;;  %v2844_v40 = vmul.f32 %v2843_v0, %v5781_v1  ;;  %v2814_v63 = vadd.f32 0.4994258, %v2813_v27  ;;  %v4507_v0 = vld [vmem:[%s5090_s5 + $0x20] sm:$0xff]  ;;  %3592 = vmatpush.bf16.msrb.mxu2 %v4533_v24  ;;  %v4516_v16 = vld [vmem:[%s5090_s5 + $0x68] sm:$0xff] }
 0xb04   : > { %v2878_v46 = vmul.f32 %v2877_v31, %v5939_v7  ;;  %v5998_v26 = vadd.f32 1.0, %v4280_v14  ;;  %v2665_v25 = vsel %vm5987_vm2, %v5821_v9, %v5918_v55  ;;  %v2766_v52 = vmul.f32 %v2765_v22, %v5728_v59  ;;  %v4523_v5 = vld [vmem:[%s5090_s5 + $0xa0] sm:$0xff]  ;;  %3537 = vmatpush.bf16.msrb.mxu0 %v4507_v0  ;;  %v4532_v27 = vld [vmem:[%s5090_s5 + $0xe8] sm:$0xff] }
 0xb05   : > { %v5994_v56 = vpop.eup %4722  ;;  %v2889_v1 = vmul.f32 %v2888_v33, %v5939_v7  ;;  %vm2743_vm3 = vweird.f32 %v5923_v57  ;;  %v2802_v14 = vmul.f32 %v2801_v44, %v5871_v23  ;;  %v2916_v6 = vmul.f32 2.1237322e-06, %v5976_v21  ;;  %3575 = vmatpush.bf16.msra.mxu1 %v4523_v5  ;;  %3555 = vmatpush.bf16.msrb.mxu3 %v4516_v16  ;;  %v4531_v0 = vld [vmem:[%s5090_s5 + $0xe0] sm:$0xff]  ;;  %v4521_v16 = vld [vmem:[%s5090_s5 + $0x90] sm:$0xff] }
 0xb06   : > { %v2858_v20 = vmul.f32 %v5994_v56, %v5935_v18  ;;  %v6014_v9 = vmul.f32 0.70710677, %v5969_v13  ;;  %v2791_v59 = vmul.f32 %v2790_v37, %v2766_v52  ;;  %v2815_v55 = vmul.f32 %v2814_v63, %v5871_v23 }
 0xb07   : > { %v2879_v22 = vadd.f32 0.0036580483, %v2878_v46  ;;  %v2890_v54 = vadd.f32 0.014752088, %v2889_v1  ;;  %v2670_v44 = vsel %vm5952_vm13, %v5885_v48, %v2665_v25  ;;  %v2740_v31 = vmul.f32 %v5923_v57, %v2739_v60  ;;  %v4522_v48 = vld [vmem:[%s5090_s5 + $0x98] sm:$0xff]  ;;  %3593 = vmatpush.bf16.msrb.mxu2 %v4532_v27  ;;  %v4515_v1 = vld [vmem:[%s5090_s5 + $0x60] sm:$0xff] }
 0xb08   : > { %vm2742_vm4 = vweird.f32 %v5867_v58  ;;  %v2845_v49 = vadd.f32 1.1283791, %v2844_v40  ;;  %v2859_v33 = vsub.f32 1.0, %v2858_v20  ;;  %v2868_v53 = vand.u32 2147483648, %v5935_v18  ;;  %3538 = vmatpush.bf16.msrb.mxu0 %v4506_v45  ;;  %v4530_v45 = vld [vmem:[%s5090_s5 + $0xd8] sm:$0xff] }
 0xb09   : > { %v6025_v42 = vadd.f32 1.0, %v2815_v55  ;;  %v2880_v37 = vmul.f32 %v2879_v22, %v5939_v7  ;;  %v2891_v63 = vmul.f32 %v2890_v54, %v5939_v7  ;;  %vm2863_vm5 = vweird.f32 %v5994_v56  ;;  %3576 = vmatpush.bf16.msra.mxu1 %v4522_v48  ;;  %v2519_v54 = vpop.f32.mrf.mxu3  ;;  %3556 = vmatpush.bf16.msrb.mxu3 %v4515_v1  ;;  %vm6079_vm9 = vmor %vm2742_vm4, %vm2743_vm3 }
 0xb0a   : > { %v2860_v60 = vmul.f32 %v5994_v56, %v2859_v33  ;;  %v2866_v40 = vand.u32 2147483647, %v5935_v18  ;;  %v2803_v46 = vadd.f32 0.18741608, %v2802_v14  ;;  %v4282_v24 = vclamps-f32 %v2791_v59, 1.0 }
 0xb0b   : > { %4724 = vrcp.f32 %v6025_v42  ;;  %v2917_v25 = vadd.f32 0.00028619796, %v2916_v6  ;;  %v2994_v52 = vmul.f32 %v6014_v9, %v6014_v9  ;;  %v2671_v5 = vmul.f32 %v2670_v44, %v5874_v62  ;;  %3594 = vmatpush.bf16.msrb.mxu2 %v4531_v0 }
 0xb0c   : > { %vm6042_vm6 = vcmp.eq.f32.partialorder %v2746_v35, 8.507059e+37  ;;  %v2861_v14 = vadd.f32 %v5994_v56, %v2860_v60  ;;  %vm2862_vm7 = vweird.f32 %v5935_v18  ;;  %v2892_v6 = vadd.f32 0.112945676, %v2891_v63  ;;  %v4505_v35 = vld [vmem:[%s5090_s5 + $0x10] sm:$0xff] }
 0xb0d   : > { %v2741_v59 = vadd.f32 %v5923_v57, %v2740_v31  ;;  %v2846_v55 = vmul.f32 %v2845_v49, %v5752_v38  ;;  %vm2864_vm14 = vmor %vm2862_vm7, %vm2863_vm5  ;;  %v2869_v62 = vor.u32 1.1754944e-38, %v2868_v53  ;;  %v2881_v22 = vadd.f32 0.05243302, %v2880_v37  ;;  %3539 = vmatpush.bf16.msrb.mxu0 %v4505_v35  ;;  %3577 = vmatpush.bf16.msra.mxu1 %v4521_v16  ;;  %v4529_v35 = vld [vmem:[%s5090_s5 + $0xd0] sm:$0xff] }
 0xb0e   : > { %v2865_v27 = vsel %vm2864_vm14, %v5994_v56, %v2861_v14  ;;  %vm2867_vm8 = vcmp.eq.f32.partialorder %v2866_v40, 8.507059e+37  ;;  %v2804_v18 = vmul.f32 %v2803_v46, %v5871_v23  ;;  %v2893_v44 = vmul.f32 %v2892_v6, %v5939_v7  ;;  %v4514_v23 = vld [vmem:[%s5090_s5 + $0x58] sm:$0xff] }
 0xb0f   : > { %v3238_v38 = vadd.f32 1.0, %v4282_v24  ;;  %v2870_v31 = vsel %vm2867_vm8, %v2869_v62, %v2865_v27  ;;  %v2918_v49 = vmul.f32 %v2917_v25, %v5976_v21  ;;  %v6058_v33 = vmin.f32 %v2994_v52, 16.0  ;;  %3557 = vmatpush.bf16.msrb.mxu3 %v4514_v23  ;;  %3595 = vmatpush.bf16.msrb.mxu2 %v4530_v45  ;;  %v4512_v45 = vld [vmem:[%s5090_s5 + $0x48] sm:$0xff] }
 0xb10   : > { %v4279_v53 = vclamps-f32 %v2671_v5, 1.0  ;;  %v2871_v37 = vmul.f32 %v2870_v31, %v2846_v55  ;;  %v2894_v63 = vadd.f32 0.4994258, %v2893_v44  ;;  %v6061_v56 = vadd.f32 %v2519_v54, %v5672_v30  ;;  %v4513_v55 = vld [vmem:[%s5090_s5 + $0x50] sm:$0xff]  ;;  %v2502_v54 = vpop.f32.mrf.mxu0  ;;  %v4503_v44 = vld [vmem:[%s5090_s5] sm:$0xff] }
 0xb11   : > { %v6065_v48 = vpop.eup %4724  ;;  %v6069_v60 = vmul.f32 %v5979_v29, %v5769_v12  ;;  %v6073_v40 = vmul.f32 %v5998_v26, %v5774_v10  ;;  %v6602_v24 = vand.u32 2147483648, %v5867_v58  ;;  %v2882_v52 = vmul.f32 %v2881_v22, %v5939_v7  ;;  %v4504_v12 = vld [vmem:[%s5090_s5 + $0x8] sm:$0xff] }
 0xb12   : > { %v4520_v29 = vld [vmem:[%s5090_s5 + $0x88] sm:$0xff]  ;;  %v2745_v10 = vsel %vm6079_vm9, %v5923_v57, %v2741_v59  ;;  %v4284_v26 = vclamps-f32 %v2871_v37, 1.0  ;;  %v2805_v1 = vadd.f32 1.1283791, %v2804_v18  ;;  %v2818_v0 = vmul.f32 %v6065_v48, %v6025_v42  ;;  %3540 = vmatpush.bf16.msrb.mxu0 %v4504_v12  ;;  %v2557_v37 = vpop.f32.mrf.mxu2  ;;  %v2540_v12 = vpop.f32.mrf.mxu1 }
 0xb13   : > { %v2749_v25 = vor.u32 1.1754944e-38, %v6602_v24  ;;  %v3254_v58 = vmul.f32 %v3238_v38, %v5779_v17  ;;  %v2895_v5 = vmul.f32 %v2894_v63, %v5939_v7  ;;  %v2919_v14 = vadd.f32 0.0036580483, %v2918_v49  ;;  %3578 = vmatpush.bf16.msra.mxu1 %v4520_v29  ;;  %v4519_v38 = vld [vmem:[%s5090_s5 + $0x80] sm:$0xff]  ;;  %3558 = vmatpush.bf16.msrb.mxu3 %v4513_v55 }
 0xb14   : > { %v2996_v6 = vmul.f32 2.1237322e-06, %v6058_v33  ;;  %v3235_v57 = vadd.f32 1.0, %v4279_v53  ;;  %v3240_v59 = vadd.f32 1.0, %v4284_v26  ;;  %v2819_v62 = vsub.f32 1.0, %v2818_v0  ;;  %3596 = vmatpush.bf16.msrb.mxu2 %v4529_v35 }
 0xb15   : > { %v6098_v22 = vmul.f32 0.70710677, %v6061_v56  ;;  %v2750_v17 = vsel %vm6042_vm6, %v2749_v25, %v2745_v10  ;;  %v2828_v16 = vand.u32 2147483648, %v6025_v42  ;;  %v2883_v27 = vadd.f32 0.18741608, %v2882_v52 }
 0xb16   : > { %v6104_v18 = vadd.f32 1.0, %v2895_v5  ;;  %v3256_v31 = vmul.f32 %v3240_v59, %v5788_v43  ;;  %v2820_v49 = vmul.f32 %v6065_v48, %v2819_v62  ;;  %vm2823_vm10 = vweird.f32 %v6065_v48  ;;  %3541 = vmatpush.bf16.msrb.mxu0 %v4503_v44  ;;  %v4528_v43 = vld [vmem:[%s5090_s5 + $0xc8] sm:$0xff]  ;;  %v4527_v5 = vld [vmem:[%s5090_s5 + $0xc0] sm:$0xff] }
 0xb17   : > { %v2826_v53 = vand.u32 2147483647, %v6025_v42  ;;  %v3266_v20 = vpack.c.bf16 %v3254_v58, %v6069_v60  ;;  %v2997_v63 = vadd.f32 0.00028619796, %v2996_v6  ;;  %v6115_v23 = vadd.f32 %v2502_v54, %v5659_v2  ;;  %3579 = vmatpush.bf16.msra.mxu1 %v4519_v38  ;;  %3559 = vmatpush.bf16.msrb.mxu3 %v4512_v45  ;;  %v4511_v58 = vld [vmem:[%s5090_s5 + $0x40] sm:$0xff]  ;;  %v2521_v6 = vpop.f32.mrf.mxu3 }
 0xb18   : > { %4726 = vrcp.f32 %v6104_v18  ;;  %v3268_v46 = vpack.c.bf16 %v3256_v31, %v6073_v40  ;;  %v2821_v24 = vadd.f32 %v6065_v48, %v2820_v49  ;;  %vm2822_vm11 = vweird.f32 %v6025_v42  ;;  %3597 = vmatpush.bf16.msrb.mxu2 %v4528_v43 }
 0xb19   : > { %v2954_v25 = vmul.f32 %v6098_v22, %v6098_v22  ;;  %v6125_v60 = vmul.f32 %v2750_v17, %v5900_v34  ;;  %vm2824_vm12 = vmor %vm2822_vm11, %vm2823_vm10  ;;  %v2829_v2 = vor.u32 1.1754944e-38, %v2828_v16  ;;  %v2884_v52 = vmul.f32 %v2883_v27, %v5939_v7  ;;  %3542 = vmatmul.bf16.vlgmr.msrb.gmra.mxu0 %v3266_v20 }
 0xb1a   : > { %v6131_v40 = vadd.f32 %v2557_v37, %v5677_v8  ;;  %v2806_v42 = vmul.f32 %v2805_v1, %v5830_v15  ;;  %v2825_v29 = vsel %vm2824_vm12, %v6065_v48, %v2821_v24  ;;  %vm2827_vm13 = vcmp.eq.f32.partialorder %v2826_v53, 8.507059e+37  ;;  %3580 = vmatmul.bf16.vlgmr.msra.gmra.mxu1 %v3268_v46  ;;  %v2559_v43 = vpop.f32.mrf.mxu2 }
 0xb1b   : > { %v2920_v34 = vmul.f32 %v2919_v14, %v5976_v21  ;;  %v2563_v10 = vmul.f32 0.5, %v5686_v11  ;;  %v2830_v26 = vsel %vm2827_vm13, %v2829_v2, %v2825_v29  ;;  %v2998_v0 = vmul.f32 %v2997_v63, %v6058_v33  ;;  %3560 = vmatpush.bf16.msrb.mxu3 %v4511_v58 }
 0xb1c   : > { %v6139_v7 = vmul.f32 0.70710677, %v6115_v23  ;;  %v2567_v15 = vmul.f32 0.5, %v5793_v32  ;;  %v2831_v48 = vmul.f32 %v2830_v26, %v2806_v42  ;;  %v6144_v1 = vmin.f32 %v2954_v25, 16.0  ;;  %3598 = vmatpush.bf16.msrb.mxu2 %v4527_v5 }
 0xb1d   : > { %v6147_v14 = vadd.f32 %v2540_v12, %v5661_v3  ;;  %v3251_v55 = vmul.f32 %v3235_v57, %v2563_v10  ;;  %v2885_v59 = vadd.f32 1.1283791, %v2884_v52  ;;  %v6150_v62 = vmul.f32 0.70710677, %v6131_v40 }
 0xb1e   : > { %v4727_v11 = vpop.eup %4726  ;;  %v3074_v54 = vmul.f32 %v6139_v7, %v6139_v7  ;;  %v4281_v35 = vclamps-f32 %v6125_v60, 1.0  ;;  %v4283_v17 = vclamps-f32 %v2831_v48, 1.0  ;;  %v2921_v16 = vadd.f32 0.05243302, %v2920_v34 }
 0xb1f   : > { %v2898_v32 = vmul.f32 %v4727_v11, %v6104_v18  ;;  %v2906_v3 = vand.u32 2147483647, %v6104_v18  ;;  %v2999_v27 = vadd.f32 0.0036580483, %v2998_v0  ;;  %v6160_v57 = vadd.f32 %v2521_v6, %v5672_v30 }
 0xb20   : > { %v6157_v44 = vmin.f32 %v3074_v54, 16.0  ;;  %v3239_v38 = vadd.f32 1.0, %v4283_v17  ;;  %v2956_v49 = vmul.f32 2.1237322e-06, %v6144_v1  ;;  %v6164_v53 = vmul.f32 0.70710677, %v6147_v14 }
 0xb21   : > { %v2899_v31 = vsub.f32 1.0, %v2898_v32  ;;  %v2886_v37 = vmul.f32 %v2885_v59, %v5911_v50  ;;  %v2908_v20 = vand.u32 2147483648, %v6104_v18  ;;  %v3034_v63 = vmul.f32 %v6150_v62, %v6150_v62 }
 0xb22   : > { %v3076_v45 = vmul.f32 2.1237322e-06, %v6157_v44  ;;  %v3255_v46 = vmul.f32 %v3239_v38, %v2567_v15  ;;  %vm2903_vm15 = vweird.f32 %v4727_v11  ;;  %v3154_v24 = vmul.f32 %v6164_v53, %v6164_v53 }
 0xb23   : > { %v2900_v30 = vmul.f32 %v4727_v11, %v2899_v31  ;;  %vm2902_vm0 = vweird.f32 %v6104_v18  ;;  %vm6174_vm1 = vcmp.eq.f32.partialorder %v2906_v3, 8.507059e+37  ;;  %v6179_v60 = vmul.f32 0.70710677, %v6160_v57 }
 0xb24   : > { %v3077_v50 = vadd.f32 0.00028619796, %v3076_v45  ;;  %v3267_v2 = vpack.c.bf16 %v3255_v46, %v3251_v55  ;;  %v6181_v12 = vmin.f32 %v3154_v24, 16.0  ;;  %v6184_v42 = vadd.f32 %v2559_v43, %v5677_v8  ;;  %vm2904_vm2 = vmor %vm2902_vm0, %vm2903_vm15 }
 0xb25   : > { %v2901_v52 = vadd.f32 %v4727_v11, %v2900_v30  ;;  %v2909_v29 = vor.u32 1.1754944e-38, %v2908_v20  ;;  %v2957_v34 = vadd.f32 0.00028619796, %v2956_v49  ;;  %v6186_v10 = vmin.f32 %v3034_v63, 16.0 }
 0xb26   : > { %v3078_v18 = vmul.f32 %v3077_v50, %v6157_v44  ;;  %v3156_v0 = vmul.f32 2.1237322e-06, %v6181_v12  ;;  %v3114_v58 = vmul.f32 %v6179_v60, %v6179_v60  ;;  %3561 = vmatmul.bf16.vlgmr.msrb.gmra.mxu3 %v3267_v2  ;;  %v2927_v5 = vmul.f32 3.8918573e-05, %v5976_v21 }
 0xb27   : > { %v2905_v26 = vsel %vm2904_vm2, %v4727_v11, %v2901_v52  ;;  %v2922_v15 = vmul.f32 %v2921_v16, %v5976_v21  ;;  %v3000_v48 = vmul.f32 %v2999_v27, %v6058_v33  ;;  %v6198_v11 = vmul.f32 0.70710677, %v6184_v42 }
 0xb28   : > { %v2910_v8 = vsel %vm6174_vm1, %v2909_v29, %v2905_v26  ;;  %v3079_v55 = vadd.f32 0.0036580483, %v3078_v18  ;;  %v3157_v59 = vadd.f32 0.00028619796, %v3156_v0  ;;  %v2565_v54 = vmul.f32 0.5, %v5691_v19 }
 0xb29   : > { %v2911_v6 = vmul.f32 %v2910_v8, %v2886_v37  ;;  %v3237_v17 = vadd.f32 1.0, %v4281_v35  ;;  %v2958_v32 = vmul.f32 %v2957_v34, %v6144_v1  ;;  %v2928_v3 = vadd.f32 0.001143296, %v2927_v5 }
 0xb2a   : > { %v3036_v31 = vmul.f32 2.1237322e-06, %v6186_v10  ;;  %v3158_v49 = vmul.f32 %v3157_v59, %v6181_v12  ;;  %v6204_v16 = vmin.f32 %v3114_v58, 16.0  ;;  %v2569_v27 = vmul.f32 0.5, %v5892_v41 }
 0xb2b   : > { %v4285_v38 = vclamps-f32 %v2911_v6, 1.0  ;;  %v2923_v37 = vadd.f32 0.18741608, %v2922_v15  ;;  %v3001_v20 = vadd.f32 0.05243302, %v3000_v48  ;;  %v2929_v63 = vmul.f32 %v2928_v3, %v5976_v21 }
 0xb2c   : > { %v3080_v19 = vmul.f32 %v3079_v55, %v6157_v44  ;;  %v3159_v35 = vadd.f32 0.0036580483, %v3158_v49  ;;  %v3194_v43 = vmul.f32 %v6198_v11, %v6198_v11  ;;  %v3253_v46 = vmul.f32 %v3237_v17, %v2565_v54 }
 0xb2d   : > { %v3241_v45 = vadd.f32 1.0, %v4285_v38  ;;  %v2959_v30 = vadd.f32 0.0036580483, %v2958_v32  ;;  %v2930_v24 = vadd.f32 0.014752088, %v2929_v63  ;;  %v2924_v52 = vmul.f32 %v2923_v37, %v5976_v21 }
 0xb2e   : > { %v3037_v50 = vadd.f32 0.00028619796, %v3036_v31  ;;  %v3116_v2 = vmul.f32 2.1237322e-06, %v6204_v16  ;;  %v3087_v41 = vmul.f32 3.8918573e-05, %v6157_v44  ;;  %v3002_v29 = vmul.f32 %v3001_v20, %v6058_v33 }
 0xb2f   : > { %v3257_v25 = vmul.f32 %v3241_v45, %v2569_v27  ;;  %v3160_v34 = vmul.f32 %v3159_v35, %v6181_v12  ;;  %v2931_v18 = vmul.f32 %v2930_v24, %v5976_v21  ;;  %v3081_v0 = vadd.f32 0.05243302, %v3080_v19 }
 0xb30   : > { %v6217_v58 = vmin.f32 %v3194_v43, 16.0  ;;  %v3088_v5 = vadd.f32 0.001143296, %v3087_v41  ;;  %v6220_v8 = vmul.f32 0.5, %v5914_v36  ;;  %v6223_v15 = vmul.f32 0.5, %v5969_v13 }
 0xb31   : > { %v3269_v26 = vpack.c.bf16 %v3257_v25, %v3253_v46  ;;  %v2960_v48 = vmul.f32 %v2959_v30, %v6144_v1  ;;  %v2932_v6 = vadd.f32 0.112945676, %v2931_v18  ;;  %v3038_v55 = vmul.f32 %v3037_v50, %v6186_v10 }
 0xb32   : > { %v3117_v59 = vadd.f32 0.00028619796, %v3116_v2  ;;  %v3089_v54 = vmul.f32 %v3088_v5, %v6157_v44  ;;  %v3007_v17 = vmul.f32 3.8918573e-05, %v6058_v33  ;;  %v2925_v32 = vadd.f32 1.1283791, %v2924_v52 }
 0xb33   : > { %3599 = vmatmul.bf16.vlgmr.msrb.gmra.mxu2 %v3269_v26  ;;  %v3161_v3 = vadd.f32 0.05243302, %v3160_v34  ;;  %v2933_v38 = vmul.f32 %v2932_v6, %v5976_v21  ;;  %v3167_v36 = vmul.f32 3.8918573e-05, %v6181_v12  ;;  %v3003_v31 = vadd.f32 0.18741608, %v3002_v29 }
 0xb34   : > { %v3082_v13 = vmul.f32 %v3081_v0, %v6157_v44  ;;  %v3196_v49 = vmul.f32 2.1237322e-06, %v6217_v58  ;;  %v3090_v27 = vadd.f32 0.014752088, %v3089_v54  ;;  %v2961_v37 = vadd.f32 0.05243302, %v2960_v48 }
 0xb35   : > { %v2934_v20 = vadd.f32 0.4994258, %v2933_v38  ;;  %v3008_v63 = vadd.f32 0.001143296, %v3007_v17  ;;  %v3039_v45 = vadd.f32 0.0036580483, %v3038_v55  ;;  %v3118_v19 = vmul.f32 %v3117_v59, %v6204_v16 }
 0xb36   : > { %v3091_v35 = vmul.f32 %v3090_v27, %v6157_v44  ;;  %v3168_v43 = vadd.f32 0.001143296, %v3167_v36  ;;  %v3162_v46 = vmul.f32 %v3161_v3, %v6181_v12  ;;  %v2967_v25 = vmul.f32 3.8918573e-05, %v6144_v1 }
 0xb37   : > { %v2935_v30 = vmul.f32 %v2934_v20, %v5976_v21  ;;  %v3009_v24 = vmul.f32 %v3008_v63, %v6058_v33  ;;  %v3083_v50 = vadd.f32 0.18741608, %v3082_v13  ;;  %v3197_v2 = vadd.f32 0.00028619796, %v3196_v49 }
 0xb38   : > { %v3092_v41 = vadd.f32 0.112945676, %v3091_v35  ;;  %v3169_v52 = vmul.f32 %v3168_v43, %v6181_v12  ;;  %v6241_v29 = vmul.f32 %v2925_v32, %v5932_v51  ;;  %v2968_v26 = vadd.f32 0.001143296, %v2967_v25 }
 0xb39   : > { %v6243_v34 = vadd.f32 1.0, %v2935_v30  ;;  %v3010_v18 = vadd.f32 0.014752088, %v3009_v24  ;;  %v3004_v0 = vmul.f32 %v3003_v31, %v6058_v33  ;;  %v3119_v5 = vadd.f32 0.0036580483, %v3118_v19 }
 0xb3a   : > { %v3093_v21 = vmul.f32 %v3092_v41, %v6157_v44  ;;  %v3170_v48 = vadd.f32 0.014752088, %v3169_v52  ;;  %v2962_v6 = vmul.f32 %v2961_v37, %v6144_v1  ;;  %v6249_v55 = vmul.f32 0.5, %v6115_v23 }
 0xb3b   : > { %v3163_v59 = vadd.f32 0.18741608, %v3162_v46  ;;  %4728 = vrcp.f32 %v6243_v34  ;;  %v3040_v51 = vmul.f32 %v3039_v45, %v6186_v10  ;;  %v3084_v54 = vmul.f32 %v3083_v50, %v6157_v44 }
 0xb3c   : > { %v3094_v17 = vadd.f32 0.4994258, %v3093_v21  ;;  %v3011_v32 = vmul.f32 %v3010_v18, %v6058_v33  ;;  %v6256_v3 = vmul.f32 0.5, %v6147_v14  ;;  %v3198_v38 = vmul.f32 %v3197_v2, %v6217_v58 }
 0xb3d   : > { %v3171_v36 = vmul.f32 %v3170_v48, %v6181_v12  ;;  %v2969_v23 = vmul.f32 %v2968_v26, %v6144_v1  ;;  %v3005_v31 = vadd.f32 1.1283791, %v3004_v0  ;;  %v3120_v13 = vmul.f32 %v3119_v5, %v6204_v16 }
 0xb3e   : > { %v3095_v49 = vmul.f32 %v3094_v17, %v6157_v44  ;;  %v3012_v27 = vadd.f32 0.112945676, %v3011_v32  ;;  %v6263_v37 = vadd.f32 0.18741608, %v2962_v6  ;;  %v3164_v20 = vmul.f32 %v3163_v59, %v6181_v12 }
 0xb3f   : > { %v3172_v63 = vadd.f32 0.112945676, %v3171_v36  ;;  %v2970_v45 = vadd.f32 0.014752088, %v2969_v23  ;;  %v6266_v14 = vadd.f32 0.05243302, %v3040_v51  ;;  %v6282_v52 = vmul.f32 %v3005_v31, %v6014_v9 }
 0xb40   : > { %v3085_v19 = vadd.f32 1.1283791, %v3084_v54  ;;  %v6268_v35 = vadd.f32 1.0, %v3095_v49  ;;  %v3013_v43 = vmul.f32 %v3012_v27, %v6058_v33  ;;  %v6271_v30 = vadd.f32 0.0036580483, %v3198_v38 }
 0xb41   : > { %v4729_v46 = vpop.eup %4728  ;;  %v3173_v24 = vmul.f32 %v3172_v63, %v6181_v12  ;;  %v2971_v44 = vmul.f32 %v2970_v45, %v6144_v1  ;;  %v3127_v25 = vmul.f32 3.8918573e-05, %v6204_v16  ;;  %v6276_v50 = vadd.f32 0.05243302, %v3120_v13 }
 0xb42   : > { %v2938_v2 = vmul.f32 %v4729_v46, %v6243_v34  ;;  %4730 = vrcp.f32 %v6268_v35  ;;  %v3047_v41 = vmul.f32 3.8918573e-05, %v6186_v10  ;;  %v3165_v18 = vadd.f32 1.1283791, %v3164_v20 }
 0xb43   : > { %v2948_v26 = vand.u32 2147483648, %v6243_v34  ;;  %v3014_v0 = vadd.f32 0.4994258, %v3013_v43  ;;  %v6286_v5 = vmul.f32 %v3085_v19, %v6139_v7  ;;  %v3174_v48 = vadd.f32 0.4994258, %v3173_v24 }
 0xb44   : > { %v2939_v21 = vsub.f32 1.0, %v2938_v2  ;;  %v2972_v6 = vadd.f32 0.112945676, %v2971_v44  ;;  %vm2943_vm3 = vweird.f32 %v4729_v46  ;;  %v2946_v59 = vand.u32 2147483647, %v6243_v34 }
 0xb45   : > { %v3015_v51 = vmul.f32 %v3014_v0, %v6058_v33  ;;  %v3128_v54 = vadd.f32 0.001143296, %v3127_v25  ;;  %v3175_v9 = vmul.f32 %v3174_v48, %v6181_v12  ;;  %v3048_v38 = vadd.f32 0.001143296, %v3047_v41 }
 0xb46   : > { %v2940_v17 = vmul.f32 %v4729_v46, %v2939_v21  ;;  %v2973_v32 = vmul.f32 %v2972_v6, %v6144_v1  ;;  %vm2942_vm4 = vweird.f32 %v6243_v34  ;;  %v2949_v36 = vor.u32 1.1754944e-38, %v2948_v26 }
 0xb47   : > { %v6293_v7 = vadd.f32 1.0, %v3015_v51  ;;  %v3207_v23 = vmul.f32 3.8918573e-05, %v6217_v58  ;;  %v3106_v49 = vand.u32 2147483647, %v6268_v35  ;;  %v3108_v33 = vand.u32 2147483648, %v6268_v35  ;;  %vm2944_vm5 = vmor %vm2942_vm4, %vm2943_vm3 }
 0xb48   : > { %v4731_v31 = vpop.eup %4730  ;;  %v2941_v13 = vadd.f32 %v4729_v46, %v2940_v17  ;;  %v6298_v27 = vadd.f32 1.0, %v3175_v9  ;;  %v2974_v34 = vadd.f32 0.4994258, %v2973_v32  ;;  %v3129_v20 = vmul.f32 %v3128_v54, %v6204_v16 }
 0xb49   : > { %v3098_v12 = vmul.f32 %v4731_v31, %v6268_v35  ;;  %4732 = vrcp.f32 %v6293_v7  ;;  %vm2947_vm6 = vcmp.eq.f32.partialorder %v2946_v59, 8.507059e+37  ;;  %v3049_v45 = vmul.f32 %v3048_v38, %v6186_v10 }
 0xb4a   : > { %v2945_v63 = vsel %vm2944_vm5, %v4729_v46, %v2941_v13  ;;  %4734 = vrcp.f32 %v6298_v27  ;;  %v6307_v19 = vmul.f32 %v3165_v18, %v6164_v53  ;;  %vm3102_vm7 = vweird.f32 %v6268_v35 }
 0xb4b   : > { %v2950_v43 = vsel %vm2947_vm6, %v2949_v36, %v2945_v63  ;;  %v3099_v24 = vsub.f32 1.0, %v3098_v12  ;;  %vm6311_vm14 = vcmp.eq.f32.partialorder %v3106_v49, 8.507059e+37  ;;  %v3109_v2 = vor.u32 1.1754944e-38, %v3108_v33 }
 0xb4c   : > { %v2951_v44 = vmul.f32 %v2950_v43, %v6241_v29  ;;  %v3208_v46 = vadd.f32 0.001143296, %v3207_v23  ;;  %vm3103_vm8 = vweird.f32 %v4731_v31  ;;  %v2975_v26 = vmul.f32 %v2974_v34, %v6144_v1 }
 0xb4d   : > { %v3100_v41 = vmul.f32 %v4731_v31, %v3099_v24  ;;  %v3130_v0 = vadd.f32 0.014752088, %v3129_v20  ;;  %vm3022_vm9 = vweird.f32 %v6293_v7  ;;  %v3026_v53 = vand.u32 2147483647, %v6293_v7  ;;  %vm3104_vm11 = vmor %vm3102_vm7, %vm3103_vm8 }
 0xb4e   : > { %v3028_v18 = vand.u32 2147483648, %v6293_v7  ;;  %v3050_v21 = vadd.f32 0.014752088, %v3049_v45  ;;  %v4286_v29 = vclamps-f32 %v2951_v44, 1.0  ;;  %vm3182_vm10 = vweird.f32 %v6298_v27 }
 0xb4f   : > { %v4733_v48 = vpop.eup %4732  ;;  %v3101_v6 = vadd.f32 %v4731_v31, %v3100_v41  ;;  %v6320_v59 = vadd.f32 1.0, %v2975_v26  ;;  %v3131_v17 = vmul.f32 %v3130_v0, %v6204_v16  ;;  %v3209_v32 = vmul.f32 %v3208_v46, %v6217_v58 }
 0xb50   : > { %v4735_v51 = vpop.eup %4734  ;;  %v3018_v54 = vmul.f32 %v4733_v48, %v6293_v7  ;;  %v3051_v9 = vmul.f32 %v3050_v21, %v6186_v10  ;;  %v3186_v23 = vand.u32 2147483647, %v6298_v27  ;;  %vm6333_vm12 = vcmp.eq.f32.partialorder %v3026_v53, 8.507059e+37 }
 0xb51   : > { %v3105_v38 = vsel %vm3104_vm11, %v4731_v31, %v3101_v6  ;;  %v3178_v36 = vmul.f32 %v4735_v51, %v6298_v27  ;;  %4736 = vrcp.f32 %v6320_v59  ;;  %v3188_v33 = vand.u32 2147483648, %v6298_v27 }
 0xb52   : > { %v3110_v13 = vsel %vm6311_vm14, %v3109_v2, %v3105_v38  ;;  %v3019_v35 = vsub.f32 1.0, %v3018_v54  ;;  %v3242_v34 = vadd.f32 1.0, %v4286_v29  ;;  %vm3023_vm13 = vweird.f32 %v4733_v48 }
 0xb53   : > { %v3111_v12 = vmul.f32 %v3110_v13, %v6286_v5  ;;  %v3179_v31 = vsub.f32 1.0, %v3178_v36  ;;  %v3132_v63 = vadd.f32 0.112945676, %v3131_v17  ;;  %v3052_v45 = vadd.f32 0.112945676, %v3051_v9  ;;  %vm3024_vm1 = vmor %vm3022_vm9, %vm3023_vm13 }
 0xb54   : > { %v3020_v20 = vmul.f32 %v4733_v48, %v3019_v35  ;;  %v3210_v43 = vadd.f32 0.014752088, %v3209_v32  ;;  %v3029_v44 = vor.u32 1.1754944e-38, %v3028_v18  ;;  %vm3183_vm15 = vweird.f32 %v4735_v51 }
 0xb55   : > { %v4290_v24 = vclamps-f32 %v3111_v12, 1.0  ;;  %v3180_v25 = vmul.f32 %v4735_v51, %v3179_v31  ;;  %vm6339_vm0 = vcmp.eq.f32.partialorder %v3186_v23, 8.507059e+37  ;;  %v3133_v41 = vmul.f32 %v3132_v63, %v6204_v16  ;;  %vm3184_vm2 = vmor %vm3182_vm10, %vm3183_vm15 }
 0xb56   : > { %v3021_v2 = vadd.f32 %v4733_v48, %v3020_v20  ;;  %v3053_v5 = vmul.f32 %v3052_v45, %v6186_v10  ;;  %v3189_v18 = vor.u32 1.1754944e-38, %v3188_v33  ;;  %v3211_v21 = vmul.f32 %v3210_v43, %v6217_v58 }
 0xb57   : > { %v6345_v26 = vpop.eup %4736  ;;  %v3246_v0 = vadd.f32 1.0, %v4290_v24  ;;  %v3181_v53 = vadd.f32 %v4735_v51, %v3180_v25  ;;  %v3258_v29 = vmul.f32 %v3242_v34, %v6220_v8  ;;  %v3134_v17 = vadd.f32 0.4994258, %v3133_v41 }
 0xb58   : > { %v3025_v6 = vsel %vm3024_vm1, %v4733_v48, %v3021_v2  ;;  %v2978_v54 = vmul.f32 %v6345_v26, %v6320_v59  ;;  %v3054_v38 = vadd.f32 0.4994258, %v3053_v5  ;;  %v3212_v33 = vadd.f32 0.112945676, %v3211_v21 }
 0xb59   : > { %v3262_v9 = vmul.f32 %v3246_v0, %v6249_v55  ;;  %v3030_v7 = vsel %vm6333_vm12, %v3029_v44, %v3025_v6  ;;  %v3185_v32 = vsel %vm3184_vm2, %v4735_v51, %v3181_v53  ;;  %v3135_v27 = vmul.f32 %v3134_v17, %v6204_v16 }
 0xb5a   : > { %v3031_v36 = vmul.f32 %v3030_v7, %v6282_v52  ;;  %v3190_v8 = vsel %vm6339_vm0, %v3189_v18, %v3185_v32  ;;  %v2979_v48 = vsub.f32 1.0, %v2978_v54  ;;  %v3055_v35 = vmul.f32 %v3054_v38, %v6186_v10 }
 0xb5b   : > { %v3270_v23 = vpack.c.bf16 %v3262_v9, %v3258_v29  ;;  %v3191_v13 = vmul.f32 %v3190_v8, %v6307_v19  ;;  %v3122_v55 = vmul.f32 %v6276_v50, %v6204_v16  ;;  %v6368_v12 = vadd.f32 1.0, %v3135_v27 }
 0xb5c   : > { %v4288_v49 = vclamps-f32 %v3031_v36, 1.0  ;;  %v2980_v51 = vmul.f32 %v6345_v26, %v2979_v48  ;;  %v2964_v52 = vmul.f32 %v6263_v37, %v6144_v1  ;;  %v3042_v34 = vmul.f32 %v6266_v14, %v6186_v10 }
 0xb5d   : > { %3547 = vmatmul.bf16.gmra.mxu0 %v3270_v23  ;;  %v4292_v31 = vclamps-f32 %v3191_v13, 1.0  ;;  %v6374_v19 = vadd.f32 1.0, %v3055_v35  ;;  %v3200_v20 = vmul.f32 %v6271_v30, %v6217_v58  ;;  %4738 = vrcp.f32 %v6368_v12 }
 0xb5e   : > { %v3244_v63 = vadd.f32 1.0, %v4288_v49  ;;  %v3213_v50 = vmul.f32 %v3212_v33, %v6217_v58  ;;  %v2981_v43 = vadd.f32 %v6345_v26, %v2980_v51  ;;  %vm2983_vm3 = vweird.f32 %v6345_v26 }
 0xb5f   : > { %v3248_v45 = vadd.f32 1.0, %v4292_v31  ;;  %4740 = vrcp.f32 %v6374_v19  ;;  %v3123_v1 = vadd.f32 0.18741608, %v3122_v55  ;;  %v2988_v37 = vand.u32 2147483648, %v6320_v59 }
 0xb60   : > { %v3260_v14 = vmul.f32 %v3244_v63, %v6223_v15  ;;  %vm2982_vm4 = vweird.f32 %v6320_v59  ;;  %v2986_v30 = vand.u32 2147483647, %v6320_v59  ;;  %v3201_v44 = vadd.f32 0.05243302, %v3200_v20 }
 0xb61   : > { %v3264_v24 = vmul.f32 %v3248_v45, %v6256_v3  ;;  %vm6388_vm5 = vmor %vm2982_vm4, %vm2983_vm3  ;;  %v3214_v2 = vadd.f32 0.4994258, %v3213_v50  ;;  %v2965_v46 = vadd.f32 1.1283791, %v2964_v52  ;;  %v3043_v41 = vadd.f32 0.18741608, %v3042_v34 }
 0xb62   : > { %v2985_v0 = vsel %vm6388_vm5, %v6345_v26, %v2981_v43  ;;  %v3124_v3 = vmul.f32 %v3123_v1, %v6204_v16  ;;  %v2989_v53 = vor.u32 1.1754944e-38, %v2988_v37  ;;  %vm2987_vm6 = vcmp.eq.f32.partialorder %v2986_v30, 8.507059e+37 }
 0xb63   : > { %v3272_v5 = vpack.c.bf16 %v3264_v24, %v3260_v14  ;;  %v4739_v15 = vpop.eup %4738  ;;  %v3215_v18 = vmul.f32 %v3214_v2, %v6217_v58  ;;  %v3202_v29 = vmul.f32 %v3201_v44, %v6217_v58  ;;  %v2966_v9 = vmul.f32 %v2965_v46, %v6098_v22 }
 0xb64   : > { %v3138_v21 = vmul.f32 %v4739_v15, %v6368_v12  ;;  %v2990_v6 = vsel %vm2987_vm6, %v2989_v53, %v2985_v0  ;;  %v3044_v26 = vmul.f32 %v3043_v41, %v6186_v10  ;;  %v3125_v16 = vadd.f32 1.1283791, %v3124_v3 }
 0xb65   : > { %v4741_v59 = vpop.eup %4740  ;;  %3585 = vmatmul.bf16.gmra.mxu1 %v3272_v5  ;;  %v3216_v17 = vadd.f32 1.0, %v3215_v18  ;;  %v3148_v32 = vand.u32 2147483648, %v6368_v12  ;;  %v2991_v36 = vmul.f32 %v2990_v6, %v2966_v9  ;;  %vm3143_vm7 = vweird.f32 %v4739_v15 }
 0xb66   : > { %v3058_v54 = vmul.f32 %v4741_v59, %v6374_v19  ;;  %v3139_v7 = vsub.f32 1.0, %v3138_v21  ;;  %v3146_v48 = vand.u32 2147483647, %v6368_v12  ;;  %v3203_v27 = vadd.f32 0.18741608, %v3202_v29 }
 0xb67   : > { %4742 = vrcp.f32 %v3216_v17  ;;  %vm3063_vm14 = vweird.f32 %v4741_v59  ;;  %v3068_v13 = vand.u32 2147483648, %v6374_v19  ;;  %vm3142_vm8 = vweird.f32 %v6368_v12 }
 0xb68   : > { %v3059_v38 = vsub.f32 1.0, %v3058_v54  ;;  %v3140_v8 = vmul.f32 %v4739_v15, %v3139_v7  ;;  %v3066_v22 = vand.u32 2147483647, %v6374_v19  ;;  %v3045_v10 = vadd.f32 1.1283791, %v3044_v26  ;;  %vm3144_vm9 = vmor %vm3142_vm8, %vm3143_vm7 }
 0xb69   : > { %v3149_v33 = vor.u32 1.1754944e-38, %v3148_v32  ;;  %vm3062_vm10 = vweird.f32 %v6374_v19  ;;  %v3126_v49 = vmul.f32 %v3125_v16, %v6179_v60  ;;  %v4287_v51 = vclamps-f32 %v2991_v36, 1.0  ;;  %v4629_v7 = vld [vmem:[%s785_s0] ss:$0 sm:$0xff] }
 0xb6a   : > { %v3060_v23 = vmul.f32 %v4741_v59, %v3059_v38  ;;  %v3141_v35 = vadd.f32 %v4739_v15, %v3140_v8  ;;  %vm3147_vm11 = vcmp.eq.f32.partialorder %v3146_v48, 8.507059e+37  ;;  %vm3064_vm12 = vmor %vm3062_vm10, %vm3063_vm14  ;;  %v3204_v31 = vmul.f32 %v3203_v27, %v6217_v58 }
 0xb6b   : > { %v3069_v12 = vor.u32 1.1754944e-38, %v3068_v13  ;;  %vm3067_vm13 = vcmp.eq.f32.partialorder %v3066_v22, 8.507059e+37  ;;  %v2571_v43 = vmul.f32 0.5, %v6061_v56  ;;  %v3046_v19 = vmul.f32 %v3045_v10, %v6150_v62 }
 0xb6c   : > { %v3061_v55 = vadd.f32 %v4741_v59, %v3060_v23  ;;  %v3145_v52 = vsel %vm3144_vm9, %v4739_v15, %v3141_v35  ;;  %v3243_v60 = vadd.f32 1.0, %v4287_v51  ;;  %v2575_v24 = vmul.f32 0.5, %v6160_v57 }
 0xb6d   : > { %v4743_v34 = vpop.eup %4742  ;;  %v3150_v20 = vsel %vm3147_vm11, %v3149_v33, %v3145_v52  ;;  %v3205_v30 = vadd.f32 1.1283791, %v3204_v31  ;;  %v3226_v44 = vand.u32 2147483647, %v3216_v17  ;;  %v3228_v25 = vand.u32 2147483648, %v3216_v17 }
 0xb6e   : > { %v3065_v63 = vsel %vm3064_vm12, %v4741_v59, %v3061_v55  ;;  %v3151_v50 = vmul.f32 %v3150_v20, %v3126_v49  ;;  %v3218_v45 = vmul.f32 %v4743_v34, %v3216_v17  ;;  %vm3223_vm15 = vweird.f32 %v4743_v34 }
 0xb6f   : > { %v3070_v1 = vsel %vm3067_vm13, %v3069_v12, %v3065_v63  ;;  %v3259_v41 = vmul.f32 %v3243_v60, %v2571_v43  ;;  %vm3222_vm0 = vweird.f32 %v3216_v17  ;;  %v3206_v56 = vmul.f32 %v3205_v30, %v6198_v11 }
 0xb70   : > { %v4291_v37 = vclamps-f32 %v3151_v50, 1.0  ;;  %v3219_v14 = vsub.f32 1.0, %v3218_v45  ;;  %v3071_v2 = vmul.f32 %v3070_v1, %v3046_v19  ;;  %vm3224_vm1 = vmor %vm3222_vm0, %vm3223_vm15  ;;  %v3229_v62 = vor.u32 1.1754944e-38, %v3228_v25 }
 0xb71   : > { %vm3227_vm2 = vcmp.eq.f32.partialorder %v3226_v44, 8.507059e+37  ;;  %v2573_v29 = vmul.f32 0.5, %v6131_v40  ;;  %v2577_v6 = vmul.f32 0.5, %v6184_v42 }
 0xb72   : > { %v3247_v58 = vadd.f32 1.0, %v4291_v37  ;;  %v3220_v46 = vmul.f32 %v4743_v34, %v3219_v14  ;;  %v4289_v3 = vclamps-f32 %v3071_v2, 1.0 }
 0xb74   : > { %v3263_v5 = vmul.f32 %v3247_v58, %v2575_v24  ;;  %v3221_v0 = vadd.f32 %v4743_v34, %v3220_v46  ;;  %v3245_v21 = vadd.f32 1.0, %v4289_v3 }
 0xb76   : > { %v3271_v15 = vpack.c.bf16 %v3263_v5, %v3259_v41  ;;  %v3225_v53 = vsel %vm3224_vm1, %v4743_v34, %v3221_v0  ;;  %v3261_v17 = vmul.f32 %v3245_v21, %v2573_v29 }
 0xb77   : > { %v3230_v57 = vsel %vm3227_vm2, %v3229_v62, %v3225_v53 }
 0xb78   : > { %3566 = vmatmul.bf16.gmra.mxu3 %v3271_v15  ;;  %v3231_v18 = vmul.f32 %v3230_v57, %v3206_v56 }
 0xb7a   : > { %v4293_v59 = vclamps-f32 %v3231_v18, 1.0 }
 0xb7c   : > { %v3249_v54 = vadd.f32 1.0, %v4293_v59 }
 0xb7e   : > { %v3265_v9 = vmul.f32 %v3249_v54, %v2577_v6 }
 0xb80   : > { %v3273_v11 = vpack.c.bf16 %v3265_v9, %v3261_v17 }
 0xb82   : > { %3604 = vmatmul.bf16.gmra.mxu2 %v3273_v11 }
 0xb96   : > { %v3543_v26 = vpop.f32.mrf.mxu0 }
 0xb97   : > { %v3544_v32 = vadd.f32 %v4629_v7, %v3543_v26  ;;  %v3581_v36 = vpop.f32.mrf.mxu1 }
 0xb9e   : > { %v3545_v8 = vpop.f32.mrf.mxu0 }
 0xb9f   : > { %v3546_v27 = vadd.f32 %v4629_v7, %v3545_v8  ;;  %v3583_v22 = vpop.f32.mrf.mxu1 }
 0xba9   : > { %v3562_v16 = vpop.f32.mrf.mxu3 }
 0xbaa   : > { %v3563_v38 = vadd.f32 %v3562_v16, %v3544_v32 }
 0xbac   : > { %v3582_v48 = vadd.f32 %v3581_v36, %v3563_v38 }
 0xbb1   : > { %v3564_v40 = vpop.f32.mrf.mxu3 }
 0xbb2   : > { %v3565_v13 = vadd.f32 %v3564_v40, %v3546_v27 }
 0xbb4   : > { %v3584_v10 = vadd.f32 %v3583_v22, %v3565_v13 }
 0xbb6   : > { %v3600_v42 = vpop.f32.mrf.mxu2 }
 0xbb7   : > { %v3601_v23 = vadd.f32 %v3600_v42, %v3582_v48 }
 0xbb9   : > { %v3610_v35 = vadd.f32 %v3601_v23, %v5538_v28 }
 0xbbb   : > { %3614 = vst [vmem:[#allocation2 + $0x10] sm:$0xff] %v3610_v35 }
 0xbbe   : > { %v3602_v33 = vpop.f32.mrf.mxu2 }
 0xbbf   : > { %v3603_v55 = vadd.f32 %v3602_v33, %v3584_v10 }
 0xbc1   : > { %v3611_v49 = vadd.f32 %v3603_v55, %v5541_v47 }
 0xbc3   : > { %3615 = vst [vmem:[#allocation2] sm:$0xff] %v3611_v49 }
 0xbda   : > { %v3548_v51 = vpop.f32.mrf.mxu0 }
 0xbdb   : > { %v3549_v34 = vadd.f32 %v4629_v7, %v3548_v51 }
 0xbe2   : > { %v3586_v20 = vpop.f32.mrf.mxu1  ;;  %v3550_v63 = vpop.f32.mrf.mxu0 }
 0xbe3   : > { %v3551_v45 = vadd.f32 %v4629_v7, %v3550_v63 }
 0xbea   : > { %v3588_v37 = vpop.f32.mrf.mxu1 }
 0xbfb   : > { %v3567_v52 = vpop.f32.mrf.mxu3 }
 0xbfc   : > { %v3568_v31 = vadd.f32 %v3567_v52, %v3549_v34 }
 0xbfe   : > { %v3587_v12 = vadd.f32 %v3586_v20, %v3568_v31 }
 0xc03   : > { %v3569_v50 = vpop.f32.mrf.mxu3 }
 0xc04   : > { %v3570_v28 = vadd.f32 %v3569_v50, %v3551_v45 }
 0xc05   : > { %v3605_v43 = vpop.f32.mrf.mxu2 }
 0xc06   : > { %v3606_v1 = vadd.f32 %v3605_v43, %v3587_v12  ;;  %v3589_v60 = vadd.f32 %v3588_v37, %v3570_v28 }
 0xc08   : > { %v3612_v19 = vadd.f32 %v3606_v1, %v5546_v61 }
 0xc0a   : > { %3616 = vst [vmem:[#allocation2 + $0x18] sm:$0xff] %v3612_v19 }
 0xc0d   : > { %v3607_v14 = vpop.f32.mrf.mxu2 }
 0xc0e   : > { %v3608_v47 = vadd.f32 %v3607_v14, %v3589_v60  ;;  %3621 = sbr.rel (%p4422_p1) target bundleno = 3367 (0xd27), region = 100 }
 0xc10   : > { %v3613_v24 = vadd.f32 %v3608_v47, %v5549_v4 }
 0xc12   : > { %3617 = vst [vmem:[#allocation2 + $0x8] sm:$0xff] %v3613_v24 }
 0xc13   : > { %3628 = vadd.xlane.f32.xlu1 %v3612_v19  ;;  %3624 = vadd.xlane.f32.xlu0 %v3610_v35  ;;  %v4748_v10 = vld [vmem:[%s6614_s27] ss:$0 sm:$0xff] }
 0xc14   : > { %v4749_v34 = vld [vmem:[%s6615_s21] ss:$0 sm:$0xff] }
 0xc1b   : > { %3630 = vadd.xlane.f32.xlu1 %v3613_v24  ;;  %3626 = vadd.xlane.f32.xlu0 %v3611_v49 }
 0xc86   : > { %v3629_v30 = vpop.xlane.xlu1 %3628  ;;  %v3625_v44 = vpop.xlane.xlu0 %3624 }
 0xc87   : > { %v3634_v25 = vmul.f32 %v3629_v30, %v5142_v39  ;;  %v3632_v61 = vmul.f32 %v3625_v44, %v5142_v39 }
 0xc89   : > { %v3638_v58 = vsub.f32 %v3612_v19, %v3634_v25  ;;  %v3636_v2 = vsub.f32 %v3610_v35, %v3632_v61 }
 0xc8b   : > { %v3642_v46 = vmul.f32 %v3638_v58, %v3638_v58  ;;  %v3640_v41 = vmul.f32 %v3636_v2, %v3636_v2 }
 0xc8d   : > { %3648 = vadd.xlane.f32.xlu0 %v3642_v46  ;;  %3644 = vadd.xlane.f32.xlu2 %v3640_v41 }
 0xc8e   : > { %v3631_v4 = vpop.xlane.xlu1 %3630  ;;  %v3627_v5 = vpop.xlane.xlu0 %3626 }
 0xc8f   : > { %v3635_v0 = vmul.f32 %v3631_v4, %v5142_v39  ;;  %v3633_v56 = vmul.f32 %v3627_v5, %v5142_v39 }
 0xc91   : > { %v6430_v62 = vsub.f32 %v3613_v24, %v3635_v0  ;;  %v6432_v15 = vsub.f32 %v3611_v49, %v3633_v56 }
 0xc93   : > { %v3643_v3 = vmul.f32 %v6430_v62, %v6430_v62  ;;  %v3641_v53 = vmul.f32 %v6432_v15, %v6432_v15 }
 0xc95   : > { %3650 = vadd.xlane.f32.xlu1 %v3643_v3  ;;  %3646 = vadd.xlane.f32.xlu2 %v3641_v53 }
 0xd00   : > { %v3645_v57 = vpop.xlane.xlu2 %3644  ;;  %v3649_v18 = vpop.xlane.xlu0 %3648 }
 0xd01   : > { %v3652_v59 = vmul.f32 %v3645_v57, %v5142_v39  ;;  %v3654_v21 = vmul.f32 %v3649_v18, %v5142_v39 }
 0xd03   : > { %v3656_v29 = vadd.f32 1e-06, %v3652_v59  ;;  %v3658_v6 = vadd.f32 1e-06, %v3654_v21 }
 0xd05   : > { %4750 = vrsqrt.f32 %v3656_v29  ;;  %vm3666_vm5 = vweird.f32 %v3656_v29  ;;  %vm3686_vm7 = vweird.f32 %v3658_v6 }
 0xd06   : > { %4752 = vrsqrt.f32 %v3658_v6 }
 0xd08   : > { %v3651_v54 = vpop.xlane.xlu1 %3650  ;;  %v3647_v17 = vpop.xlane.xlu2 %3646 }
 0xd09   : > { %v3655_v9 = vmul.f32 %v3651_v54, %v5142_v39  ;;  %v3653_v11 = vmul.f32 %v3647_v17, %v5142_v39 }
 0xd0b   : > { %v4751_v26 = vpop.eup %4750  ;;  %v3659_v7 = vadd.f32 1e-06, %v3655_v9  ;;  %v3657_v16 = vadd.f32 1e-06, %v3653_v11 }
 0xd0c   : > { %v4753_v32 = vpop.eup %4752  ;;  %v3661_v38 = vmul.f32 %v4751_v26, %v3656_v29  ;;  %vm3667_vm3 = vweird.f32 %v4751_v26 }
 0xd0d   : > { %v3681_v36 = vmul.f32 %v4753_v32, %v3658_v6  ;;  %4754 = vrsqrt.f32 %v3659_v7  ;;  %vm3687_vm4 = vweird.f32 %v4753_v32  ;;  %vm3668_vm6 = vmor %vm3666_vm5, %vm3667_vm3  ;;  %vm3696_vm10 = vweird.f32 %v3659_v7 }
 0xd0e   : > { %v3662_v8 = vmul.f32 %v4751_v26, %v3661_v38  ;;  %4756 = vrsqrt.f32 %v3657_v16  ;;  %vm3688_vm14 = vmor %vm3686_vm7, %vm3687_vm4  ;;  %vm3676_vm12 = vweird.f32 %v3657_v16 }
 0xd0f   : > { %v3682_v48 = vmul.f32 %v4753_v32, %v3681_v36 }
 0xd10   : > { %v3663_v40 = vmul.f32 0.5, %v3662_v8 }
 0xd11   : > { %v3683_v27 = vmul.f32 0.5, %v3682_v48 }
 0xd12   : > { %v3664_v42 = vsub.f32 1.5, %v3663_v40 }
 0xd13   : > { %v4755_v23 = vpop.eup %4754  ;;  %v3684_v13 = vsub.f32 1.5, %v3683_v27 }
 0xd14   : > { %v4757_v35 = vpop.eup %4756  ;;  %v3665_v22 = vmul.f32 %v4751_v26, %v3664_v42  ;;  %v3691_v39 = vmul.f32 %v4755_v23, %v3659_v7  ;;  %vm3697_vm8 = vweird.f32 %v4755_v23 }
 0xd15   : > { %v3685_v33 = vmul.f32 %v4753_v32, %v3684_v13  ;;  %v3671_v55 = vmul.f32 %v4757_v35, %v3657_v16  ;;  %vm3677_vm9 = vweird.f32 %v4757_v35  ;;  %vm3698_vm11 = vmor %vm3696_vm10, %vm3697_vm8 }
 0xd16   : > { %v3669_v49 = vsel %vm3668_vm6, %v4751_v26, %v3665_v22  ;;  %v3692_v51 = vmul.f32 %v4755_v23, %v3691_v39  ;;  %vm3678_vm13 = vmor %vm3676_vm12, %vm3677_vm9 }
 0xd17   : > { %v3700_v52 = vmul.f32 %v3669_v49, %v3636_v2  ;;  %v3689_v31 = vsel %vm3688_vm14, %v4753_v32, %v3685_v33  ;;  %v3672_v20 = vmul.f32 %v4757_v35, %v3671_v55 }
 0xd18   : > { %v3702_v63 = vmul.f32 %v3689_v31, %v3638_v58  ;;  %v3693_v12 = vmul.f32 0.5, %v3692_v51 }
 0xd19   : > { %v3707_v50 = vmul.f32 %v4748_v10, %v3700_v52  ;;  %v3673_v45 = vmul.f32 0.5, %v3672_v20 }
 0xd1a   : > { %v3709_v43 = vmul.f32 %v4748_v10, %v3702_v63  ;;  %v3694_v1 = vsub.f32 1.5, %v3693_v12 }
 0xd1b   : > { %v3714_v28 = vadd.f32 %v4749_v34, %v3707_v50  ;;  %v3674_v19 = vsub.f32 1.5, %v3673_v45 }
 0xd1c   : > { %v3716_v37 = vadd.f32 %v4749_v34, %v3709_v43  ;;  %v3695_v60 = vmul.f32 %v4755_v23, %v3694_v1 }
 0xd1d   : > { %3718 = vst [vmem:[%s5096_s6] sm:$0xff] %v3714_v28  ;;  %v3675_v14 = vmul.f32 %v4757_v35, %v3674_v19 }
 0xd1e   : > { %3720 = vst [vmem:[%s5096_s6 + $0x10] sm:$0xff] %v3716_v37  ;;  %v3699_v47 = vsel %vm3698_vm11, %v4755_v23, %v3695_v60 }
 0xd1f   : > { %v3703_v24 = vmul.f32 %v3699_v47, %v6430_v62  ;;  %v3679_v30 = vsel %vm3678_vm13, %v4757_v35, %v3675_v14 }
 0xd20   : > { %v3701_v44 = vmul.f32 %v3679_v30, %v6432_v15 }
 0xd21   : > { %v3710_v25 = vmul.f32 %v4748_v10, %v3703_v24 }
 0xd22   : > { %v3708_v61 = vmul.f32 %v4748_v10, %v3701_v44 }
 0xd23   : > { %v3717_v58 = vadd.f32 %v4749_v34, %v3710_v25 }
 0xd24   : > { %v3715_v2 = vadd.f32 %v4749_v34, %v3708_v61 }
 0xd25   : > { %3721 = vst [vmem:[%s5096_s6 + $0x18] sm:$0xff] %v3717_v58 }
 0xd26   : > { %3719 = vst [vmem:[%s5096_s6 + $0x8] sm:$0xff] %v3715_v2 }
 0xd27 PF: > { %s6616_s20 = sld [smem:[#allocation10_spill]]  ;;  %s3735_s17 = sshll.u32 %s5096_s6, 4  ;;  %s3736_s17 = int_to_ptr.vmem [resolvable:$true] %s3735_s17 }
 0xd28   : > { %s6617_s30 = sld [smem:[#allocation7_spill]] }
 0xd29   : > { %s6619_s1 = sld [smem:[#allocation29_spill]] }
 0xd2d   : > { %s4535_s22 = sshll.u32 %s6616_s20, 5 }
 0xd2e   : > { %s6621_s18 = sand.u32 1, %s6617_s30  }
 0xd2f   : > { %s6620_s16 = smov %s6619_s1  ;;  %s3734_s19 = scalar_lea.hbm %s6619_s1, %s4535_s22 }
 0xd30   : > { %s3737_s28 = sshll.u32 %s3734_s19, 4  ;;  %s3723_s5 = scalar_lea.sflag [#allocation4], %s6621_s18  ;;  %s3738_s28 = int_to_ptr.hbm [resolvable:$true] %s3737_s28 }
 0xd31   : > { %s4772_s25 = sshra.s32 %s3738_s28, 4  ;;  %s4778_s3 = scalar_lea.hbm %s6620_s16, 64  ;;  %s4773_s25 = int_to_ptr.hbm [resolvable:$true] %s4772_s25 }
 0xd32   : > { %s4774_s0 = scalar_lea.hbm %s4773_s25, 32  ;;  %p4779_p6 = scmp.lt.s32.totalorder %s4773_s25, %s6620_s16 }
 0xd33   : > { %p4775_p2 = scmp.ne.s32.totalorder %s4773_s25, %s4774_s0  ;;  %p4780_p7 = scmp.lt.s32.totalorder %s4778_s3, %s4774_s0 }
 0xd35   : > { %p4776_p4 = pnand %p4775_p2, %p5004_p3  ;;  %p4781_p8 = por %p4780_p7, %p4779_p6 }
 0xd37   : > { %p4777_p5 = pneg %p4776_p4 }
 0xd39   : > { %p4782_p10 = pnand %p4781_p8, %p4777_p5 }
 0xd3b   : > { %4785 = shalt.err (!%p4782_p10)
}
 0xd3c   : > { %s4858_s6 = smov 128   ;;  %s4859_s20 = smov 8  }
 0xd3d   : > { %4546 = dma.vmem_to_hbm [thread:$0]  (%p5004_p3), %s3736_s17, 512, %s3738_s28, %s3723_s5, %s4858_s6, %s4858_s6, %s4859_s20  }
 0xd3e PF: > { %s6622_s30 = sld [smem:[#allocation13_spill]] }
 0xd3f   : > { %s6623_s22 = sld [smem:[#allocation6_spill]] }
 0xd44   : > { %p4552_p11 = scmp.ge.s32.totalorder %s6622_s30, 2 }
 0xd45   : > { %s3752_s29 = sand.u32 1, %s6623_s22  }
 0xd46   : > { %p4549_p12 = pnand %p4552_p11, %p5014_p9  ;;  %s3753_s1 = scalar_lea.sflag [#allocation4], %s3752_s29 }
 0xd48   : > { %p4550_p13 = pneg %p4549_p12 }
 0xd4a   : > { %4819 = dma.done.wait (%p4550_p13), %s3753_s1, 512  }
 0xd4b   : > { %4821 = vsyncadd (%p4550_p13), %s3753_s1, 4294966784  ;;  %s31_s20 = sadd.s32 1, %s6622_s30   ;;  %s6625_s27 = sld [smem:[#allocation7_spill]] }
 0xd4c   : > { %p28_p0 = scmp.ge.s32.totalorder %s31_s20, 6   ;;  %s6626_s28 = sld [smem:[#allocation8_spill]] }
 0xd4d   : > { %s6627_s29 = sld [smem:[#allocation18_spill]] }
 0xd4e   : > { %s6628_s30 = sld [smem:[#allocation11_spill]]  ;;  %30 = sbr.rel (!%p28_p0) target bundleno = 17 (0x11), region = 174 }
 0xd4f   : > { %s6629_s0 = sld [smem:[#allocation12_spill]] }
 0xd50   : > { %s6630_s19 = sld [smem:[#allocation14_spill]] }
 0xd51   : > { %s6631_s1 = sld [smem:[#allocation16_spill]] }
 0xd53   :  { %3759 = vsyncpa [#allocation4], 1 }
 0xd54   :  { %3761 = vsyncpa [#allocation4 + $0x1], 1 }

</bundles_post_ra>
